<compile_context>
chip_gen: v6e
topology: v6e:2x2x1
jax: 0.10.0
libtpu: 0.0.40
codegen_flags: <defaults>
</compile_context>

<pallas_src>
import math

import jax
import jax.numpy as jnp
from jax.experimental import pallas as pl
from jax.experimental.pallas import tpu as pltpu  # noqa: F401  (no TPU-specific params needed at this size)

# ----------------- small, module-consistent config -----------------
D_MODEL = 64
N_HEADS = 4            # d_head = 16
FFN_HIDDEN = 128
N_LAYERS = 2
DEC_VOC = 96
VOC_PAD = 128          # lane-dense padded vocab width for the final store
MAX_LEN = 16
BATCH = 2
TRG_LEN = 8
SRC_LEN = 16           # multiple of 8 so in-kernel [B*Ls, D] <-> [B, Ls, D] reshapes are tile-aligned
PAD_IDX = 1            # nn.Embedding(padding_idx=1)
EPS_LN = 1e-12


# ============================ fused Pallas kernel ============================

def _decoder_kernel(
    x_ref, enc_ref,
    tmul_ref, tadd_ref, smul_ref, sadd_ref,
    sa_wqkv_ref, sa_bqkv_ref, sa_wo_ref, sa_bo_ref,
    ca_wq_ref, ca_bq_ref, ca_wkv_ref, ca_bkv_ref, ca_wo_ref, ca_bo_ref,
    ff_w1_ref, ff_b1_ref, ff_w2_ref, ff_b2_ref,
    ln1g_ref, ln1b_ref, ln2g_ref, ln2b_ref, ln3g_ref, ln3b_ref,
    out_w_ref, out_b_ref,
    o_ref,
):
    n_layers = sa_wqkv_ref.shape[0]
    bsz, lq, _ = tmul_ref.shape
    lk = smul_ref.shape[2]
    d_model = x_ref.shape[1]
    d_head = d_model // N_HEADS
    inv_sqrt_dh = 1.0 / math.sqrt(d_head)

    x = x_ref[...]          # [B*Lq, D]  decoder activation slab (stays in VMEM/vregs)
    enc = enc_ref[...]      # [B*Lk, D]  encoder memory
    tmul = tmul_ref[...]    # [B, Lq, Lq]  self-attn mask (1.0 keep / 0.0 masked)
    tadd = tadd_ref[...]    # [B, Lq, Lq]  0.0 keep / -1e4 masked
    smul = smul_ref[...]    # [B, Lq, Lk]
    sadd = sadd_ref[...]

    def layer_norm(y, g, b):
        mean = jnp.mean(y, axis=-1, keepdims=True)
        var = jnp.mean((y - mean) ** 2, axis=-1, keepdims=True)   # unbiased=False
        return g * ((y - mean) / jnp.sqrt(var + EPS_LN)) + b

    def attention(q3, k3, v3, mmul, madd):
        # q3: [B, Lq, D] (already scaled by 1/sqrt(d_head)), k3/v3: [B, Lkv, D]
        heads = []
        for h in range(N_HEADS):
            sl = slice(h * d_head, (h + 1) * d_head)
            s = jnp.einsum("bqd,bkd->bqk", q3[:, :, sl], k3[:, :, sl],
                           preferred_element_type=jnp.float32)
            # exact masked_fill(mask == 0, -10000): keep -> s, masked -> -10000
            s = s * mmul + madd
            s = s - jnp.max(s, axis=-1, keepdims=True)
            p = jnp.exp(s)
            p = p * pl.reciprocal(jnp.sum(p, axis=-1, keepdims=True), approx=True)
            heads.append(jnp.einsum("bqk,bkd->bqd", p, v3[:, :, sl],
                                    preferred_element_type=jnp.float32))
        return jnp.concatenate(heads, axis=-1)          # [B, Lq, D]

    for l in range(n_layers):
        # ---- masked self-attention (Q, K, V fused into one matmul) ----
        qkv = jnp.dot(x, sa_wqkv_ref[l], preferred_element_type=jnp.float32) + sa_bqkv_ref[l]
        q3 = (qkv[:, :d_model] * inv_sqrt_dh).reshape(bsz, lq, d_model)
        k3 = qkv[:, d_model:2 * d_model].reshape(bsz, lq, d_model)
        v3 = qkv[:, 2 * d_model:].reshape(bsz, lq, d_model)
        a = attention(q3, k3, v3, tmul, tadd).reshape(bsz * lq, d_model)
        a = jnp.dot(a, sa_wo_ref[l], preferred_element_type=jnp.float32) + sa_bo_ref[l]
        x = layer_norm(a + x, ln1g_ref[l], ln1b_ref[l])         # dropout = identity (eval)

        # ---- encoder-decoder attention (K, V fused into one matmul) ----
        q = jnp.dot(x, ca_wq_ref[l], preferred_element_type=jnp.float32) + ca_bq_ref[l]
        kv = jnp.dot(enc, ca_wkv_ref[l], preferred_element_type=jnp.float32) + ca_bkv_ref[l]
        q3 = (q * inv_sqrt_dh).reshape(bsz, lq, d_model)
        k3 = kv[:, :d_model].reshape(bsz, lk, d_model)
        v3 = kv[:, d_model:].reshape(bsz, lk, d_model)
        a = attention(q3, k3, v3, smul, sadd).reshape(bsz * lq, d_model)
        a = jnp.dot(a, ca_wo_ref[l], preferred_element_type=jnp.float32) + ca_bo_ref[l]
        x = layer_norm(a + x, ln2g_ref[l], ln2b_ref[l])

        # ---- position-wise feed-forward ----
        hid = jnp.dot(x, ff_w1_ref[l], preferred_element_type=jnp.float32) + ff_b1_ref[l]
        hid = jnp.maximum(hid, 0.0)                             # ReLU
        hid = jnp.dot(hid, ff_w2_ref[l], preferred_element_type=jnp.float32) + ff_b2_ref[l]
        x = layer_norm(hid + x, ln3g_ref[l], ln3b_ref[l])

    # ---- final vocab projection (padded to 128 lanes -> single lane-dense store) ----
    o_ref[...] = jnp.dot(x, out_w_ref[...], preferred_element_type=jnp.float32) + out_b_ref[...]


# ============================ JAX wrapper ============================

@jax.jit
def decoder_forward(params, trg_tokens, enc_src, trg_mask, src_mask):
    B, Lt = trg_tokens.shape
    Ls = enc_src.shape[1]

    # embedding + sinusoidal positional encoding (dropout = identity)
    x = jnp.take(params["emb"], trg_tokens, axis=0) + params["pos_enc"][:Lt][None]
    x2d = x.reshape(B * Lt, D_MODEL)
    enc2d = enc_src.reshape(B * Ls, D_MODEL)

    # masks as (multiply, add) pairs: score*mul + add == masked_fill(mask==0, -1e4)
    tmul = trg_mask[:, 0].astype(jnp.float32)          # [B, Lt, Lt]
    tadd = (tmul - 1.0) * 10000.0
    smul = src_mask[:, 0].astype(jnp.float32)          # [B, Lt, Ls]
    sadd = (smul - 1.0) * 10000.0

    # pad the output projection so the kernel's only store is 128 lanes wide
    out_w = jnp.pad(params["out_w"], ((0, 0), (0, VOC_PAD - DEC_VOC)))
    out_b = jnp.pad(params["out_b"], ((0, 0), (0, VOC_PAD - DEC_VOC)))

    logits = pl.pallas_call(
        _decoder_kernel,
        out_shape=jax.ShapeDtypeStruct((B * Lt, VOC_PAD), jnp.float32),
    )(
        x2d, enc2d, tmul, tadd, smul, sadd,
        params["sa_wqkv"], params["sa_bqkv"], params["sa_wo"], params["sa_bo"],
        params["ca_wq"], params["ca_bq"], params["ca_wkv"], params["ca_bkv"],
        params["ca_wo"], params["ca_bo"],
        params["ff_w1"], params["ff_b1"], params["ff_w2"], params["ff_b2"],
        params["ln1_g"], params["ln1_b"], params["ln2_g"], params["ln2_b"],
        params["ln3_g"], params["ln3_b"],
        out_w, out_b,
    )
    return logits[:, :DEC_VOC].reshape(B, Lt, DEC_VOC)


# ============================ masks (Transformer.make_*_mask) ============================

def make_trg_mask(trg):
    pad = (trg != PAD_IDX)[:, None, :, None]                  # [B,1,L,1]
    L = trg.shape[1]
    sub = jnp.tril(jnp.ones((L, L), jnp.int32)) == 1          # causal
    return (pad & sub).astype(jnp.int32)                      # [B,1,L,L]


def make_src_mask(src, trg_len):
    m = (src != PAD_IDX)[:, None, None, :]                    # [B,1,1,Ls]
    return jnp.broadcast_to(
        m, (src.shape[0], 1, trg_len, src.shape[1])
    ).astype(jnp.int32)                                       # [B,1,Lt,Ls]


# ============================ deterministic parameter init ============================

def sinusoid_encoding(max_len, d_model):
    pos = jnp.arange(max_len, dtype=jnp.float32)[:, None]
    _2i = jnp.arange(0, d_model, 2, dtype=jnp.float32)
    enc = jnp.zeros((max_len, d_model), jnp.float32)
    enc = enc.at[:, 0::2].set(jnp.sin(pos / 10000.0 ** (_2i / d_model)))
    enc = enc.at[:, 1::2].set(jnp.cos(pos / 10000.0 ** (_2i / d_model)))
    return enc


def _stack_linear(keyiter, din, dout, n):
    s = 1.0 / math.sqrt(din)
    ws, bs = [], []
    for _ in range(n):
        ws.append(jax.random.uniform(next(keyiter), (din, dout), jnp.float32, -s, s))
        bs.append(jax.random.uniform(next(keyiter), (1, dout), jnp.float32, -s, s))
    return jnp.stack(ws), jnp.stack(bs)


def init_params(key):
    keys = iter(jax.random.split(key, 128))

    emb = jax.random.normal(next(keys), (DEC_VOC, D_MODEL), jnp.float32) * 0.02
    emb = emb.at[PAD_IDX].set(0.0)  # padding_idx=1

    sa_wqkv, sa_bqkv = _stack_linear(keys, D_MODEL, 3 * D_MODEL, N_LAYERS)
    sa_wo, sa_bo = _stack_linear(keys, D_MODEL, D_MODEL, N_LAYERS)
    ca_wq, ca_bq = _stack_linear(keys, D_MODEL, D_MODEL, N_LAYERS)
    ca_wkv, ca_bkv = _stack_linear(keys, D_MODEL, 2 * D_MODEL, N_LAYERS)
    ca_wo, ca_bo = _stack_linear(keys, D_MODEL, D_MODEL, N_LAYERS)
    ff_w1, ff_b1 = _stack_linear(keys, D_MODEL, FFN_HIDDEN, N_LAYERS)
    ff_w2, ff_b2 = _stack_linear(keys, FFN_HIDDEN, D_MODEL, N_LAYERS)

    s = 1.0 / math.sqrt(D_MODEL)
    out_w = jax.random.uniform(next(keys), (D_MODEL, DEC_VOC), jnp.float32, -s, s)
    out_b = jax.random.uniform(next(keys), (1, DEC_VOC), jnp.float32, -s, s)

    ones = jnp.ones((N_LAYERS, 1, D_MODEL), jnp.float32)
    zeros = jnp.zeros((N_LAYERS, 1, D_MODEL), jnp.float32)

    return dict(
        emb=emb, pos_enc=sinusoid_encoding(MAX_LEN, D_MODEL),
        sa_wqkv=sa_wqkv, sa_bqkv=sa_bqkv, sa_wo=sa_wo, sa_bo=sa_bo,
        ca_wq=ca_wq, ca_bq=ca_bq, ca_wkv=ca_wkv, ca_bkv=ca_bkv, ca_wo=ca_wo, ca_bo=ca_bo,
        ff_w1=ff_w1, ff_b1=ff_b1, ff_w2=ff_w2, ff_b2=ff_b2,
        ln1_g=ones, ln1_b=zeros, ln2_g=ones, ln2_b=zeros, ln3_g=ones, ln3_b=zeros,
        out_w=out_w, out_b=out_b,
    )


# ============================ pure-JAX reference (PyTorch semantics) ============================

def _split_heads(x):
    B, L, Dm = x.shape
    return x.reshape(B, L, N_HEADS, Dm // N_HEADS).transpose(0, 2, 1, 3)


def _concat_heads(x):
    B, H, L, Dh = x.shape
    return x.transpose(0, 2, 1, 3).reshape(B, L, H * Dh)


def _ref_ln(x, g, b):
    m = jnp.mean(x, -1, keepdims=True)
    v = jnp.mean((x - m) ** 2, -1, keepdims=True)
    return g * (x - m) / jnp.sqrt(v + EPS_LN) + b


def _ref_mha(q, k, v, wq, bq, wk, bk, wv, bv, wo, bo, mask):
    q = q @ wq + bq
    k = k @ wk + bk
    v = v @ wv + bv
    qh, kh, vh = _split_heads(q), _split_heads(k), _split_heads(v)
    s = jnp.einsum("bhqd,bhkd->bhqk", qh, kh) / math.sqrt(qh.shape[-1])
    s = jnp.where(mask == 0, -10000.0, s)
    p = jax.nn.softmax(s, axis=-1)
    o = _concat_heads(jnp.einsum("bhqk,bhkd->bhqd", p, vh))
    return o @ wo + bo


def decoder_reference(params, trg_tokens, enc_src, trg_mask, src_mask):
    D = D_MODEL
    x = jnp.take(params["emb"], trg_tokens, axis=0) + params["pos_enc"][: trg_tokens.shape[1]][None]
    for l in range(N_LAYERS):
        wqkv, bqkv = params["sa_wqkv"][l], params["sa_bqkv"][l]
        x = _ref_ln(
            _ref_mha(x, x, x,
                     wqkv[:, :D], bqkv[:, :D],
                     wqkv[:, D:2 * D], bqkv[:, D:2 * D],
                     wqkv[:, 2 * D:], bqkv[:, 2 * D:],
                     params["sa_wo"][l], params["sa_bo"][l], trg_mask) + x,
            params["ln1_g"][l], params["ln1_b"][l])
        wkv, bkv = params["ca_wkv"][l], params["ca_bkv"][l]
        x = _ref_ln(
            _ref_mha(x, enc_src, enc_src,
                     params["ca_wq"][l], params["ca_bq"][l],
                     wkv[:, :D], bkv[:, :D],
                     wkv[:, D:], bkv[:, D:],
                     params["ca_wo"][l], params["ca_bo"][l], src_mask) + x,
            params["ln2_g"][l], params["ln2_b"][l])
        h = jnp.maximum(x @ params["ff_w1"][l] + params["ff_b1"][l], 0.0)
        h = h @ params["ff_w2"][l] + params["ff_b2"][l]
        x = _ref_ln(h + x, params["ln3_g"][l], params["ln3_b"][l])
    return x @ params["out_w"] + params["out_b"]


# ============================ main ============================

if __name__ == "__main__":
    key = jax.random.PRNGKey(0)
    k_param, k_trg, k_enc = jax.random.split(key, 3)

    params = init_params(k_param)

    # target token ids (put one pad token to exercise the pad mask)
    trg_tokens = jax.random.randint(k_trg, (BATCH, TRG_LEN), 2, DEC_VOC, dtype=jnp.int32)
    trg_tokens = trg_tokens.at[1, -1].set(PAD_IDX)

    # encoder output (already-embedded source memory) and source token ids for the mask
    enc_src = jax.random.normal(k_enc, (BATCH, SRC_LEN, D_MODEL), jnp.float32)
    src_tokens = jnp.full((BATCH, SRC_LEN), 5, jnp.int32)
    src_tokens = src_tokens.at[1, -3:].set(PAD_IDX)

    trg_mask = make_trg_mask(trg_tokens)              # [B,1,Lt,Lt]
    src_mask = make_src_mask(src_tokens, TRG_LEN)     # [B,1,Lt,Ls]

    out = decoder_forward(params, trg_tokens, enc_src, trg_mask, src_mask)
    out = jax.block_until_ready(out)

    ref = decoder_reference(params, trg_tokens, enc_src, trg_mask, src_mask)
    assert out.shape == (BATCH, TRG_LEN, DEC_VOC)
    assert bool(jnp.all(jnp.isfinite(out)))
    assert bool(jnp.allclose(out, ref, rtol=2e-2, atol=2e-2))

    print("KERNEL_OK")
</pallas_src>

<mosaic_0001>
module attributes {stable_mosaic.version = 11 : i64} {
  func.func @_decoder_kernel(%arg0: memref<16x64xf32, #tpu.memory_space<vmem>>, %arg1: memref<32x64xf32, #tpu.memory_space<vmem>>, %arg2: memref<2x8x8xf32, #tpu.memory_space<vmem>>, %arg3: memref<2x8x8xf32, #tpu.memory_space<vmem>>, %arg4: memref<2x8x16xf32, #tpu.memory_space<vmem>>, %arg5: memref<2x8x16xf32, #tpu.memory_space<vmem>>, %arg6: memref<2x64x192xf32, #tpu.memory_space<vmem>>, %arg7: memref<2x1x192xf32, #tpu.memory_space<vmem>>, %arg8: memref<2x64x64xf32, #tpu.memory_space<vmem>>, %arg9: memref<2x1x64xf32, #tpu.memory_space<vmem>>, %arg10: memref<2x64x64xf32, #tpu.memory_space<vmem>>, %arg11: memref<2x1x64xf32, #tpu.memory_space<vmem>>, %arg12: memref<2x64x128xf32, #tpu.memory_space<vmem>>, %arg13: memref<2x1x128xf32, #tpu.memory_space<vmem>>, %arg14: memref<2x64x64xf32, #tpu.memory_space<vmem>>, %arg15: memref<2x1x64xf32, #tpu.memory_space<vmem>>, %arg16: memref<2x64x128xf32, #tpu.memory_space<vmem>>, %arg17: memref<2x1x128xf32, #tpu.memory_space<vmem>>, %arg18: memref<2x128x64xf32, #tpu.memory_space<vmem>>, %arg19: memref<2x1x64xf32, #tpu.memory_space<vmem>>, %arg20: memref<2x1x64xf32, #tpu.memory_space<vmem>>, %arg21: memref<2x1x64xf32, #tpu.memory_space<vmem>>, %arg22: memref<2x1x64xf32, #tpu.memory_space<vmem>>, %arg23: memref<2x1x64xf32, #tpu.memory_space<vmem>>, %arg24: memref<2x1x64xf32, #tpu.memory_space<vmem>>, %arg25: memref<2x1x64xf32, #tpu.memory_space<vmem>>, %arg26: memref<64x128xf32, #tpu.memory_space<vmem>>, %arg27: memref<1x128xf32, #tpu.memory_space<vmem>>, %arg28: memref<16x128xf32, #tpu.memory_space<vmem>>) attributes {dimension_semantics = [], scalar_prefetch = 0 : i64, scratch_operands = 0 : i64, tpu.core_type = #tpu.core_type<tc>} {
    %c0 = arith.constant 0 : index
    %c0_0 = arith.constant 0 : index
    %0 = vector.load %arg0[%c0, %c0_0] : memref<16x64xf32, #tpu.memory_space<vmem>>, vector<16x64xf32>
    %c0_1 = arith.constant 0 : index
    %c0_2 = arith.constant 0 : index
    %1 = vector.load %arg1[%c0_1, %c0_2] : memref<32x64xf32, #tpu.memory_space<vmem>>, vector<32x64xf32>
    %c0_3 = arith.constant 0 : index
    %c0_4 = arith.constant 0 : index
    %c0_5 = arith.constant 0 : index
    %2 = vector.load %arg2[%c0_3, %c0_4, %c0_5] : memref<2x8x8xf32, #tpu.memory_space<vmem>>, vector<2x8x8xf32>
    %c0_6 = arith.constant 0 : index
    %c0_7 = arith.constant 0 : index
    %c0_8 = arith.constant 0 : index
    %3 = vector.load %arg3[%c0_6, %c0_7, %c0_8] : memref<2x8x8xf32, #tpu.memory_space<vmem>>, vector<2x8x8xf32>
    %c0_9 = arith.constant 0 : index
    %c0_10 = arith.constant 0 : index
    %c0_11 = arith.constant 0 : index
    %4 = vector.load %arg4[%c0_9, %c0_10, %c0_11] : memref<2x8x16xf32, #tpu.memory_space<vmem>>, vector<2x8x16xf32>
    %c0_12 = arith.constant 0 : index
    %c0_13 = arith.constant 0 : index
    %c0_14 = arith.constant 0 : index
    %5 = vector.load %arg5[%c0_12, %c0_13, %c0_14] : memref<2x8x16xf32, #tpu.memory_space<vmem>>, vector<2x8x16xf32>
    %c0_15 = arith.constant 0 : index
    %c0_16 = arith.constant 0 : index
    %c0_17 = arith.constant 0 : index
    %6 = vector.load %arg6[%c0_15, %c0_16, %c0_17] : memref<2x64x192xf32, #tpu.memory_space<vmem>>, vector<1x64x192xf32>
    %7 = vector.shape_cast %6 : vector<1x64x192xf32> to vector<64x192xf32>
    %cst = arith.constant dense<0.000000e+00> : vector<16x192xf32>
    %8 = tpu.matmul %0, %7, %cst {dimension_numbers = #tpu.dot_dimension_numbers<[1], [0], [0], [1], [0, 0, 1, 1], [], []>} : vector<16x64xf32>, vector<64x192xf32>, vector<16x192xf32> -> vector<16x192xf32>
    %c0_18 = arith.constant 0 : index
    %c0_19 = arith.constant 0 : index
    %c0_20 = arith.constant 0 : index
    %9 = vector.load %arg7[%c0_18, %c0_19, %c0_20] : memref<2x1x192xf32, #tpu.memory_space<vmem>>, vector<1x1x192xf32>
    %10 = vector.shape_cast %9 : vector<1x1x192xf32> to vector<1x192xf32>
    %11 = vector.broadcast %10 : vector<1x192xf32> to vector<16x192xf32>
    %12 = arith.addf %8, %11 : vector<16x192xf32>
    %13 = vector.extract_strided_slice %12 {offsets = [0, 0], sizes = [16, 64], strides = [1, 1]} : vector<16x192xf32> to vector<16x64xf32>
    %cst_21 = arith.constant 2.500000e-01 : f32
    %14 = vector.broadcast %cst_21 : f32 to vector<16x64xf32>
    %15 = arith.mulf %13, %14 : vector<16x64xf32>
    %16 = vector.shape_cast %15 : vector<16x64xf32> to vector<2x8x64xf32>
    %17 = vector.extract_strided_slice %12 {offsets = [0, 64], sizes = [16, 64], strides = [1, 1]} : vector<16x192xf32> to vector<16x64xf32>
    %18 = vector.shape_cast %17 : vector<16x64xf32> to vector<2x8x64xf32>
    %19 = vector.extract_strided_slice %12 {offsets = [0, 128], sizes = [16, 64], strides = [1, 1]} : vector<16x192xf32> to vector<16x64xf32>
    %20 = vector.shape_cast %19 : vector<16x64xf32> to vector<2x8x64xf32>
    %21 = vector.extract_strided_slice %16 {offsets = [0, 0, 0], sizes = [2, 8, 16], strides = [1, 1, 1]} : vector<2x8x64xf32> to vector<2x8x16xf32>
    %22 = vector.extract_strided_slice %18 {offsets = [0, 0, 0], sizes = [2, 8, 16], strides = [1, 1, 1]} : vector<2x8x64xf32> to vector<2x8x16xf32>
    "tpu.trace_start"() <{level = 10 : i32, message = "bqd,bkd->bqk"}> : () -> ()
    %cst_22 = arith.constant dense<0.000000e+00> : vector<2x8x8xf32>
    %23 = tpu.matmul %21, %22, %cst_22 {dimension_numbers = #tpu.dot_dimension_numbers<[2], [2], [1], [1], [0, 0, 0, 1, 1, 1], [0], [0]>} : vector<2x8x16xf32>, vector<2x8x16xf32>, vector<2x8x8xf32> -> vector<2x8x8xf32>
    "tpu.trace_stop"() : () -> ()
    %24 = arith.mulf %23, %2 : vector<2x8x8xf32>
    %25 = arith.addf %24, %3 : vector<2x8x8xf32>
    %cst_23 = arith.constant dense<0xFF800000> : vector<2x8xf32>
    %26 = vector.multi_reduction <maximumf>, %25, %cst_23 [2] : vector<2x8x8xf32> to vector<2x8xf32>
    %27 = vector.shape_cast %26 : vector<2x8xf32> to vector<2x8x1xf32>
    %28 = vector.broadcast %27 : vector<2x8x1xf32> to vector<2x8x8xf32>
    %29 = arith.subf %25, %28 : vector<2x8x8xf32>
    %30 = math.exp %29 : vector<2x8x8xf32>
    %cst_24 = arith.constant dense<0.000000e+00> : vector<2x8xf32>
    %31 = vector.multi_reduction <add>, %30, %cst_24 [2] : vector<2x8x8xf32> to vector<2x8xf32>
    %32 = vector.shape_cast %31 : vector<2x8xf32> to vector<2x8x1xf32>
    %33 = tpu.reciprocal %32 {approx = true} : vector<2x8x1xf32> -> vector<2x8x1xf32>
    %34 = vector.broadcast %33 : vector<2x8x1xf32> to vector<2x8x8xf32>
    %35 = arith.mulf %30, %34 : vector<2x8x8xf32>
    %36 = vector.extract_strided_slice %20 {offsets = [0, 0, 0], sizes = [2, 8, 16], strides = [1, 1, 1]} : vector<2x8x64xf32> to vector<2x8x16xf32>
    "tpu.trace_start"() <{level = 10 : i32, message = "bqk,bkd->bqd"}> : () -> ()
    %cst_25 = arith.constant dense<0.000000e+00> : vector<2x8x16xf32>
    %37 = tpu.matmul %35, %36, %cst_25 {dimension_numbers = #tpu.dot_dimension_numbers<[2], [1], [1], [2], [0, 0, 0, 1, 1, 2], [0], [0]>} : vector<2x8x8xf32>, vector<2x8x16xf32>, vector<2x8x16xf32> -> vector<2x8x16xf32>
    "tpu.trace_stop"() : () -> ()
    %38 = vector.extract_strided_slice %16 {offsets = [0, 0, 16], sizes = [2, 8, 16], strides = [1, 1, 1]} : vector<2x8x64xf32> to vector<2x8x16xf32>
    %39 = vector.extract_strided_slice %18 {offsets = [0, 0, 16], sizes = [2, 8, 16], strides = [1, 1, 1]} : vector<2x8x64xf32> to vector<2x8x16xf32>
    "tpu.trace_start"() <{level = 10 : i32, message = "bqd,bkd->bqk"}> : () -> ()
    %cst_26 = arith.constant dense<0.000000e+00> : vector<2x8x8xf32>
    %40 = tpu.matmul %38, %39, %cst_26 {dimension_numbers = #tpu.dot_dimension_numbers<[2], [2], [1], [1], [0, 0, 0, 1, 1, 1], [0], [0]>} : vector<2x8x16xf32>, vector<2x8x16xf32>, vector<2x8x8xf32> -> vector<2x8x8xf32>
    "tpu.trace_stop"() : () -> ()
    %41 = arith.mulf %40, %2 : vector<2x8x8xf32>
    %42 = arith.addf %41, %3 : vector<2x8x8xf32>
    %cst_27 = arith.constant dense<0xFF800000> : vector<2x8xf32>
    %43 = vector.multi_reduction <maximumf>, %42, %cst_27 [2] : vector<2x8x8xf32> to vector<2x8xf32>
    %44 = vector.shape_cast %43 : vector<2x8xf32> to vector<2x8x1xf32>
    %45 = vector.broadcast %44 : vector<2x8x1xf32> to vector<2x8x8xf32>
    %46 = arith.subf %42, %45 : vector<2x8x8xf32>
    %47 = math.exp %46 : vector<2x8x8xf32>
    %cst_28 = arith.constant dense<0.000000e+00> : vector<2x8xf32>
    %48 = vector.multi_reduction <add>, %47, %cst_28 [2] : vector<2x8x8xf32> to vector<2x8xf32>
    %49 = vector.shape_cast %48 : vector<2x8xf32> to vector<2x8x1xf32>
    %50 = tpu.reciprocal %49 {approx = true} : vector<2x8x1xf32> -> vector<2x8x1xf32>
    %51 = vector.broadcast %50 : vector<2x8x1xf32> to vector<2x8x8xf32>
    %52 = arith.mulf %47, %51 : vector<2x8x8xf32>
    %53 = vector.extract_strided_slice %20 {offsets = [0, 0, 16], sizes = [2, 8, 16], strides = [1, 1, 1]} : vector<2x8x64xf32> to vector<2x8x16xf32>
    "tpu.trace_start"() <{level = 10 : i32, message = "bqk,bkd->bqd"}> : () -> ()
    %cst_29 = arith.constant dense<0.000000e+00> : vector<2x8x16xf32>
    %54 = tpu.matmul %52, %53, %cst_29 {dimension_numbers = #tpu.dot_dimension_numbers<[2], [1], [1], [2], [0, 0, 0, 1, 1, 2], [0], [0]>} : vector<2x8x8xf32>, vector<2x8x16xf32>, vector<2x8x16xf32> -> vector<2x8x16xf32>
    "tpu.trace_stop"() : () -> ()
    %55 = vector.extract_strided_slice %16 {offsets = [0, 0, 32], sizes = [2, 8, 16], strides = [1, 1, 1]} : vector<2x8x64xf32> to vector<2x8x16xf32>
    %56 = vector.extract_strided_slice %18 {offsets = [0, 0, 32], sizes = [2, 8, 16], strides = [1, 1, 1]} : vector<2x8x64xf32> to vector<2x8x16xf32>
    "tpu.trace_start"() <{level = 10 : i32, message = "bqd,bkd->bqk"}> : () -> ()
    %cst_30 = arith.constant dense<0.000000e+00> : vector<2x8x8xf32>
    %57 = tpu.matmul %55, %56, %cst_30 {dimension_numbers = #tpu.dot_dimension_numbers<[2], [2], [1], [1], [0, 0, 0, 1, 1, 1], [0], [0]>} : vector<2x8x16xf32>, vector<2x8x16xf32>, vector<2x8x8xf32> -> vector<2x8x8xf32>
    "tpu.trace_stop"() : () -> ()
    %58 = arith.mulf %57, %2 : vector<2x8x8xf32>
    %59 = arith.addf %58, %3 : vector<2x8x8xf32>
    %cst_31 = arith.constant dense<0xFF800000> : vector<2x8xf32>
    %60 = vector.multi_reduction <maximumf>, %59, %cst_31 [2] : vector<2x8x8xf32> to vector<2x8xf32>
    %61 = vector.shape_cast %60 : vector<2x8xf32> to vector<2x8x1xf32>
    %62 = vector.broadcast %61 : vector<2x8x1xf32> to vector<2x8x8xf32>
    %63 = arith.subf %59, %62 : vector<2x8x8xf32>
    %64 = math.exp %63 : vector<2x8x8xf32>
    %cst_32 = arith.constant dense<0.000000e+00> : vector<2x8xf32>
    %65 = vector.multi_reduction <add>, %64, %cst_32 [2] : vector<2x8x8xf32> to vector<2x8xf32>
    %66 = vector.shape_cast %65 : vector<2x8xf32> to vector<2x8x1xf32>
    %67 = tpu.reciprocal %66 {approx = true} : vector<2x8x1xf32> -> vector<2x8x1xf32>
    %68 = vector.broadcast %67 : vector<2x8x1xf32> to vector<2x8x8xf32>
    %69 = arith.mulf %64, %68 : vector<2x8x8xf32>
    %70 = vector.extract_strided_slice %20 {offsets = [0, 0, 32], sizes = [2, 8, 16], strides = [1, 1, 1]} : vector<2x8x64xf32> to vector<2x8x16xf32>
    "tpu.trace_start"() <{level = 10 : i32, message = "bqk,bkd->bqd"}> : () -> ()
    %cst_33 = arith.constant dense<0.000000e+00> : vector<2x8x16xf32>
    %71 = tpu.matmul %69, %70, %cst_33 {dimension_numbers = #tpu.dot_dimension_numbers<[2], [1], [1], [2], [0, 0, 0, 1, 1, 2], [0], [0]>} : vector<2x8x8xf32>, vector<2x8x16xf32>, vector<2x8x16xf32> -> vector<2x8x16xf32>
    "tpu.trace_stop"() : () -> ()
    %72 = vector.extract_strided_slice %16 {offsets = [0, 0, 48], sizes = [2, 8, 16], strides = [1, 1, 1]} : vector<2x8x64xf32> to vector<2x8x16xf32>
    %73 = vector.extract_strided_slice %18 {offsets = [0, 0, 48], sizes = [2, 8, 16], strides = [1, 1, 1]} : vector<2x8x64xf32> to vector<2x8x16xf32>
    "tpu.trace_start"() <{level = 10 : i32, message = "bqd,bkd->bqk"}> : () -> ()
    %cst_34 = arith.constant dense<0.000000e+00> : vector<2x8x8xf32>
    %74 = tpu.matmul %72, %73, %cst_34 {dimension_numbers = #tpu.dot_dimension_numbers<[2], [2], [1], [1], [0, 0, 0, 1, 1, 1], [0], [0]>} : vector<2x8x16xf32>, vector<2x8x16xf32>, vector<2x8x8xf32> -> vector<2x8x8xf32>
    "tpu.trace_stop"() : () -> ()
    %75 = arith.mulf %74, %2 : vector<2x8x8xf32>
    %76 = arith.addf %75, %3 : vector<2x8x8xf32>
    %cst_35 = arith.constant dense<0xFF800000> : vector<2x8xf32>
    %77 = vector.multi_reduction <maximumf>, %76, %cst_35 [2] : vector<2x8x8xf32> to vector<2x8xf32>
    %78 = vector.shape_cast %77 : vector<2x8xf32> to vector<2x8x1xf32>
    %79 = vector.broadcast %78 : vector<2x8x1xf32> to vector<2x8x8xf32>
    %80 = arith.subf %76, %79 : vector<2x8x8xf32>
    %81 = math.exp %80 : vector<2x8x8xf32>
    %cst_36 = arith.constant dense<0.000000e+00> : vector<2x8xf32>
    %82 = vector.multi_reduction <add>, %81, %cst_36 [2] : vector<2x8x8xf32> to vector<2x8xf32>
    %83 = vector.shape_cast %82 : vector<2x8xf32> to vector<2x8x1xf32>
    %84 = tpu.reciprocal %83 {approx = true} : vector<2x8x1xf32> -> vector<2x8x1xf32>
    %85 = vector.broadcast %84 : vector<2x8x1xf32> to vector<2x8x8xf32>
    %86 = arith.mulf %81, %85 : vector<2x8x8xf32>
    %87 = vector.extract_strided_slice %20 {offsets = [0, 0, 48], sizes = [2, 8, 16], strides = [1, 1, 1]} : vector<2x8x64xf32> to vector<2x8x16xf32>
    "tpu.trace_start"() <{level = 10 : i32, message = "bqk,bkd->bqd"}> : () -> ()
    %cst_37 = arith.constant dense<0.000000e+00> : vector<2x8x16xf32>
    %88 = tpu.matmul %86, %87, %cst_37 {dimension_numbers = #tpu.dot_dimension_numbers<[2], [1], [1], [2], [0, 0, 0, 1, 1, 2], [0], [0]>} : vector<2x8x8xf32>, vector<2x8x16xf32>, vector<2x8x16xf32> -> vector<2x8x16xf32>
    "tpu.trace_stop"() : () -> ()
    %89 = tpu.concatenate %37, %54, %71, %88 in 2 : vector<2x8x16xf32>, vector<2x8x16xf32>, vector<2x8x16xf32>, vector<2x8x16xf32> -> vector<2x8x64xf32>
    %90 = vector.shape_cast %89 : vector<2x8x64xf32> to vector<16x64xf32>
    %c0_38 = arith.constant 0 : index
    %c0_39 = arith.constant 0 : index
    %c0_40 = arith.constant 0 : index
    %91 = vector.load %arg8[%c0_38, %c0_39, %c0_40] : memref<2x64x64xf32, #tpu.memory_space<vmem>>, vector<1x64x64xf32>
    %92 = vector.shape_cast %91 : vector<1x64x64xf32> to vector<64x64xf32>
    %cst_41 = arith.constant dense<0.000000e+00> : vector<16x64xf32>
    %93 = tpu.matmul %90, %92, %cst_41 {dimension_numbers = #tpu.dot_dimension_numbers<[1], [0], [0], [1], [0, 0, 1, 1], [], []>} : vector<16x64xf32>, vector<64x64xf32>, vector<16x64xf32> -> vector<16x64xf32>
    %c0_42 = arith.constant 0 : index
    %c0_43 = arith.constant 0 : index
    %c0_44 = arith.constant 0 : index
    %94 = vector.load %arg9[%c0_42, %c0_43, %c0_44] : memref<2x1x64xf32, #tpu.memory_space<vmem>>, vector<1x1x64xf32>
    %95 = vector.shape_cast %94 : vector<1x1x64xf32> to vector<1x64xf32>
    %96 = vector.broadcast %95 : vector<1x64xf32> to vector<16x64xf32>
    %97 = arith.addf %93, %96 : vector<16x64xf32>
    %98 = arith.addf %97, %0 : vector<16x64xf32>
    %c0_45 = arith.constant 0 : index
    %c0_46 = arith.constant 0 : index
    %c0_47 = arith.constant 0 : index
    %99 = vector.load %arg20[%c0_45, %c0_46, %c0_47] : memref<2x1x64xf32, #tpu.memory_space<vmem>>, vector<1x1x64xf32>
    %100 = vector.shape_cast %99 : vector<1x1x64xf32> to vector<1x64xf32>
    %c0_48 = arith.constant 0 : index
    %c0_49 = arith.constant 0 : index
    %c0_50 = arith.constant 0 : index
    %101 = vector.load %arg21[%c0_48, %c0_49, %c0_50] : memref<2x1x64xf32, #tpu.memory_space<vmem>>, vector<1x1x64xf32>
    %102 = vector.shape_cast %101 : vector<1x1x64xf32> to vector<1x64xf32>
    %cst_51 = arith.constant dense<0.000000e+00> : vector<16xf32>
    %103 = vector.multi_reduction <add>, %98, %cst_51 [1] : vector<16x64xf32> to vector<16xf32>
    %104 = vector.shape_cast %103 : vector<16xf32> to vector<16x1xf32>
    %cst_52 = arith.constant 6.400000e+01 : f32
    %105 = vector.broadcast %cst_52 : f32 to vector<16x1xf32>
    %106 = arith.divf %104, %105 : vector<16x1xf32>
    %107 = vector.broadcast %106 : vector<16x1xf32> to vector<16x64xf32>
    %108 = arith.subf %98, %107 : vector<16x64xf32>
    %109 = arith.mulf %108, %108 : vector<16x64xf32>
    %cst_53 = arith.constant dense<0.000000e+00> : vector<16xf32>
    %110 = vector.multi_reduction <add>, %109, %cst_53 [1] : vector<16x64xf32> to vector<16xf32>
    %111 = vector.shape_cast %110 : vector<16xf32> to vector<16x1xf32>
    %cst_54 = arith.constant 6.400000e+01 : f32
    %112 = vector.broadcast %cst_54 : f32 to vector<16x1xf32>
    %113 = arith.divf %111, %112 : vector<16x1xf32>
    %114 = vector.broadcast %106 : vector<16x1xf32> to vector<16x64xf32>
    %115 = arith.subf %98, %114 : vector<16x64xf32>
    %cst_55 = arith.constant 9.99999996E-13 : f32
    %116 = vector.broadcast %cst_55 : f32 to vector<16x1xf32>
    %117 = arith.addf %113, %116 : vector<16x1xf32>
    %118 = math.sqrt %117 : vector<16x1xf32>
    %119 = vector.broadcast %118 : vector<16x1xf32> to vector<16x64xf32>
    %120 = arith.divf %115, %119 : vector<16x64xf32>
    %121 = vector.broadcast %100 : vector<1x64xf32> to vector<16x64xf32>
    %122 = arith.mulf %121, %120 : vector<16x64xf32>
    %123 = vector.broadcast %102 : vector<1x64xf32> to vector<16x64xf32>
    %124 = arith.addf %122, %123 : vector<16x64xf32>
    %c0_56 = arith.constant 0 : index
    %c0_57 = arith.constant 0 : index
    %c0_58 = arith.constant 0 : index
    %125 = vector.load %arg10[%c0_56, %c0_57, %c0_58] : memref<2x64x64xf32, #tpu.memory_space<vmem>>, vector<1x64x64xf32>
    %126 = vector.shape_cast %125 : vector<1x64x64xf32> to vector<64x64xf32>
    %cst_59 = arith.constant dense<0.000000e+00> : vector<16x64xf32>
    %127 = tpu.matmul %124, %126, %cst_59 {dimension_numbers = #tpu.dot_dimension_numbers<[1], [0], [0], [1], [0, 0, 1, 1], [], []>} : vector<16x64xf32>, vector<64x64xf32>, vector<16x64xf32> -> vector<16x64xf32>
    %c0_60 = arith.constant 0 : index
    %c0_61 = arith.constant 0 : index
    %c0_62 = arith.constant 0 : index
    %128 = vector.load %arg11[%c0_60, %c0_61, %c0_62] : memref<2x1x64xf32, #tpu.memory_space<vmem>>, vector<1x1x64xf32>
    %129 = vector.shape_cast %128 : vector<1x1x64xf32> to vector<1x64xf32>
    %130 = vector.broadcast %129 : vector<1x64xf32> to vector<16x64xf32>
    %131 = arith.addf %127, %130 : vector<16x64xf32>
    %c0_63 = arith.constant 0 : index
    %c0_64 = arith.constant 0 : index
    %c0_65 = arith.constant 0 : index
    %132 = vector.load %arg12[%c0_63, %c0_64, %c0_65] : memref<2x64x128xf32, #tpu.memory_space<vmem>>, vector<1x64x128xf32>
    %133 = vector.shape_cast %132 : vector<1x64x128xf32> to vector<64x128xf32>
    %cst_66 = arith.constant dense<0.000000e+00> : vector<32x128xf32>
    %134 = tpu.matmul %1, %133, %cst_66 {dimension_numbers = #tpu.dot_dimension_numbers<[1], [0], [0], [1], [0, 0, 1, 1], [], []>} : vector<32x64xf32>, vector<64x128xf32>, vector<32x128xf32> -> vector<32x128xf32>
    %c0_67 = arith.constant 0 : index
    %c0_68 = arith.constant 0 : index
    %c0_69 = arith.constant 0 : index
    %135 = vector.load %arg13[%c0_67, %c0_68, %c0_69] : memref<2x1x128xf32, #tpu.memory_space<vmem>>, vector<1x1x128xf32>
    %136 = vector.shape_cast %135 : vector<1x1x128xf32> to vector<1x128xf32>
    %137 = vector.broadcast %136 : vector<1x128xf32> to vector<32x128xf32>
    %138 = arith.addf %134, %137 : vector<32x128xf32>
    %cst_70 = arith.constant 2.500000e-01 : f32
    %139 = vector.broadcast %cst_70 : f32 to vector<16x64xf32>
    %140 = arith.mulf %131, %139 : vector<16x64xf32>
    %141 = vector.shape_cast %140 : vector<16x64xf32> to vector<2x8x64xf32>
    %142 = vector.extract_strided_slice %138 {offsets = [0, 0], sizes = [32, 64], strides = [1, 1]} : vector<32x128xf32> to vector<32x64xf32>
    %143 = vector.shape_cast %142 : vector<32x64xf32> to vector<2x16x64xf32>
    %144 = vector.extract_strided_slice %138 {offsets = [0, 64], sizes = [32, 64], strides = [1, 1]} : vector<32x128xf32> to vector<32x64xf32>
    %145 = vector.shape_cast %144 : vector<32x64xf32> to vector<2x16x64xf32>
    %146 = vector.extract_strided_slice %141 {offsets = [0, 0, 0], sizes = [2, 8, 16], strides = [1, 1, 1]} : vector<2x8x64xf32> to vector<2x8x16xf32>
    %147 = vector.extract_strided_slice %143 {offsets = [0, 0, 0], sizes = [2, 16, 16], strides = [1, 1, 1]} : vector<2x16x64xf32> to vector<2x16x16xf32>
    "tpu.trace_start"() <{level = 10 : i32, message = "bqd,bkd->bqk"}> : () -> ()
    %cst_71 = arith.constant dense<0.000000e+00> : vector<2x8x16xf32>
    %148 = tpu.matmul %146, %147, %cst_71 {dimension_numbers = #tpu.dot_dimension_numbers<[2], [2], [1], [1], [0, 0, 0, 1, 1, 1], [0], [0]>} : vector<2x8x16xf32>, vector<2x16x16xf32>, vector<2x8x16xf32> -> vector<2x8x16xf32>
    "tpu.trace_stop"() : () -> ()
    %149 = arith.mulf %148, %4 : vector<2x8x16xf32>
    %150 = arith.addf %149, %5 : vector<2x8x16xf32>
    %cst_72 = arith.constant dense<0xFF800000> : vector<2x8xf32>
    %151 = vector.multi_reduction <maximumf>, %150, %cst_72 [2] : vector<2x8x16xf32> to vector<2x8xf32>
    %152 = vector.shape_cast %151 : vector<2x8xf32> to vector<2x8x1xf32>
    %153 = vector.broadcast %152 : vector<2x8x1xf32> to vector<2x8x16xf32>
    %154 = arith.subf %150, %153 : vector<2x8x16xf32>
    %155 = math.exp %154 : vector<2x8x16xf32>
    %cst_73 = arith.constant dense<0.000000e+00> : vector<2x8xf32>
    %156 = vector.multi_reduction <add>, %155, %cst_73 [2] : vector<2x8x16xf32> to vector<2x8xf32>
    %157 = vector.shape_cast %156 : vector<2x8xf32> to vector<2x8x1xf32>
    %158 = tpu.reciprocal %157 {approx = true} : vector<2x8x1xf32> -> vector<2x8x1xf32>
    %159 = vector.broadcast %158 : vector<2x8x1xf32> to vector<2x8x16xf32>
    %160 = arith.mulf %155, %159 : vector<2x8x16xf32>
    %161 = vector.extract_strided_slice %145 {offsets = [0, 0, 0], sizes = [2, 16, 16], strides = [1, 1, 1]} : vector<2x16x64xf32> to vector<2x16x16xf32>
    "tpu.trace_start"() <{level = 10 : i32, message = "bqk,bkd->bqd"}> : () -> ()
    %cst_74 = arith.constant dense<0.000000e+00> : vector<2x8x16xf32>
    %162 = tpu.matmul %160, %161, %cst_74 {dimension_numbers = #tpu.dot_dimension_numbers<[2], [1], [1], [2], [0, 0, 0, 1, 1, 2], [0], [0]>} : vector<2x8x16xf32>, vector<2x16x16xf32>, vector<2x8x16xf32> -> vector<2x8x16xf32>
    "tpu.trace_stop"() : () -> ()
    %163 = vector.extract_strided_slice %141 {offsets = [0, 0, 16], sizes = [2, 8, 16], strides = [1, 1, 1]} : vector<2x8x64xf32> to vector<2x8x16xf32>
    %164 = vector.extract_strided_slice %143 {offsets = [0, 0, 16], sizes = [2, 16, 16], strides = [1, 1, 1]} : vector<2x16x64xf32> to vector<2x16x16xf32>
    "tpu.trace_start"() <{level = 10 : i32, message = "bqd,bkd->bqk"}> : () -> ()
    %cst_75 = arith.constant dense<0.000000e+00> : vector<2x8x16xf32>
    %165 = tpu.matmul %163, %164, %cst_75 {dimension_numbers = #tpu.dot_dimension_numbers<[2], [2], [1], [1], [0, 0, 0, 1, 1, 1], [0], [0]>} : vector<2x8x16xf32>, vector<2x16x16xf32>, vector<2x8x16xf32> -> vector<2x8x16xf32>
    "tpu.trace_stop"() : () -> ()
    %166 = arith.mulf %165, %4 : vector<2x8x16xf32>
    %167 = arith.addf %166, %5 : vector<2x8x16xf32>
    %cst_76 = arith.constant dense<0xFF800000> : vector<2x8xf32>
    %168 = vector.multi_reduction <maximumf>, %167, %cst_76 [2] : vector<2x8x16xf32> to vector<2x8xf32>
    %169 = vector.shape_cast %168 : vector<2x8xf32> to vector<2x8x1xf32>
    %170 = vector.broadcast %169 : vector<2x8x1xf32> to vector<2x8x16xf32>
    %171 = arith.subf %167, %170 : vector<2x8x16xf32>
    %172 = math.exp %171 : vector<2x8x16xf32>
    %cst_77 = arith.constant dense<0.000000e+00> : vector<2x8xf32>
    %173 = vector.multi_reduction <add>, %172, %cst_77 [2] : vector<2x8x16xf32> to vector<2x8xf32>
    %174 = vector.shape_cast %173 : vector<2x8xf32> to vector<2x8x1xf32>
    %175 = tpu.reciprocal %174 {approx = true} : vector<2x8x1xf32> -> vector<2x8x1xf32>
    %176 = vector.broadcast %175 : vector<2x8x1xf32> to vector<2x8x16xf32>
    %177 = arith.mulf %172, %176 : vector<2x8x16xf32>
    %178 = vector.extract_strided_slice %145 {offsets = [0, 0, 16], sizes = [2, 16, 16], strides = [1, 1, 1]} : vector<2x16x64xf32> to vector<2x16x16xf32>
    "tpu.trace_start"() <{level = 10 : i32, message = "bqk,bkd->bqd"}> : () -> ()
    %cst_78 = arith.constant dense<0.000000e+00> : vector<2x8x16xf32>
    %179 = tpu.matmul %177, %178, %cst_78 {dimension_numbers = #tpu.dot_dimension_numbers<[2], [1], [1], [2], [0, 0, 0, 1, 1, 2], [0], [0]>} : vector<2x8x16xf32>, vector<2x16x16xf32>, vector<2x8x16xf32> -> vector<2x8x16xf32>
    "tpu.trace_stop"() : () -> ()
    %180 = vector.extract_strided_slice %141 {offsets = [0, 0, 32], sizes = [2, 8, 16], strides = [1, 1, 1]} : vector<2x8x64xf32> to vector<2x8x16xf32>
    %181 = vector.extract_strided_slice %143 {offsets = [0, 0, 32], sizes = [2, 16, 16], strides = [1, 1, 1]} : vector<2x16x64xf32> to vector<2x16x16xf32>
    "tpu.trace_start"() <{level = 10 : i32, message = "bqd,bkd->bqk"}> : () -> ()
    %cst_79 = arith.constant dense<0.000000e+00> : vector<2x8x16xf32>
    %182 = tpu.matmul %180, %181, %cst_79 {dimension_numbers = #tpu.dot_dimension_numbers<[2], [2], [1], [1], [0, 0, 0, 1, 1, 1], [0], [0]>} : vector<2x8x16xf32>, vector<2x16x16xf32>, vector<2x8x16xf32> -> vector<2x8x16xf32>
    "tpu.trace_stop"() : () -> ()
    %183 = arith.mulf %182, %4 : vector<2x8x16xf32>
    %184 = arith.addf %183, %5 : vector<2x8x16xf32>
    %cst_80 = arith.constant dense<0xFF800000> : vector<2x8xf32>
    %185 = vector.multi_reduction <maximumf>, %184, %cst_80 [2] : vector<2x8x16xf32> to vector<2x8xf32>
    %186 = vector.shape_cast %185 : vector<2x8xf32> to vector<2x8x1xf32>
    %187 = vector.broadcast %186 : vector<2x8x1xf32> to vector<2x8x16xf32>
    %188 = arith.subf %184, %187 : vector<2x8x16xf32>
    %189 = math.exp %188 : vector<2x8x16xf32>
    %cst_81 = arith.constant dense<0.000000e+00> : vector<2x8xf32>
    %190 = vector.multi_reduction <add>, %189, %cst_81 [2] : vector<2x8x16xf32> to vector<2x8xf32>
    %191 = vector.shape_cast %190 : vector<2x8xf32> to vector<2x8x1xf32>
    %192 = tpu.reciprocal %191 {approx = true} : vector<2x8x1xf32> -> vector<2x8x1xf32>
    %193 = vector.broadcast %192 : vector<2x8x1xf32> to vector<2x8x16xf32>
    %194 = arith.mulf %189, %193 : vector<2x8x16xf32>
    %195 = vector.extract_strided_slice %145 {offsets = [0, 0, 32], sizes = [2, 16, 16], strides = [1, 1, 1]} : vector<2x16x64xf32> to vector<2x16x16xf32>
    "tpu.trace_start"() <{level = 10 : i32, message = "bqk,bkd->bqd"}> : () -> ()
    %cst_82 = arith.constant dense<0.000000e+00> : vector<2x8x16xf32>
    %196 = tpu.matmul %194, %195, %cst_82 {dimension_numbers = #tpu.dot_dimension_numbers<[2], [1], [1], [2], [0, 0, 0, 1, 1, 2], [0], [0]>} : vector<2x8x16xf32>, vector<2x16x16xf32>, vector<2x8x16xf32> -> vector<2x8x16xf32>
    "tpu.trace_stop"() : () -> ()
    %197 = vector.extract_strided_slice %141 {offsets = [0, 0, 48], sizes = [2, 8, 16], strides = [1, 1, 1]} : vector<2x8x64xf32> to vector<2x8x16xf32>
    %198 = vector.extract_strided_slice %143 {offsets = [0, 0, 48], sizes = [2, 16, 16], strides = [1, 1, 1]} : vector<2x16x64xf32> to vector<2x16x16xf32>
    "tpu.trace_start"() <{level = 10 : i32, message = "bqd,bkd->bqk"}> : () -> ()
    %cst_83 = arith.constant dense<0.000000e+00> : vector<2x8x16xf32>
    %199 = tpu.matmul %197, %198, %cst_83 {dimension_numbers = #tpu.dot_dimension_numbers<[2], [2], [1], [1], [0, 0, 0, 1, 1, 1], [0], [0]>} : vector<2x8x16xf32>, vector<2x16x16xf32>, vector<2x8x16xf32> -> vector<2x8x16xf32>
    "tpu.trace_stop"() : () -> ()
    %200 = arith.mulf %199, %4 : vector<2x8x16xf32>
    %201 = arith.addf %200, %5 : vector<2x8x16xf32>
    %cst_84 = arith.constant dense<0xFF800000> : vector<2x8xf32>
    %202 = vector.multi_reduction <maximumf>, %201, %cst_84 [2] : vector<2x8x16xf32> to vector<2x8xf32>
    %203 = vector.shape_cast %202 : vector<2x8xf32> to vector<2x8x1xf32>
    %204 = vector.broadcast %203 : vector<2x8x1xf32> to vector<2x8x16xf32>
    %205 = arith.subf %201, %204 : vector<2x8x16xf32>
    %206 = math.exp %205 : vector<2x8x16xf32>
    %cst_85 = arith.constant dense<0.000000e+00> : vector<2x8xf32>
    %207 = vector.multi_reduction <add>, %206, %cst_85 [2] : vector<2x8x16xf32> to vector<2x8xf32>
    %208 = vector.shape_cast %207 : vector<2x8xf32> to vector<2x8x1xf32>
    %209 = tpu.reciprocal %208 {approx = true} : vector<2x8x1xf32> -> vector<2x8x1xf32>
    %210 = vector.broadcast %209 : vector<2x8x1xf32> to vector<2x8x16xf32>
    %211 = arith.mulf %206, %210 : vector<2x8x16xf32>
    %212 = vector.extract_strided_slice %145 {offsets = [0, 0, 48], sizes = [2, 16, 16], strides = [1, 1, 1]} : vector<2x16x64xf32> to vector<2x16x16xf32>
    "tpu.trace_start"() <{level = 10 : i32, message = "bqk,bkd->bqd"}> : () -> ()
    %cst_86 = arith.constant dense<0.000000e+00> : vector<2x8x16xf32>
    %213 = tpu.matmul %211, %212, %cst_86 {dimension_numbers = #tpu.dot_dimension_numbers<[2], [1], [1], [2], [0, 0, 0, 1, 1, 2], [0], [0]>} : vector<2x8x16xf32>, vector<2x16x16xf32>, vector<2x8x16xf32> -> vector<2x8x16xf32>
    "tpu.trace_stop"() : () -> ()
    %214 = tpu.concatenate %162, %179, %196, %213 in 2 : vector<2x8x16xf32>, vector<2x8x16xf32>, vector<2x8x16xf32>, vector<2x8x16xf32> -> vector<2x8x64xf32>
    %215 = vector.shape_cast %214 : vector<2x8x64xf32> to vector<16x64xf32>
    %c0_87 = arith.constant 0 : index
    %c0_88 = arith.constant 0 : index
    %c0_89 = arith.constant 0 : index
    %216 = vector.load %arg14[%c0_87, %c0_88, %c0_89] : memref<2x64x64xf32, #tpu.memory_space<vmem>>, vector<1x64x64xf32>
    %217 = vector.shape_cast %216 : vector<1x64x64xf32> to vector<64x64xf32>
    %cst_90 = arith.constant dense<0.000000e+00> : vector<16x64xf32>
    %218 = tpu.matmul %215, %217, %cst_90 {dimension_numbers = #tpu.dot_dimension_numbers<[1], [0], [0], [1], [0, 0, 1, 1], [], []>} : vector<16x64xf32>, vector<64x64xf32>, vector<16x64xf32> -> vector<16x64xf32>
    %c0_91 = arith.constant 0 : index
    %c0_92 = arith.constant 0 : index
    %c0_93 = arith.constant 0 : index
    %219 = vector.load %arg15[%c0_91, %c0_92, %c0_93] : memref<2x1x64xf32, #tpu.memory_space<vmem>>, vector<1x1x64xf32>
    %220 = vector.shape_cast %219 : vector<1x1x64xf32> to vector<1x64xf32>
    %221 = vector.broadcast %220 : vector<1x64xf32> to vector<16x64xf32>
    %222 = arith.addf %218, %221 : vector<16x64xf32>
    %223 = arith.addf %222, %124 : vector<16x64xf32>
    %c0_94 = arith.constant 0 : index
    %c0_95 = arith.constant 0 : index
    %c0_96 = arith.constant 0 : index
    %224 = vector.load %arg22[%c0_94, %c0_95, %c0_96] : memref<2x1x64xf32, #tpu.memory_space<vmem>>, vector<1x1x64xf32>
    %225 = vector.shape_cast %224 : vector<1x1x64xf32> to vector<1x64xf32>
    %c0_97 = arith.constant 0 : index
    %c0_98 = arith.constant 0 : index
    %c0_99 = arith.constant 0 : index
    %226 = vector.load %arg23[%c0_97, %c0_98, %c0_99] : memref<2x1x64xf32, #tpu.memory_space<vmem>>, vector<1x1x64xf32>
    %227 = vector.shape_cast %226 : vector<1x1x64xf32> to vector<1x64xf32>
    %cst_100 = arith.constant dense<0.000000e+00> : vector<16xf32>
    %228 = vector.multi_reduction <add>, %223, %cst_100 [1] : vector<16x64xf32> to vector<16xf32>
    %229 = vector.shape_cast %228 : vector<16xf32> to vector<16x1xf32>
    %cst_101 = arith.constant 6.400000e+01 : f32
    %230 = vector.broadcast %cst_101 : f32 to vector<16x1xf32>
    %231 = arith.divf %229, %230 : vector<16x1xf32>
    %232 = vector.broadcast %231 : vector<16x1xf32> to vector<16x64xf32>
    %233 = arith.subf %223, %232 : vector<16x64xf32>
    %234 = arith.mulf %233, %233 : vector<16x64xf32>
    %cst_102 = arith.constant dense<0.000000e+00> : vector<16xf32>
    %235 = vector.multi_reduction <add>, %234, %cst_102 [1] : vector<16x64xf32> to vector<16xf32>
    %236 = vector.shape_cast %235 : vector<16xf32> to vector<16x1xf32>
    %cst_103 = arith.constant 6.400000e+01 : f32
    %237 = vector.broadcast %cst_103 : f32 to vector<16x1xf32>
    %238 = arith.divf %236, %237 : vector<16x1xf32>
    %239 = vector.broadcast %231 : vector<16x1xf32> to vector<16x64xf32>
    %240 = arith.subf %223, %239 : vector<16x64xf32>
    %cst_104 = arith.constant 9.99999996E-13 : f32
    %241 = vector.broadcast %cst_104 : f32 to vector<16x1xf32>
    %242 = arith.addf %238, %241 : vector<16x1xf32>
    %243 = math.sqrt %242 : vector<16x1xf32>
    %244 = vector.broadcast %243 : vector<16x1xf32> to vector<16x64xf32>
    %245 = arith.divf %240, %244 : vector<16x64xf32>
    %246 = vector.broadcast %225 : vector<1x64xf32> to vector<16x64xf32>
    %247 = arith.mulf %246, %245 : vector<16x64xf32>
    %248 = vector.broadcast %227 : vector<1x64xf32> to vector<16x64xf32>
    %249 = arith.addf %247, %248 : vector<16x64xf32>
    %c0_105 = arith.constant 0 : index
    %c0_106 = arith.constant 0 : index
    %c0_107 = arith.constant 0 : index
    %250 = vector.load %arg16[%c0_105, %c0_106, %c0_107] : memref<2x64x128xf32, #tpu.memory_space<vmem>>, vector<1x64x128xf32>
    %251 = vector.shape_cast %250 : vector<1x64x128xf32> to vector<64x128xf32>
    %cst_108 = arith.constant dense<0.000000e+00> : vector<16x128xf32>
    %252 = tpu.matmul %249, %251, %cst_108 {dimension_numbers = #tpu.dot_dimension_numbers<[1], [0], [0], [1], [0, 0, 1, 1], [], []>} : vector<16x64xf32>, vector<64x128xf32>, vector<16x128xf32> -> vector<16x128xf32>
    %c0_109 = arith.constant 0 : index
    %c0_110 = arith.constant 0 : index
    %c0_111 = arith.constant 0 : index
    %253 = vector.load %arg17[%c0_109, %c0_110, %c0_111] : memref<2x1x128xf32, #tpu.memory_space<vmem>>, vector<1x1x128xf32>
    %254 = vector.shape_cast %253 : vector<1x1x128xf32> to vector<1x128xf32>
    %255 = vector.broadcast %254 : vector<1x128xf32> to vector<16x128xf32>
    %256 = arith.addf %252, %255 : vector<16x128xf32>
    %cst_112 = arith.constant 0.000000e+00 : f32
    %257 = vector.broadcast %cst_112 : f32 to vector<16x128xf32>
    %258 = arith.maximumf %256, %257 : vector<16x128xf32>
    %c0_113 = arith.constant 0 : index
    %c0_114 = arith.constant 0 : index
    %c0_115 = arith.constant 0 : index
    %259 = vector.load %arg18[%c0_113, %c0_114, %c0_115] : memref<2x128x64xf32, #tpu.memory_space<vmem>>, vector<1x128x64xf32>
    %260 = vector.shape_cast %259 : vector<1x128x64xf32> to vector<128x64xf32>
    %cst_116 = arith.constant dense<0.000000e+00> : vector<16x64xf32>
    %261 = tpu.matmul %258, %260, %cst_116 {dimension_numbers = #tpu.dot_dimension_numbers<[1], [0], [0], [1], [0, 0, 1, 1], [], []>} : vector<16x128xf32>, vector<128x64xf32>, vector<16x64xf32> -> vector<16x64xf32>
    %c0_117 = arith.constant 0 : index
    %c0_118 = arith.constant 0 : index
    %c0_119 = arith.constant 0 : index
    %262 = vector.load %arg19[%c0_117, %c0_118, %c0_119] : memref<2x1x64xf32, #tpu.memory_space<vmem>>, vector<1x1x64xf32>
    %263 = vector.shape_cast %262 : vector<1x1x64xf32> to vector<1x64xf32>
    %264 = vector.broadcast %263 : vector<1x64xf32> to vector<16x64xf32>
    %265 = arith.addf %261, %264 : vector<16x64xf32>
    %266 = arith.addf %265, %249 : vector<16x64xf32>
    %c0_120 = arith.constant 0 : index
    %c0_121 = arith.constant 0 : index
    %c0_122 = arith.constant 0 : index
    %267 = vector.load %arg24[%c0_120, %c0_121, %c0_122] : memref<2x1x64xf32, #tpu.memory_space<vmem>>, vector<1x1x64xf32>
    %268 = vector.shape_cast %267 : vector<1x1x64xf32> to vector<1x64xf32>
    %c0_123 = arith.constant 0 : index
    %c0_124 = arith.constant 0 : index
    %c0_125 = arith.constant 0 : index
    %269 = vector.load %arg25[%c0_123, %c0_124, %c0_125] : memref<2x1x64xf32, #tpu.memory_space<vmem>>, vector<1x1x64xf32>
    %270 = vector.shape_cast %269 : vector<1x1x64xf32> to vector<1x64xf32>
    %cst_126 = arith.constant dense<0.000000e+00> : vector<16xf32>
    %271 = vector.multi_reduction <add>, %266, %cst_126 [1] : vector<16x64xf32> to vector<16xf32>
    %272 = vector.shape_cast %271 : vector<16xf32> to vector<16x1xf32>
    %cst_127 = arith.constant 6.400000e+01 : f32
    %273 = vector.broadcast %cst_127 : f32 to vector<16x1xf32>
    %274 = arith.divf %272, %273 : vector<16x1xf32>
    %275 = vector.broadcast %274 : vector<16x1xf32> to vector<16x64xf32>
    %276 = arith.subf %266, %275 : vector<16x64xf32>
    %277 = arith.mulf %276, %276 : vector<16x64xf32>
    %cst_128 = arith.constant dense<0.000000e+00> : vector<16xf32>
    %278 = vector.multi_reduction <add>, %277, %cst_128 [1] : vector<16x64xf32> to vector<16xf32>
    %279 = vector.shape_cast %278 : vector<16xf32> to vector<16x1xf32>
    %cst_129 = arith.constant 6.400000e+01 : f32
    %280 = vector.broadcast %cst_129 : f32 to vector<16x1xf32>
    %281 = arith.divf %279, %280 : vector<16x1xf32>
    %282 = vector.broadcast %274 : vector<16x1xf32> to vector<16x64xf32>
    %283 = arith.subf %266, %282 : vector<16x64xf32>
    %cst_130 = arith.constant 9.99999996E-13 : f32
    %284 = vector.broadcast %cst_130 : f32 to vector<16x1xf32>
    %285 = arith.addf %281, %284 : vector<16x1xf32>
    %286 = math.sqrt %285 : vector<16x1xf32>
    %287 = vector.broadcast %286 : vector<16x1xf32> to vector<16x64xf32>
    %288 = arith.divf %283, %287 : vector<16x64xf32>
    %289 = vector.broadcast %268 : vector<1x64xf32> to vector<16x64xf32>
    %290 = arith.mulf %289, %288 : vector<16x64xf32>
    %291 = vector.broadcast %270 : vector<1x64xf32> to vector<16x64xf32>
    %292 = arith.addf %290, %291 : vector<16x64xf32>
    %c1 = arith.constant 1 : index
    %c0_131 = arith.constant 0 : index
    %c0_132 = arith.constant 0 : index
    %293 = vector.load %arg6[%c1, %c0_131, %c0_132] : memref<2x64x192xf32, #tpu.memory_space<vmem>>, vector<1x64x192xf32>
    %294 = vector.shape_cast %293 : vector<1x64x192xf32> to vector<64x192xf32>
    %cst_133 = arith.constant dense<0.000000e+00> : vector<16x192xf32>
    %295 = tpu.matmul %292, %294, %cst_133 {dimension_numbers = #tpu.dot_dimension_numbers<[1], [0], [0], [1], [0, 0, 1, 1], [], []>} : vector<16x64xf32>, vector<64x192xf32>, vector<16x192xf32> -> vector<16x192xf32>
    %c1_134 = arith.constant 1 : index
    %c0_135 = arith.constant 0 : index
    %c0_136 = arith.constant 0 : index
    %296 = vector.load %arg7[%c1_134, %c0_135, %c0_136] : memref<2x1x192xf32, #tpu.memory_space<vmem>>, vector<1x1x192xf32>
    %297 = vector.shape_cast %296 : vector<1x1x192xf32> to vector<1x192xf32>
    %298 = vector.broadcast %297 : vector<1x192xf32> to vector<16x192xf32>
    %299 = arith.addf %295, %298 : vector<16x192xf32>
    %300 = vector.extract_strided_slice %299 {offsets = [0, 0], sizes = [16, 64], strides = [1, 1]} : vector<16x192xf32> to vector<16x64xf32>
    %cst_137 = arith.constant 2.500000e-01 : f32
    %301 = vector.broadcast %cst_137 : f32 to vector<16x64xf32>
    %302 = arith.mulf %300, %301 : vector<16x64xf32>
    %303 = vector.shape_cast %302 : vector<16x64xf32> to vector<2x8x64xf32>
    %304 = vector.extract_strided_slice %299 {offsets = [0, 64], sizes = [16, 64], strides = [1, 1]} : vector<16x192xf32> to vector<16x64xf32>
    %305 = vector.shape_cast %304 : vector<16x64xf32> to vector<2x8x64xf32>
    %306 = vector.extract_strided_slice %299 {offsets = [0, 128], sizes = [16, 64], strides = [1, 1]} : vector<16x192xf32> to vector<16x64xf32>
    %307 = vector.shape_cast %306 : vector<16x64xf32> to vector<2x8x64xf32>
    %308 = vector.extract_strided_slice %303 {offsets = [0, 0, 0], sizes = [2, 8, 16], strides = [1, 1, 1]} : vector<2x8x64xf32> to vector<2x8x16xf32>
    %309 = vector.extract_strided_slice %305 {offsets = [0, 0, 0], sizes = [2, 8, 16], strides = [1, 1, 1]} : vector<2x8x64xf32> to vector<2x8x16xf32>
    "tpu.trace_start"() <{level = 10 : i32, message = "bqd,bkd->bqk"}> : () -> ()
    %cst_138 = arith.constant dense<0.000000e+00> : vector<2x8x8xf32>
    %310 = tpu.matmul %308, %309, %cst_138 {dimension_numbers = #tpu.dot_dimension_numbers<[2], [2], [1], [1], [0, 0, 0, 1, 1, 1], [0], [0]>} : vector<2x8x16xf32>, vector<2x8x16xf32>, vector<2x8x8xf32> -> vector<2x8x8xf32>
    "tpu.trace_stop"() : () -> ()
    %311 = arith.mulf %310, %2 : vector<2x8x8xf32>
    %312 = arith.addf %311, %3 : vector<2x8x8xf32>
    %cst_139 = arith.constant dense<0xFF800000> : vector<2x8xf32>
    %313 = vector.multi_reduction <maximumf>, %312, %cst_139 [2] : vector<2x8x8xf32> to vector<2x8xf32>
    %314 = vector.shape_cast %313 : vector<2x8xf32> to vector<2x8x1xf32>
    %315 = vector.broadcast %314 : vector<2x8x1xf32> to vector<2x8x8xf32>
    %316 = arith.subf %312, %315 : vector<2x8x8xf32>
    %317 = math.exp %316 : vector<2x8x8xf32>
    %cst_140 = arith.constant dense<0.000000e+00> : vector<2x8xf32>
    %318 = vector.multi_reduction <add>, %317, %cst_140 [2] : vector<2x8x8xf32> to vector<2x8xf32>
    %319 = vector.shape_cast %318 : vector<2x8xf32> to vector<2x8x1xf32>
    %320 = tpu.reciprocal %319 {approx = true} : vector<2x8x1xf32> -> vector<2x8x1xf32>
    %321 = vector.broadcast %320 : vector<2x8x1xf32> to vector<2x8x8xf32>
    %322 = arith.mulf %317, %321 : vector<2x8x8xf32>
    %323 = vector.extract_strided_slice %307 {offsets = [0, 0, 0], sizes = [2, 8, 16], strides = [1, 1, 1]} : vector<2x8x64xf32> to vector<2x8x16xf32>
    "tpu.trace_start"() <{level = 10 : i32, message = "bqk,bkd->bqd"}> : () -> ()
    %cst_141 = arith.constant dense<0.000000e+00> : vector<2x8x16xf32>
    %324 = tpu.matmul %322, %323, %cst_141 {dimension_numbers = #tpu.dot_dimension_numbers<[2], [1], [1], [2], [0, 0, 0, 1, 1, 2], [0], [0]>} : vector<2x8x8xf32>, vector<2x8x16xf32>, vector<2x8x16xf32> -> vector<2x8x16xf32>
    "tpu.trace_stop"() : () -> ()
    %325 = vector.extract_strided_slice %303 {offsets = [0, 0, 16], sizes = [2, 8, 16], strides = [1, 1, 1]} : vector<2x8x64xf32> to vector<2x8x16xf32>
    %326 = vector.extract_strided_slice %305 {offsets = [0, 0, 16], sizes = [2, 8, 16], strides = [1, 1, 1]} : vector<2x8x64xf32> to vector<2x8x16xf32>
    "tpu.trace_start"() <{level = 10 : i32, message = "bqd,bkd->bqk"}> : () -> ()
    %cst_142 = arith.constant dense<0.000000e+00> : vector<2x8x8xf32>
    %327 = tpu.matmul %325, %326, %cst_142 {dimension_numbers = #tpu.dot_dimension_numbers<[2], [2], [1], [1], [0, 0, 0, 1, 1, 1], [0], [0]>} : vector<2x8x16xf32>, vector<2x8x16xf32>, vector<2x8x8xf32> -> vector<2x8x8xf32>
    "tpu.trace_stop"() : () -> ()
    %328 = arith.mulf %327, %2 : vector<2x8x8xf32>
    %329 = arith.addf %328, %3 : vector<2x8x8xf32>
    %cst_143 = arith.constant dense<0xFF800000> : vector<2x8xf32>
    %330 = vector.multi_reduction <maximumf>, %329, %cst_143 [2] : vector<2x8x8xf32> to vector<2x8xf32>
    %331 = vector.shape_cast %330 : vector<2x8xf32> to vector<2x8x1xf32>
    %332 = vector.broadcast %331 : vector<2x8x1xf32> to vector<2x8x8xf32>
    %333 = arith.subf %329, %332 : vector<2x8x8xf32>
    %334 = math.exp %333 : vector<2x8x8xf32>
    %cst_144 = arith.constant dense<0.000000e+00> : vector<2x8xf32>
    %335 = vector.multi_reduction <add>, %334, %cst_144 [2] : vector<2x8x8xf32> to vector<2x8xf32>
    %336 = vector.shape_cast %335 : vector<2x8xf32> to vector<2x8x1xf32>
    %337 = tpu.reciprocal %336 {approx = true} : vector<2x8x1xf32> -> vector<2x8x1xf32>
    %338 = vector.broadcast %337 : vector<2x8x1xf32> to vector<2x8x8xf32>
    %339 = arith.mulf %334, %338 : vector<2x8x8xf32>
    %340 = vector.extract_strided_slice %307 {offsets = [0, 0, 16], sizes = [2, 8, 16], strides = [1, 1, 1]} : vector<2x8x64xf32> to vector<2x8x16xf32>
    "tpu.trace_start"() <{level = 10 : i32, message = "bqk,bkd->bqd"}> : () -> ()
    %cst_145 = arith.constant dense<0.000000e+00> : vector<2x8x16xf32>
    %341 = tpu.matmul %339, %340, %cst_145 {dimension_numbers = #tpu.dot_dimension_numbers<[2], [1], [1], [2], [0, 0, 0, 1, 1, 2], [0], [0]>} : vector<2x8x8xf32>, vector<2x8x16xf32>, vector<2x8x16xf32> -> vector<2x8x16xf32>
    "tpu.trace_stop"() : () -> ()
    %342 = vector.extract_strided_slice %303 {offsets = [0, 0, 32], sizes = [2, 8, 16], strides = [1, 1, 1]} : vector<2x8x64xf32> to vector<2x8x16xf32>
    %343 = vector.extract_strided_slice %305 {offsets = [0, 0, 32], sizes = [2, 8, 16], strides = [1, 1, 1]} : vector<2x8x64xf32> to vector<2x8x16xf32>
    "tpu.trace_start"() <{level = 10 : i32, message = "bqd,bkd->bqk"}> : () -> ()
    %cst_146 = arith.constant dense<0.000000e+00> : vector<2x8x8xf32>
    %344 = tpu.matmul %342, %343, %cst_146 {dimension_numbers = #tpu.dot_dimension_numbers<[2], [2], [1], [1], [0, 0, 0, 1, 1, 1], [0], [0]>} : vector<2x8x16xf32>, vector<2x8x16xf32>, vector<2x8x8xf32> -> vector<2x8x8xf32>
    "tpu.trace_stop"() : () -> ()
    %345 = arith.mulf %344, %2 : vector<2x8x8xf32>
    %346 = arith.addf %345, %3 : vector<2x8x8xf32>
    %cst_147 = arith.constant dense<0xFF800000> : vector<2x8xf32>
    %347 = vector.multi_reduction <maximumf>, %346, %cst_147 [2] : vector<2x8x8xf32> to vector<2x8xf32>
    %348 = vector.shape_cast %347 : vector<2x8xf32> to vector<2x8x1xf32>
    %349 = vector.broadcast %348 : vector<2x8x1xf32> to vector<2x8x8xf32>
    %350 = arith.subf %346, %349 : vector<2x8x8xf32>
    %351 = math.exp %350 : vector<2x8x8xf32>
    %cst_148 = arith.constant dense<0.000000e+00> : vector<2x8xf32>
    %352 = vector.multi_reduction <add>, %351, %cst_148 [2] : vector<2x8x8xf32> to vector<2x8xf32>
    %353 = vector.shape_cast %352 : vector<2x8xf32> to vector<2x8x1xf32>
    %354 = tpu.reciprocal %353 {approx = true} : vector<2x8x1xf32> -> vector<2x8x1xf32>
    %355 = vector.broadcast %354 : vector<2x8x1xf32> to vector<2x8x8xf32>
    %356 = arith.mulf %351, %355 : vector<2x8x8xf32>
    %357 = vector.extract_strided_slice %307 {offsets = [0, 0, 32], sizes = [2, 8, 16], strides = [1, 1, 1]} : vector<2x8x64xf32> to vector<2x8x16xf32>
    "tpu.trace_start"() <{level = 10 : i32, message = "bqk,bkd->bqd"}> : () -> ()
    %cst_149 = arith.constant dense<0.000000e+00> : vector<2x8x16xf32>
    %358 = tpu.matmul %356, %357, %cst_149 {dimension_numbers = #tpu.dot_dimension_numbers<[2], [1], [1], [2], [0, 0, 0, 1, 1, 2], [0], [0]>} : vector<2x8x8xf32>, vector<2x8x16xf32>, vector<2x8x16xf32> -> vector<2x8x16xf32>
    "tpu.trace_stop"() : () -> ()
    %359 = vector.extract_strided_slice %303 {offsets = [0, 0, 48], sizes = [2, 8, 16], strides = [1, 1, 1]} : vector<2x8x64xf32> to vector<2x8x16xf32>
    %360 = vector.extract_strided_slice %305 {offsets = [0, 0, 48], sizes = [2, 8, 16], strides = [1, 1, 1]} : vector<2x8x64xf32> to vector<2x8x16xf32>
    "tpu.trace_start"() <{level = 10 : i32, message = "bqd,bkd->bqk"}> : () -> ()
    %cst_150 = arith.constant dense<0.000000e+00> : vector<2x8x8xf32>
    %361 = tpu.matmul %359, %360, %cst_150 {dimension_numbers = #tpu.dot_dimension_numbers<[2], [2], [1], [1], [0, 0, 0, 1, 1, 1], [0], [0]>} : vector<2x8x16xf32>, vector<2x8x16xf32>, vector<2x8x8xf32> -> vector<2x8x8xf32>
    "tpu.trace_stop"() : () -> ()
    %362 = arith.mulf %361, %2 : vector<2x8x8xf32>
    %363 = arith.addf %362, %3 : vector<2x8x8xf32>
    %cst_151 = arith.constant dense<0xFF800000> : vector<2x8xf32>
    %364 = vector.multi_reduction <maximumf>, %363, %cst_151 [2] : vector<2x8x8xf32> to vector<2x8xf32>
    %365 = vector.shape_cast %364 : vector<2x8xf32> to vector<2x8x1xf32>
    %366 = vector.broadcast %365 : vector<2x8x1xf32> to vector<2x8x8xf32>
    %367 = arith.subf %363, %366 : vector<2x8x8xf32>
    %368 = math.exp %367 : vector<2x8x8xf32>
    %cst_152 = arith.constant dense<0.000000e+00> : vector<2x8xf32>
    %369 = vector.multi_reduction <add>, %368, %cst_152 [2] : vector<2x8x8xf32> to vector<2x8xf32>
    %370 = vector.shape_cast %369 : vector<2x8xf32> to vector<2x8x1xf32>
    %371 = tpu.reciprocal %370 {approx = true} : vector<2x8x1xf32> -> vector<2x8x1xf32>
    %372 = vector.broadcast %371 : vector<2x8x1xf32> to vector<2x8x8xf32>
    %373 = arith.mulf %368, %372 : vector<2x8x8xf32>
    %374 = vector.extract_strided_slice %307 {offsets = [0, 0, 48], sizes = [2, 8, 16], strides = [1, 1, 1]} : vector<2x8x64xf32> to vector<2x8x16xf32>
    "tpu.trace_start"() <{level = 10 : i32, message = "bqk,bkd->bqd"}> : () -> ()
    %cst_153 = arith.constant dense<0.000000e+00> : vector<2x8x16xf32>
    %375 = tpu.matmul %373, %374, %cst_153 {dimension_numbers = #tpu.dot_dimension_numbers<[2], [1], [1], [2], [0, 0, 0, 1, 1, 2], [0], [0]>} : vector<2x8x8xf32>, vector<2x8x16xf32>, vector<2x8x16xf32> -> vector<2x8x16xf32>
    "tpu.trace_stop"() : () -> ()
    %376 = tpu.concatenate %324, %341, %358, %375 in 2 : vector<2x8x16xf32>, vector<2x8x16xf32>, vector<2x8x16xf32>, vector<2x8x16xf32> -> vector<2x8x64xf32>
    %377 = vector.shape_cast %376 : vector<2x8x64xf32> to vector<16x64xf32>
    %c1_154 = arith.constant 1 : index
    %c0_155 = arith.constant 0 : index
    %c0_156 = arith.constant 0 : index
    %378 = vector.load %arg8[%c1_154, %c0_155, %c0_156] : memref<2x64x64xf32, #tpu.memory_space<vmem>>, vector<1x64x64xf32>
    %379 = vector.shape_cast %378 : vector<1x64x64xf32> to vector<64x64xf32>
    %cst_157 = arith.constant dense<0.000000e+00> : vector<16x64xf32>
    %380 = tpu.matmul %377, %379, %cst_157 {dimension_numbers = #tpu.dot_dimension_numbers<[1], [0], [0], [1], [0, 0, 1, 1], [], []>} : vector<16x64xf32>, vector<64x64xf32>, vector<16x64xf32> -> vector<16x64xf32>
    %c1_158 = arith.constant 1 : index
    %c0_159 = arith.constant 0 : index
    %c0_160 = arith.constant 0 : index
    %381 = vector.load %arg9[%c1_158, %c0_159, %c0_160] : memref<2x1x64xf32, #tpu.memory_space<vmem>>, vector<1x1x64xf32>
    %382 = vector.shape_cast %381 : vector<1x1x64xf32> to vector<1x64xf32>
    %383 = vector.broadcast %382 : vector<1x64xf32> to vector<16x64xf32>
    %384 = arith.addf %380, %383 : vector<16x64xf32>
    %385 = arith.addf %384, %292 : vector<16x64xf32>
    %c1_161 = arith.constant 1 : index
    %c0_162 = arith.constant 0 : index
    %c0_163 = arith.constant 0 : index
    %386 = vector.load %arg20[%c1_161, %c0_162, %c0_163] : memref<2x1x64xf32, #tpu.memory_space<vmem>>, vector<1x1x64xf32>
    %387 = vector.shape_cast %386 : vector<1x1x64xf32> to vector<1x64xf32>
    %c1_164 = arith.constant 1 : index
    %c0_165 = arith.constant 0 : index
    %c0_166 = arith.constant 0 : index
    %388 = vector.load %arg21[%c1_164, %c0_165, %c0_166] : memref<2x1x64xf32, #tpu.memory_space<vmem>>, vector<1x1x64xf32>
    %389 = vector.shape_cast %388 : vector<1x1x64xf32> to vector<1x64xf32>
    %cst_167 = arith.constant dense<0.000000e+00> : vector<16xf32>
    %390 = vector.multi_reduction <add>, %385, %cst_167 [1] : vector<16x64xf32> to vector<16xf32>
    %391 = vector.shape_cast %390 : vector<16xf32> to vector<16x1xf32>
    %cst_168 = arith.constant 6.400000e+01 : f32
    %392 = vector.broadcast %cst_168 : f32 to vector<16x1xf32>
    %393 = arith.divf %391, %392 : vector<16x1xf32>
    %394 = vector.broadcast %393 : vector<16x1xf32> to vector<16x64xf32>
    %395 = arith.subf %385, %394 : vector<16x64xf32>
    %396 = arith.mulf %395, %395 : vector<16x64xf32>
    %cst_169 = arith.constant dense<0.000000e+00> : vector<16xf32>
    %397 = vector.multi_reduction <add>, %396, %cst_169 [1] : vector<16x64xf32> to vector<16xf32>
    %398 = vector.shape_cast %397 : vector<16xf32> to vector<16x1xf32>
    %cst_170 = arith.constant 6.400000e+01 : f32
    %399 = vector.broadcast %cst_170 : f32 to vector<16x1xf32>
    %400 = arith.divf %398, %399 : vector<16x1xf32>
    %401 = vector.broadcast %393 : vector<16x1xf32> to vector<16x64xf32>
    %402 = arith.subf %385, %401 : vector<16x64xf32>
    %cst_171 = arith.constant 9.99999996E-13 : f32
    %403 = vector.broadcast %cst_171 : f32 to vector<16x1xf32>
    %404 = arith.addf %400, %403 : vector<16x1xf32>
    %405 = math.sqrt %404 : vector<16x1xf32>
    %406 = vector.broadcast %405 : vector<16x1xf32> to vector<16x64xf32>
    %407 = arith.divf %402, %406 : vector<16x64xf32>
    %408 = vector.broadcast %387 : vector<1x64xf32> to vector<16x64xf32>
    %409 = arith.mulf %408, %407 : vector<16x64xf32>
    %410 = vector.broadcast %389 : vector<1x64xf32> to vector<16x64xf32>
    %411 = arith.addf %409, %410 : vector<16x64xf32>
    %c1_172 = arith.constant 1 : index
    %c0_173 = arith.constant 0 : index
    %c0_174 = arith.constant 0 : index
    %412 = vector.load %arg10[%c1_172, %c0_173, %c0_174] : memref<2x64x64xf32, #tpu.memory_space<vmem>>, vector<1x64x64xf32>
    %413 = vector.shape_cast %412 : vector<1x64x64xf32> to vector<64x64xf32>
    %cst_175 = arith.constant dense<0.000000e+00> : vector<16x64xf32>
    %414 = tpu.matmul %411, %413, %cst_175 {dimension_numbers = #tpu.dot_dimension_numbers<[1], [0], [0], [1], [0, 0, 1, 1], [], []>} : vector<16x64xf32>, vector<64x64xf32>, vector<16x64xf32> -> vector<16x64xf32>
    %c1_176 = arith.constant 1 : index
    %c0_177 = arith.constant 0 : index
    %c0_178 = arith.constant 0 : index
    %415 = vector.load %arg11[%c1_176, %c0_177, %c0_178] : memref<2x1x64xf32, #tpu.memory_space<vmem>>, vector<1x1x64xf32>
    %416 = vector.shape_cast %415 : vector<1x1x64xf32> to vector<1x64xf32>
    %417 = vector.broadcast %416 : vector<1x64xf32> to vector<16x64xf32>
    %418 = arith.addf %414, %417 : vector<16x64xf32>
    %c1_179 = arith.constant 1 : index
    %c0_180 = arith.constant 0 : index
    %c0_181 = arith.constant 0 : index
    %419 = vector.load %arg12[%c1_179, %c0_180, %c0_181] : memref<2x64x128xf32, #tpu.memory_space<vmem>>, vector<1x64x128xf32>
    %420 = vector.shape_cast %419 : vector<1x64x128xf32> to vector<64x128xf32>
    %cst_182 = arith.constant dense<0.000000e+00> : vector<32x128xf32>
    %421 = tpu.matmul %1, %420, %cst_182 {dimension_numbers = #tpu.dot_dimension_numbers<[1], [0], [0], [1], [0, 0, 1, 1], [], []>} : vector<32x64xf32>, vector<64x128xf32>, vector<32x128xf32> -> vector<32x128xf32>
    %c1_183 = arith.constant 1 : index
    %c0_184 = arith.constant 0 : index
    %c0_185 = arith.constant 0 : index
    %422 = vector.load %arg13[%c1_183, %c0_184, %c0_185] : memref<2x1x128xf32, #tpu.memory_space<vmem>>, vector<1x1x128xf32>
    %423 = vector.shape_cast %422 : vector<1x1x128xf32> to vector<1x128xf32>
    %424 = vector.broadcast %423 : vector<1x128xf32> to vector<32x128xf32>
    %425 = arith.addf %421, %424 : vector<32x128xf32>
    %cst_186 = arith.constant 2.500000e-01 : f32
    %426 = vector.broadcast %cst_186 : f32 to vector<16x64xf32>
    %427 = arith.mulf %418, %426 : vector<16x64xf32>
    %428 = vector.shape_cast %427 : vector<16x64xf32> to vector<2x8x64xf32>
    %429 = vector.extract_strided_slice %425 {offsets = [0, 0], sizes = [32, 64], strides = [1, 1]} : vector<32x128xf32> to vector<32x64xf32>
    %430 = vector.shape_cast %429 : vector<32x64xf32> to vector<2x16x64xf32>
    %431 = vector.extract_strided_slice %425 {offsets = [0, 64], sizes = [32, 64], strides = [1, 1]} : vector<32x128xf32> to vector<32x64xf32>
    %432 = vector.shape_cast %431 : vector<32x64xf32> to vector<2x16x64xf32>
    %433 = vector.extract_strided_slice %428 {offsets = [0, 0, 0], sizes = [2, 8, 16], strides = [1, 1, 1]} : vector<2x8x64xf32> to vector<2x8x16xf32>
    %434 = vector.extract_strided_slice %430 {offsets = [0, 0, 0], sizes = [2, 16, 16], strides = [1, 1, 1]} : vector<2x16x64xf32> to vector<2x16x16xf32>
    "tpu.trace_start"() <{level = 10 : i32, message = "bqd,bkd->bqk"}> : () -> ()
    %cst_187 = arith.constant dense<0.000000e+00> : vector<2x8x16xf32>
    %435 = tpu.matmul %433, %434, %cst_187 {dimension_numbers = #tpu.dot_dimension_numbers<[2], [2], [1], [1], [0, 0, 0, 1, 1, 1], [0], [0]>} : vector<2x8x16xf32>, vector<2x16x16xf32>, vector<2x8x16xf32> -> vector<2x8x16xf32>
    "tpu.trace_stop"() : () -> ()
    %436 = arith.mulf %435, %4 : vector<2x8x16xf32>
    %437 = arith.addf %436, %5 : vector<2x8x16xf32>
    %cst_188 = arith.constant dense<0xFF800000> : vector<2x8xf32>
    %438 = vector.multi_reduction <maximumf>, %437, %cst_188 [2] : vector<2x8x16xf32> to vector<2x8xf32>
    %439 = vector.shape_cast %438 : vector<2x8xf32> to vector<2x8x1xf32>
    %440 = vector.broadcast %439 : vector<2x8x1xf32> to vector<2x8x16xf32>
    %441 = arith.subf %437, %440 : vector<2x8x16xf32>
    %442 = math.exp %441 : vector<2x8x16xf32>
    %cst_189 = arith.constant dense<0.000000e+00> : vector<2x8xf32>
    %443 = vector.multi_reduction <add>, %442, %cst_189 [2] : vector<2x8x16xf32> to vector<2x8xf32>
    %444 = vector.shape_cast %443 : vector<2x8xf32> to vector<2x8x1xf32>
    %445 = tpu.reciprocal %444 {approx = true} : vector<2x8x1xf32> -> vector<2x8x1xf32>
    %446 = vector.broadcast %445 : vector<2x8x1xf32> to vector<2x8x16xf32>
    %447 = arith.mulf %442, %446 : vector<2x8x16xf32>
    %448 = vector.extract_strided_slice %432 {offsets = [0, 0, 0], sizes = [2, 16, 16], strides = [1, 1, 1]} : vector<2x16x64xf32> to vector<2x16x16xf32>
    "tpu.trace_start"() <{level = 10 : i32, message = "bqk,bkd->bqd"}> : () -> ()
    %cst_190 = arith.constant dense<0.000000e+00> : vector<2x8x16xf32>
    %449 = tpu.matmul %447, %448, %cst_190 {dimension_numbers = #tpu.dot_dimension_numbers<[2], [1], [1], [2], [0, 0, 0, 1, 1, 2], [0], [0]>} : vector<2x8x16xf32>, vector<2x16x16xf32>, vector<2x8x16xf32> -> vector<2x8x16xf32>
    "tpu.trace_stop"() : () -> ()
    %450 = vector.extract_strided_slice %428 {offsets = [0, 0, 16], sizes = [2, 8, 16], strides = [1, 1, 1]} : vector<2x8x64xf32> to vector<2x8x16xf32>
    %451 = vector.extract_strided_slice %430 {offsets = [0, 0, 16], sizes = [2, 16, 16], strides = [1, 1, 1]} : vector<2x16x64xf32> to vector<2x16x16xf32>
    "tpu.trace_start"() <{level = 10 : i32, message = "bqd,bkd->bqk"}> : () -> ()
    %cst_191 = arith.constant dense<0.000000e+00> : vector<2x8x16xf32>
    %452 = tpu.matmul %450, %451, %cst_191 {dimension_numbers = #tpu.dot_dimension_numbers<[2], [2], [1], [1], [0, 0, 0, 1, 1, 1], [0], [0]>} : vector<2x8x16xf32>, vector<2x16x16xf32>, vector<2x8x16xf32> -> vector<2x8x16xf32>
    "tpu.trace_stop"() : () -> ()
    %453 = arith.mulf %452, %4 : vector<2x8x16xf32>
    %454 = arith.addf %453, %5 : vector<2x8x16xf32>
    %cst_192 = arith.constant dense<0xFF800000> : vector<2x8xf32>
    %455 = vector.multi_reduction <maximumf>, %454, %cst_192 [2] : vector<2x8x16xf32> to vector<2x8xf32>
    %456 = vector.shape_cast %455 : vector<2x8xf32> to vector<2x8x1xf32>
    %457 = vector.broadcast %456 : vector<2x8x1xf32> to vector<2x8x16xf32>
    %458 = arith.subf %454, %457 : vector<2x8x16xf32>
    %459 = math.exp %458 : vector<2x8x16xf32>
    %cst_193 = arith.constant dense<0.000000e+00> : vector<2x8xf32>
    %460 = vector.multi_reduction <add>, %459, %cst_193 [2] : vector<2x8x16xf32> to vector<2x8xf32>
    %461 = vector.shape_cast %460 : vector<2x8xf32> to vector<2x8x1xf32>
    %462 = tpu.reciprocal %461 {approx = true} : vector<2x8x1xf32> -> vector<2x8x1xf32>
    %463 = vector.broadcast %462 : vector<2x8x1xf32> to vector<2x8x16xf32>
    %464 = arith.mulf %459, %463 : vector<2x8x16xf32>
    %465 = vector.extract_strided_slice %432 {offsets = [0, 0, 16], sizes = [2, 16, 16], strides = [1, 1, 1]} : vector<2x16x64xf32> to vector<2x16x16xf32>
    "tpu.trace_start"() <{level = 10 : i32, message = "bqk,bkd->bqd"}> : () -> ()
    %cst_194 = arith.constant dense<0.000000e+00> : vector<2x8x16xf32>
    %466 = tpu.matmul %464, %465, %cst_194 {dimension_numbers = #tpu.dot_dimension_numbers<[2], [1], [1], [2], [0, 0, 0, 1, 1, 2], [0], [0]>} : vector<2x8x16xf32>, vector<2x16x16xf32>, vector<2x8x16xf32> -> vector<2x8x16xf32>
    "tpu.trace_stop"() : () -> ()
    %467 = vector.extract_strided_slice %428 {offsets = [0, 0, 32], sizes = [2, 8, 16], strides = [1, 1, 1]} : vector<2x8x64xf32> to vector<2x8x16xf32>
    %468 = vector.extract_strided_slice %430 {offsets = [0, 0, 32], sizes = [2, 16, 16], strides = [1, 1, 1]} : vector<2x16x64xf32> to vector<2x16x16xf32>
    "tpu.trace_start"() <{level = 10 : i32, message = "bqd,bkd->bqk"}> : () -> ()
    %cst_195 = arith.constant dense<0.000000e+00> : vector<2x8x16xf32>
    %469 = tpu.matmul %467, %468, %cst_195 {dimension_numbers = #tpu.dot_dimension_numbers<[2], [2], [1], [1], [0, 0, 0, 1, 1, 1], [0], [0]>} : vector<2x8x16xf32>, vector<2x16x16xf32>, vector<2x8x16xf32> -> vector<2x8x16xf32>
    "tpu.trace_stop"() : () -> ()
    %470 = arith.mulf %469, %4 : vector<2x8x16xf32>
    %471 = arith.addf %470, %5 : vector<2x8x16xf32>
    %cst_196 = arith.constant dense<0xFF800000> : vector<2x8xf32>
    %472 = vector.multi_reduction <maximumf>, %471, %cst_196 [2] : vector<2x8x16xf32> to vector<2x8xf32>
    %473 = vector.shape_cast %472 : vector<2x8xf32> to vector<2x8x1xf32>
    %474 = vector.broadcast %473 : vector<2x8x1xf32> to vector<2x8x16xf32>
    %475 = arith.subf %471, %474 : vector<2x8x16xf32>
    %476 = math.exp %475 : vector<2x8x16xf32>
    %cst_197 = arith.constant dense<0.000000e+00> : vector<2x8xf32>
    %477 = vector.multi_reduction <add>, %476, %cst_197 [2] : vector<2x8x16xf32> to vector<2x8xf32>
    %478 = vector.shape_cast %477 : vector<2x8xf32> to vector<2x8x1xf32>
    %479 = tpu.reciprocal %478 {approx = true} : vector<2x8x1xf32> -> vector<2x8x1xf32>
    %480 = vector.broadcast %479 : vector<2x8x1xf32> to vector<2x8x16xf32>
    %481 = arith.mulf %476, %480 : vector<2x8x16xf32>
    %482 = vector.extract_strided_slice %432 {offsets = [0, 0, 32], sizes = [2, 16, 16], strides = [1, 1, 1]} : vector<2x16x64xf32> to vector<2x16x16xf32>
    "tpu.trace_start"() <{level = 10 : i32, message = "bqk,bkd->bqd"}> : () -> ()
    %cst_198 = arith.constant dense<0.000000e+00> : vector<2x8x16xf32>
    %483 = tpu.matmul %481, %482, %cst_198 {dimension_numbers = #tpu.dot_dimension_numbers<[2], [1], [1], [2], [0, 0, 0, 1, 1, 2], [0], [0]>} : vector<2x8x16xf32>, vector<2x16x16xf32>, vector<2x8x16xf32> -> vector<2x8x16xf32>
    "tpu.trace_stop"() : () -> ()
    %484 = vector.extract_strided_slice %428 {offsets = [0, 0, 48], sizes = [2, 8, 16], strides = [1, 1, 1]} : vector<2x8x64xf32> to vector<2x8x16xf32>
    %485 = vector.extract_strided_slice %430 {offsets = [0, 0, 48], sizes = [2, 16, 16], strides = [1, 1, 1]} : vector<2x16x64xf32> to vector<2x16x16xf32>
    "tpu.trace_start"() <{level = 10 : i32, message = "bqd,bkd->bqk"}> : () -> ()
    %cst_199 = arith.constant dense<0.000000e+00> : vector<2x8x16xf32>
    %486 = tpu.matmul %484, %485, %cst_199 {dimension_numbers = #tpu.dot_dimension_numbers<[2], [2], [1], [1], [0, 0, 0, 1, 1, 1], [0], [0]>} : vector<2x8x16xf32>, vector<2x16x16xf32>, vector<2x8x16xf32> -> vector<2x8x16xf32>
    "tpu.trace_stop"() : () -> ()
    %487 = arith.mulf %486, %4 : vector<2x8x16xf32>
    %488 = arith.addf %487, %5 : vector<2x8x16xf32>
    %cst_200 = arith.constant dense<0xFF800000> : vector<2x8xf32>
    %489 = vector.multi_reduction <maximumf>, %488, %cst_200 [2] : vector<2x8x16xf32> to vector<2x8xf32>
    %490 = vector.shape_cast %489 : vector<2x8xf32> to vector<2x8x1xf32>
    %491 = vector.broadcast %490 : vector<2x8x1xf32> to vector<2x8x16xf32>
    %492 = arith.subf %488, %491 : vector<2x8x16xf32>
    %493 = math.exp %492 : vector<2x8x16xf32>
    %cst_201 = arith.constant dense<0.000000e+00> : vector<2x8xf32>
    %494 = vector.multi_reduction <add>, %493, %cst_201 [2] : vector<2x8x16xf32> to vector<2x8xf32>
    %495 = vector.shape_cast %494 : vector<2x8xf32> to vector<2x8x1xf32>
    %496 = tpu.reciprocal %495 {approx = true} : vector<2x8x1xf32> -> vector<2x8x1xf32>
    %497 = vector.broadcast %496 : vector<2x8x1xf32> to vector<2x8x16xf32>
    %498 = arith.mulf %493, %497 : vector<2x8x16xf32>
    %499 = vector.extract_strided_slice %432 {offsets = [0, 0, 48], sizes = [2, 16, 16], strides = [1, 1, 1]} : vector<2x16x64xf32> to vector<2x16x16xf32>
    "tpu.trace_start"() <{level = 10 : i32, message = "bqk,bkd->bqd"}> : () -> ()
    %cst_202 = arith.constant dense<0.000000e+00> : vector<2x8x16xf32>
    %500 = tpu.matmul %498, %499, %cst_202 {dimension_numbers = #tpu.dot_dimension_numbers<[2], [1], [1], [2], [0, 0, 0, 1, 1, 2], [0], [0]>} : vector<2x8x16xf32>, vector<2x16x16xf32>, vector<2x8x16xf32> -> vector<2x8x16xf32>
    "tpu.trace_stop"() : () -> ()
    %501 = tpu.concatenate %449, %466, %483, %500 in 2 : vector<2x8x16xf32>, vector<2x8x16xf32>, vector<2x8x16xf32>, vector<2x8x16xf32> -> vector<2x8x64xf32>
    %502 = vector.shape_cast %501 : vector<2x8x64xf32> to vector<16x64xf32>
    %c1_203 = arith.constant 1 : index
    %c0_204 = arith.constant 0 : index
    %c0_205 = arith.constant 0 : index
    %503 = vector.load %arg14[%c1_203, %c0_204, %c0_205] : memref<2x64x64xf32, #tpu.memory_space<vmem>>, vector<1x64x64xf32>
    %504 = vector.shape_cast %503 : vector<1x64x64xf32> to vector<64x64xf32>
    %cst_206 = arith.constant dense<0.000000e+00> : vector<16x64xf32>
    %505 = tpu.matmul %502, %504, %cst_206 {dimension_numbers = #tpu.dot_dimension_numbers<[1], [0], [0], [1], [0, 0, 1, 1], [], []>} : vector<16x64xf32>, vector<64x64xf32>, vector<16x64xf32> -> vector<16x64xf32>
    %c1_207 = arith.constant 1 : index
    %c0_208 = arith.constant 0 : index
    %c0_209 = arith.constant 0 : index
    %506 = vector.load %arg15[%c1_207, %c0_208, %c0_209] : memref<2x1x64xf32, #tpu.memory_space<vmem>>, vector<1x1x64xf32>
    %507 = vector.shape_cast %506 : vector<1x1x64xf32> to vector<1x64xf32>
    %508 = vector.broadcast %507 : vector<1x64xf32> to vector<16x64xf32>
    %509 = arith.addf %505, %508 : vector<16x64xf32>
    %510 = arith.addf %509, %411 : vector<16x64xf32>
    %c1_210 = arith.constant 1 : index
    %c0_211 = arith.constant 0 : index
    %c0_212 = arith.constant 0 : index
    %511 = vector.load %arg22[%c1_210, %c0_211, %c0_212] : memref<2x1x64xf32, #tpu.memory_space<vmem>>, vector<1x1x64xf32>
    %512 = vector.shape_cast %511 : vector<1x1x64xf32> to vector<1x64xf32>
    %c1_213 = arith.constant 1 : index
    %c0_214 = arith.constant 0 : index
    %c0_215 = arith.constant 0 : index
    %513 = vector.load %arg23[%c1_213, %c0_214, %c0_215] : memref<2x1x64xf32, #tpu.memory_space<vmem>>, vector<1x1x64xf32>
    %514 = vector.shape_cast %513 : vector<1x1x64xf32> to vector<1x64xf32>
    %cst_216 = arith.constant dense<0.000000e+00> : vector<16xf32>
    %515 = vector.multi_reduction <add>, %510, %cst_216 [1] : vector<16x64xf32> to vector<16xf32>
    %516 = vector.shape_cast %515 : vector<16xf32> to vector<16x1xf32>
    %cst_217 = arith.constant 6.400000e+01 : f32
    %517 = vector.broadcast %cst_217 : f32 to vector<16x1xf32>
    %518 = arith.divf %516, %517 : vector<16x1xf32>
    %519 = vector.broadcast %518 : vector<16x1xf32> to vector<16x64xf32>
    %520 = arith.subf %510, %519 : vector<16x64xf32>
    %521 = arith.mulf %520, %520 : vector<16x64xf32>
    %cst_218 = arith.constant dense<0.000000e+00> : vector<16xf32>
    %522 = vector.multi_reduction <add>, %521, %cst_218 [1] : vector<16x64xf32> to vector<16xf32>
    %523 = vector.shape_cast %522 : vector<16xf32> to vector<16x1xf32>
    %cst_219 = arith.constant 6.400000e+01 : f32
    %524 = vector.broadcast %cst_219 : f32 to vector<16x1xf32>
    %525 = arith.divf %523, %524 : vector<16x1xf32>
    %526 = vector.broadcast %518 : vector<16x1xf32> to vector<16x64xf32>
    %527 = arith.subf %510, %526 : vector<16x64xf32>
    %cst_220 = arith.constant 9.99999996E-13 : f32
    %528 = vector.broadcast %cst_220 : f32 to vector<16x1xf32>
    %529 = arith.addf %525, %528 : vector<16x1xf32>
    %530 = math.sqrt %529 : vector<16x1xf32>
    %531 = vector.broadcast %530 : vector<16x1xf32> to vector<16x64xf32>
    %532 = arith.divf %527, %531 : vector<16x64xf32>
    %533 = vector.broadcast %512 : vector<1x64xf32> to vector<16x64xf32>
    %534 = arith.mulf %533, %532 : vector<16x64xf32>
    %535 = vector.broadcast %514 : vector<1x64xf32> to vector<16x64xf32>
    %536 = arith.addf %534, %535 : vector<16x64xf32>
    %c1_221 = arith.constant 1 : index
    %c0_222 = arith.constant 0 : index
    %c0_223 = arith.constant 0 : index
    %537 = vector.load %arg16[%c1_221, %c0_222, %c0_223] : memref<2x64x128xf32, #tpu.memory_space<vmem>>, vector<1x64x128xf32>
    %538 = vector.shape_cast %537 : vector<1x64x128xf32> to vector<64x128xf32>
    %cst_224 = arith.constant dense<0.000000e+00> : vector<16x128xf32>
    %539 = tpu.matmul %536, %538, %cst_224 {dimension_numbers = #tpu.dot_dimension_numbers<[1], [0], [0], [1], [0, 0, 1, 1], [], []>} : vector<16x64xf32>, vector<64x128xf32>, vector<16x128xf32> -> vector<16x128xf32>
    %c1_225 = arith.constant 1 : index
    %c0_226 = arith.constant 0 : index
    %c0_227 = arith.constant 0 : index
    %540 = vector.load %arg17[%c1_225, %c0_226, %c0_227] : memref<2x1x128xf32, #tpu.memory_space<vmem>>, vector<1x1x128xf32>
    %541 = vector.shape_cast %540 : vector<1x1x128xf32> to vector<1x128xf32>
    %542 = vector.broadcast %541 : vector<1x128xf32> to vector<16x128xf32>
    %543 = arith.addf %539, %542 : vector<16x128xf32>
    %cst_228 = arith.constant 0.000000e+00 : f32
    %544 = vector.broadcast %cst_228 : f32 to vector<16x128xf32>
    %545 = arith.maximumf %543, %544 : vector<16x128xf32>
    %c1_229 = arith.constant 1 : index
    %c0_230 = arith.constant 0 : index
    %c0_231 = arith.constant 0 : index
    %546 = vector.load %arg18[%c1_229, %c0_230, %c0_231] : memref<2x128x64xf32, #tpu.memory_space<vmem>>, vector<1x128x64xf32>
    %547 = vector.shape_cast %546 : vector<1x128x64xf32> to vector<128x64xf32>
    %cst_232 = arith.constant dense<0.000000e+00> : vector<16x64xf32>
    %548 = tpu.matmul %545, %547, %cst_232 {dimension_numbers = #tpu.dot_dimension_numbers<[1], [0], [0], [1], [0, 0, 1, 1], [], []>} : vector<16x128xf32>, vector<128x64xf32>, vector<16x64xf32> -> vector<16x64xf32>
    %c1_233 = arith.constant 1 : index
    %c0_234 = arith.constant 0 : index
    %c0_235 = arith.constant 0 : index
    %549 = vector.load %arg19[%c1_233, %c0_234, %c0_235] : memref<2x1x64xf32, #tpu.memory_space<vmem>>, vector<1x1x64xf32>
    %550 = vector.shape_cast %549 : vector<1x1x64xf32> to vector<1x64xf32>
    %551 = vector.broadcast %550 : vector<1x64xf32> to vector<16x64xf32>
    %552 = arith.addf %548, %551 : vector<16x64xf32>
    %553 = arith.addf %552, %536 : vector<16x64xf32>
    %c1_236 = arith.constant 1 : index
    %c0_237 = arith.constant 0 : index
    %c0_238 = arith.constant 0 : index
    %554 = vector.load %arg24[%c1_236, %c0_237, %c0_238] : memref<2x1x64xf32, #tpu.memory_space<vmem>>, vector<1x1x64xf32>
    %555 = vector.shape_cast %554 : vector<1x1x64xf32> to vector<1x64xf32>
    %c1_239 = arith.constant 1 : index
    %c0_240 = arith.constant 0 : index
    %c0_241 = arith.constant 0 : index
    %556 = vector.load %arg25[%c1_239, %c0_240, %c0_241] : memref<2x1x64xf32, #tpu.memory_space<vmem>>, vector<1x1x64xf32>
    %557 = vector.shape_cast %556 : vector<1x1x64xf32> to vector<1x64xf32>
    %cst_242 = arith.constant dense<0.000000e+00> : vector<16xf32>
    %558 = vector.multi_reduction <add>, %553, %cst_242 [1] : vector<16x64xf32> to vector<16xf32>
    %559 = vector.shape_cast %558 : vector<16xf32> to vector<16x1xf32>
    %cst_243 = arith.constant 6.400000e+01 : f32
    %560 = vector.broadcast %cst_243 : f32 to vector<16x1xf32>
    %561 = arith.divf %559, %560 : vector<16x1xf32>
    %562 = vector.broadcast %561 : vector<16x1xf32> to vector<16x64xf32>
    %563 = arith.subf %553, %562 : vector<16x64xf32>
    %564 = arith.mulf %563, %563 : vector<16x64xf32>
    %cst_244 = arith.constant dense<0.000000e+00> : vector<16xf32>
    %565 = vector.multi_reduction <add>, %564, %cst_244 [1] : vector<16x64xf32> to vector<16xf32>
    %566 = vector.shape_cast %565 : vector<16xf32> to vector<16x1xf32>
    %cst_245 = arith.constant 6.400000e+01 : f32
    %567 = vector.broadcast %cst_245 : f32 to vector<16x1xf32>
    %568 = arith.divf %566, %567 : vector<16x1xf32>
    %569 = vector.broadcast %561 : vector<16x1xf32> to vector<16x64xf32>
    %570 = arith.subf %553, %569 : vector<16x64xf32>
    %cst_246 = arith.constant 9.99999996E-13 : f32
    %571 = vector.broadcast %cst_246 : f32 to vector<16x1xf32>
    %572 = arith.addf %568, %571 : vector<16x1xf32>
    %573 = math.sqrt %572 : vector<16x1xf32>
    %574 = vector.broadcast %573 : vector<16x1xf32> to vector<16x64xf32>
    %575 = arith.divf %570, %574 : vector<16x64xf32>
    %576 = vector.broadcast %555 : vector<1x64xf32> to vector<16x64xf32>
    %577 = arith.mulf %576, %575 : vector<16x64xf32>
    %578 = vector.broadcast %557 : vector<1x64xf32> to vector<16x64xf32>
    %579 = arith.addf %577, %578 : vector<16x64xf32>
    %c0_247 = arith.constant 0 : index
    %c0_248 = arith.constant 0 : index
    %580 = vector.load %arg26[%c0_247, %c0_248] : memref<64x128xf32, #tpu.memory_space<vmem>>, vector<64x128xf32>
    %cst_249 = arith.constant dense<0.000000e+00> : vector<16x128xf32>
    %581 = tpu.matmul %579, %580, %cst_249 {dimension_numbers = #tpu.dot_dimension_numbers<[1], [0], [0], [1], [0, 0, 1, 1], [], []>} : vector<16x64xf32>, vector<64x128xf32>, vector<16x128xf32> -> vector<16x128xf32>
    %c0_250 = arith.constant 0 : index
    %c0_251 = arith.constant 0 : index
    %582 = vector.load %arg27[%c0_250, %c0_251] : memref<1x128xf32, #tpu.memory_space<vmem>>, vector<1x128xf32>
    %583 = vector.broadcast %582 : vector<1x128xf32> to vector<16x128xf32>
    %584 = arith.addf %581, %583 : vector<16x128xf32>
    %c0_252 = arith.constant 0 : index
    %c0_253 = arith.constant 0 : index
    %585 = vector.load %arg28[%c0_252, %c0_253] : memref<16x128xf32, #tpu.memory_space<vmem>>, vector<16x128xf32>
    tpu.vector_store %arg28[%c0_252, %c0_253], %584 {strides = array<i32>} : memref<16x128xf32, #tpu.memory_space<vmem>>, vector<16x128xf32>,
    return
  }
}

</mosaic_0001>

<bundles_post_ra>
// kernel: decoder_forward.1
= control target key start
LH: loop header
LB: loop body
LE: loop exit
PB: predicated region body
PF: predicated region fallthrough
CT: control target
= control target key end

     0   :  { %s11291_s0 = inlined_call_operand.vmem [shape: f32[16,64], index: 0, kind: input, shape index: {}]   ;;  %s11292_s1 = inlined_call_operand.hbm [shape: f32[32,64], index: 1, kind: input, shape index: {}]   ;;  %s11293_s2 = inlined_call_operand.vmem [shape: f32[2,8,8], index: 2, kind: input, shape index: {}]   ;;  %s11294_s3 = inlined_call_operand.vmem [shape: f32[2,8,8], index: 3, kind: input, shape index: {}]   ;;  %s11295_s4 = inlined_call_operand.vmem [shape: f32[2,8,16], index: 4, kind: input, shape index: {}]   ;;  %s11296_s5 = inlined_call_operand.vmem [shape: f32[2,8,16], index: 5, kind: input, shape index: {}]   ;;  %s11297_s6 = inlined_call_operand.vmem [shape: f32[2,64,192], index: 6, kind: input, shape index: {}]   ;;  %s11298_s7 = inlined_call_operand.hbm [shape: f32[2,1,192], index: 7, kind: input, shape index: {}]   ;;  %s11299_s8 = inlined_call_operand.vmem [shape: f32[2,64,64], index: 8, kind: input, shape index: {}]   ;;  %s11300_s9 = inlined_call_operand.hbm [shape: f32[2,1,64], index: 9, kind: input, shape index: {}]   ;;  %s11301_s10 = inlined_call_operand.vmem [shape: f32[2,64,64], index: 10, kind: input, shape index: {}]   ;;  %s11302_s11 = inlined_call_operand.hbm [shape: f32[2,1,64], index: 11, kind: input, shape index: {}]   ;;  %s11303_s12 = inlined_call_operand.vmem [shape: f32[2,64,128], index: 12, kind: input, shape index: {}]   ;;  %s11304_s13 = inlined_call_operand.hbm [shape: f32[2,1,128], index: 13, kind: input, shape index: {}]   ;;  %s11305_s14 = inlined_call_operand.vmem [shape: f32[2,64,64], index: 14, kind: input, shape index: {}]   ;;  %s11306_s15 = inlined_call_operand.hbm [shape: f32[2,1,64], index: 15, kind: input, shape index: {}]   ;;  %s11307_s16 = inlined_call_operand.vmem [shape: f32[2,64,128], index: 16, kind: input, shape index: {}]   ;;  %s11308_s17 = inlined_call_operand.hbm [shape: f32[2,1,128], index: 17, kind: input, shape index: {}]   ;;  %s11309_s18 = inlined_call_operand.vmem [shape: f32[2,128,64], index: 18, kind: input, shape index: {}]   ;;  %s11310_s19 = inlined_call_operand.hbm [shape: f32[2,1,64], index: 19, kind: input, shape index: {}]   ;;  %s11311_s20 = inlined_call_operand.hbm [shape: f32[2,1,64], index: 20, kind: input, shape index: {}]   ;;  %s11312_s21 = inlined_call_operand.hbm [shape: f32[2,1,64], index: 21, kind: input, shape index: {}]   ;;  %s11313_s22 = inlined_call_operand.hbm [shape: f32[2,1,64], index: 22, kind: input, shape index: {}]   ;;  %s11314_s23 = inlined_call_operand.hbm [shape: f32[2,1,64], index: 23, kind: input, shape index: {}]   ;;  %s11315_s24 = inlined_call_operand.hbm [shape: f32[2,1,64], index: 24, kind: input, shape index: {}]   ;;  %s11316_s25 = inlined_call_operand.hbm [shape: f32[2,1,64], index: 25, kind: input, shape index: {}]   ;;  %s11317_s26 = inlined_call_operand.vmem [shape: f32[64,128], index: 26, kind: input, shape index: {}]   ;;  %s11318_s27 = inlined_call_operand.vmem [shape: f32[1,128], index: 27, kind: input, shape index: {}]   ;;  %s11319_s28 = inlined_call_operand.vmem [shape: f32[16,128], index: 28, kind: output, shape index: {}]  }
   0x1   :  { %11329 = sst [smem:[#allocation32_spill]] %s11291_s0 }
   0x2   :  { %11330 = sst [smem:[#allocation33_spill]] %s11292_s1 }
   0x3   :  { %11331 = sst [smem:[#allocation34_spill]] %s11293_s2 }
   0x4   :  { %11332 = sst [smem:[#allocation35_spill]] %s11294_s3 }
   0x5   :  { %11333 = sst [smem:[#allocation36_spill]] %s11295_s4 }
   0x6   :  { %11334 = sst [smem:[#allocation37_spill]] %s11296_s5 }
   0x7   :  { %11335 = sst [smem:[#allocation38_spill]] %s11297_s6 }
   0x8   :  { %11336 = sst [smem:[#allocation39_spill]] %s11298_s7 }
   0x9   :  { %11337 = sst [smem:[#allocation40_spill]] %s11299_s8 }
   0xa   :  { %11338 = sst [smem:[#allocation41_spill]] %s11300_s9 }
   0xb   :  { %11339 = sst [smem:[#allocation42_spill]] %s11301_s10 }
   0xc   :  { %11340 = sst [smem:[#allocation43_spill]] %s11302_s11 }
   0xd   :  { %11341 = sst [smem:[#allocation44_spill]] %s11303_s12 }
   0xe   :  { %33 = vsyncpa [#allocation3], 0 }
   0xf   :  { %34 = vsyncpa [#allocation5], 0 }
  0x10   :  { %35 = vsyncpa [#allocation8], 0 }
  0x11   :  { %36 = vsyncpa [#allocation11], 0 }
  0x12   :  { %37 = vsyncpa [#allocation14], 0 }
  0x13   :  { %38 = vsyncpa [#allocation17], 0 }
  0x14   :  { %39 = vsyncpa [#allocation20], 0 }
  0x15   :  { %40 = vsyncpa [#allocation23], 0  ;;  %s9484_s8 = smov [#allocation4]  }
  0x16   :  { %s70_s5 = sshll.u32 %s9484_s8, 4  ;;  %s71_s5 = int_to_ptr.vmem [resolvable:$true] %s70_s5 }
  0x17   :  { %s9196_s9 = scalar_lea.vmem %s71_s5, 64  ;;  %p9201_p1 = scmp.lt.s32.totalorder %s71_s5, %s71_s5 }
  0x18   :  { %p9197_p0 = scmp.ne.s32.totalorder %s71_s5, %s9196_s9  ;;  %p9202_p2 = scmp.lt.s32.totalorder %s9196_s9, %s9196_s9 }
  0x1a   :  { %p9203_p3 = por %p9202_p2, %p9201_p1 }
  0x1c   :  { %p9204_p4 = pnand %p9203_p3, %p9197_p0 }
  0x1e   :  { %9207 = shalt.err (!%p9204_p4)
}
  0x1f   :  { %s9485_s30 = smov 32   ;;  %s9486_s3 = smov 2  }
  0x20   :  { %s11342_s0 = sld [smem:[#allocation39_spill]]  ;;  %s9487_s11 = smov [#allocation7]  }
  0x21   :  { %s98_s29 = sshll.u32 %s9487_s11, 4  ;;  %s9488_s2 = smov [#allocation10]   ;;  %s99_s29 = int_to_ptr.vmem [resolvable:$true] %s98_s29 }
  0x22   :  { %s126_s7 = sshll.u32 %s9488_s2, 4  ;;  %s9216_s12 = scalar_lea.vmem %s99_s29, 32  ;;  %s127_s7 = int_to_ptr.vmem [resolvable:$true] %s126_s7 }
  0x23   :  { %p9217_p5 = scmp.ne.s32.totalorder %s99_s29, %s9216_s12  ;;  %p9221_p6 = scmp.lt.s32.totalorder %s99_s29, %s99_s29 }
  0x24   :  { %p9222_p7 = scmp.lt.s32.totalorder %s9216_s12, %s9216_s12 }
  0x26   :  { %76 = dma.hbm_to_vmem [thread:$0]  %s11342_s0, 64, %s71_s5, [#allocation5], %s9485_s30, %s9485_s30, %s9486_s3  }
  0x27   :  { %p9223_p8 = por %p9222_p7, %p9221_p6 }
  0x29   :  { %p9224_p9 = pnand %p9223_p8, %p9217_p5 }
  0x2b   :  { %9227 = shalt.err (!%p9224_p9)
}
  0x2c   :  { %s9489_s1 = smov 16   ;;  %s9490_s4 = smov 1  }
  0x2d   :  { %s11343_s5 = sld [smem:[#allocation43_spill]]  ;;  %s9236_s3 = scalar_lea.vmem %s127_s7, 32 }
  0x2e   :  { %p9237_p10 = scmp.ne.s32.totalorder %s127_s7, %s9236_s3  ;;  %p9241_p11 = scmp.lt.s32.totalorder %s127_s7, %s127_s7 }
  0x2f   :  { %p9242_p12 = scmp.lt.s32.totalorder %s9236_s3, %s9236_s3 }
  0x31   :  { %p9243_p13 = por %p9242_p12, %p9241_p11 }
  0x33   :  { %104 = dma.hbm_to_vmem [thread:$0]  %s11343_s5, 32, %s99_s29, [#allocation8], %s9489_s1, %s9489_s1, %s9490_s4  }
  0x34   :  { %p9244_p0 = pnand %p9243_p13, %p9237_p10 }
  0x36   :  { %9247 = shalt.err (!%p9244_p0)
}
  0x37   :  { %132 = dma.hbm_to_vmem [thread:$0]  %s11306_s15, 32, %s127_s7, [#allocation11], %s9489_s1, %s9489_s1, %s9490_s4  }
  0x38   :  { %s9491_s0 = smov [#allocation13]   ;;  %s9492_s2 = smov [#allocation16]  }
  0x39   :  { %s154_s11 = sshll.u32 %s9491_s0, 4  ;;  %s178_s29 = sshll.u32 %s9492_s2, 4  ;;  %s155_s11 = int_to_ptr.vmem [resolvable:$true] %s154_s11  ;;  %s179_s29 = int_to_ptr.vmem [resolvable:$true] %s178_s29 }
  0x3a   :  { %s9256_s12 = scalar_lea.vmem %s155_s11, 32  ;;  %p9261_p2 = scmp.lt.s32.totalorder %s155_s11, %s155_s11 }
  0x3b   :  { %p9257_p1 = scmp.ne.s32.totalorder %s155_s11, %s9256_s12  ;;  %p9262_p3 = scmp.lt.s32.totalorder %s9256_s12, %s9256_s12 }
  0x3d   :  { %p9263_p4 = por %p9262_p3, %p9261_p2 }
  0x3f   :  { %p9264_p5 = pnand %p9263_p4, %p9257_p1 }
  0x41   :  { %9267 = shalt.err (!%p9264_p5)
}
  0x42   :  { %160 = dma.hbm_to_vmem [thread:$0]  %s11310_s19, 32, %s155_s11, [#allocation14], %s9489_s1, %s9489_s1, %s9490_s4  }
  0x43   :  { %s9276_s15 = scalar_lea.vmem %s179_s29, 32  ;;  %p9281_p7 = scmp.lt.s32.totalorder %s179_s29, %s179_s29 }
  0x44   :  { %p9277_p6 = scmp.ne.s32.totalorder %s179_s29, %s9276_s15  ;;  %p9282_p8 = scmp.lt.s32.totalorder %s9276_s15, %s9276_s15 }
  0x46   :  { %p9283_p9 = por %p9282_p8, %p9281_p7 }
  0x48   :  { %p9284_p10 = pnand %p9283_p9, %p9277_p6 }
  0x4a   :  { %9287 = shalt.err (!%p9284_p10)
}
  0x4b   :  { %184 = dma.hbm_to_vmem [thread:$0]  %s11312_s21, 32, %s179_s29, [#allocation17], %s9489_s1, %s9489_s1, %s9490_s4  }
  0x4c   :  { %s9493_s3 = smov [#allocation19]   ;;  %s9494_s10 = smov [#allocation2]  }
  0x4d   :  { %s202_s6 = sshll.u32 %s9493_s3, 4  ;;  %s48_s19 = sshll.u32 %s9494_s10, 4  ;;  %s203_s6 = int_to_ptr.vmem [resolvable:$true] %s202_s6  ;;  %s49_s19 = int_to_ptr.vmem [resolvable:$true] %s48_s19 }
  0x4e   :  { %s9296_s0 = scalar_lea.vmem %s203_s6, 32  ;;  %p9301_p12 = scmp.lt.s32.totalorder %s203_s6, %s203_s6 }
  0x4f   :  { %p9297_p11 = scmp.ne.s32.totalorder %s203_s6, %s9296_s0  ;;  %p9302_p13 = scmp.lt.s32.totalorder %s9296_s0, %s9296_s0 }
  0x51   :  { %p9303_p0 = por %p9302_p13, %p9301_p12 }
  0x53   :  { %p9304_p1 = pnand %p9303_p0, %p9297_p11 }
  0x55   :  { %9307 = shalt.err (!%p9304_p1)
}
  0x56   :  { %208 = dma.hbm_to_vmem [thread:$0]  %s11314_s23, 32, %s203_s6, [#allocation20], %s9489_s1, %s9489_s1, %s9490_s4  }
  0x57   :  { %s9316_s21 = scalar_lea.vmem %s49_s19, 512  ;;  %p9321_p3 = scmp.lt.s32.totalorder %s49_s19, %s49_s19 }
  0x58   :  { %p9317_p2 = scmp.ne.s32.totalorder %s49_s19, %s9316_s21  ;;  %p9322_p4 = scmp.lt.s32.totalorder %s9316_s21, %s9316_s21 }
  0x5a   :  { %p9323_p5 = por %p9322_p4, %p9321_p3 }
  0x5c   :  { %p9324_p6 = pnand %p9323_p5, %p9317_p2 }
  0x5e   :  { %9327 = shalt.err (!%p9324_p6)
}
  0x5f   :  { %s9495_s29 = smov 128   ;;  %s9496_s12 = smov 8  }
  0x60   :  { %s11344_s15 = sld [smem:[#allocation33_spill]]  ;;  %s9497_s7 = smov [#allocation6]  }
  0x61   :  { %s84_s5 = sshll.u32 %s9497_s7, 4  ;;  %s9498_s3 = smov [#allocation9]   ;;  %s85_s5 = int_to_ptr.vmem [resolvable:$true] %s84_s5 }
  0x62   :  { %s112_s10 = sshll.u32 %s9498_s3, 4  ;;  %s9336_s23 = scalar_lea.vmem %s85_s5, 32  ;;  %s113_s10 = int_to_ptr.vmem [resolvable:$true] %s112_s10 }
  0x63   :  { %p9337_p7 = scmp.ne.s32.totalorder %s85_s5, %s9336_s23  ;;  %p9341_p8 = scmp.lt.s32.totalorder %s85_s5, %s85_s5 }
  0x64   :  { %p9342_p9 = scmp.lt.s32.totalorder %s9336_s23, %s9336_s23 }
  0x66   :  { %54 = dma.hbm_to_vmem [thread:$0]  %s11344_s15, 512, %s49_s19, [#allocation3], %s9495_s29, %s9495_s29, %s9496_s12  }
  0x67   :  { %p9343_p10 = por %p9342_p9, %p9341_p8 }
  0x69   :  { %p9344_p11 = pnand %p9343_p10, %p9337_p7 }
  0x6b   :  { %9347 = shalt.err (!%p9344_p11)
}
  0x6c   :  { %s11345_s11 = sld [smem:[#allocation41_spill]]  ;;  %s9356_s19 = scalar_lea.vmem %s113_s10, 32 }
  0x6d   :  { %p9357_p12 = scmp.ne.s32.totalorder %s113_s10, %s9356_s19  ;;  %p9361_p13 = scmp.lt.s32.totalorder %s113_s10, %s113_s10 }
  0x6e   :  { %p9362_p0 = scmp.lt.s32.totalorder %s9356_s19, %s9356_s19 }
  0x70   :  { %p9363_p1 = por %p9362_p0, %p9361_p13 }
  0x72   :  { %90 = dma.hbm_to_vmem [thread:$0]  %s11345_s11, 32, %s85_s5, [#allocation5], %s9489_s1, %s9489_s1, %s9490_s4  }
  0x73   :  { %p9364_p2 = pnand %p9363_p1, %p9357_p12 }
  0x75   :  { %9367 = shalt.err (!%p9364_p2)
}
  0x76   :  { %118 = dma.hbm_to_vmem [thread:$0]  %s11304_s13, 32, %s113_s10, [#allocation8], %s9489_s1, %s9489_s1, %s9490_s4  }
  0x77   :  { %s9499_s29 = smov [#allocation12]   ;;  %s9500_s8 = smov [#allocation15]  }
  0x78   :  { %s140_s12 = sshll.u32 %s9499_s29, 4  ;;  %s166_s9 = sshll.u32 %s9500_s8, 4  ;;  %s141_s12 = int_to_ptr.vmem [resolvable:$true] %s140_s12  ;;  %s167_s9 = int_to_ptr.vmem [resolvable:$true] %s166_s9 }
  0x79   :  { %s9376_s15 = scalar_lea.vmem %s141_s12, 32  ;;  %p9381_p4 = scmp.lt.s32.totalorder %s141_s12, %s141_s12 }
  0x7a   :  { %p9377_p3 = scmp.ne.s32.totalorder %s141_s12, %s9376_s15  ;;  %p9382_p5 = scmp.lt.s32.totalorder %s9376_s15, %s9376_s15 }
  0x7c   :  { %p9383_p6 = por %p9382_p5, %p9381_p4 }
  0x7e   :  { %p9384_p7 = pnand %p9383_p6, %p9377_p3 }
  0x80   :  { %9387 = shalt.err (!%p9384_p7)
}
  0x81   :  { %146 = dma.hbm_to_vmem [thread:$0]  %s11308_s17, 32, %s141_s12, [#allocation11], %s9489_s1, %s9489_s1, %s9490_s4  }
  0x82   :  { %s9396_s13 = scalar_lea.vmem %s167_s9, 32  ;;  %p9401_p9 = scmp.lt.s32.totalorder %s167_s9, %s167_s9 }
  0x83   :  { %p9397_p8 = scmp.ne.s32.totalorder %s167_s9, %s9396_s13  ;;  %p9402_p10 = scmp.lt.s32.totalorder %s9396_s13, %s9396_s13 }
  0x85   :  { %p9403_p11 = por %p9402_p10, %p9401_p9 }
  0x87   :  { %p9404_p12 = pnand %p9403_p11, %p9397_p8 }
  0x89   :  { %9407 = shalt.err (!%p9404_p12)
}
  0x8a   :  { %172 = dma.hbm_to_vmem [thread:$0]  %s11311_s20, 32, %s167_s9, [#allocation14], %s9489_s1, %s9489_s1, %s9490_s4  }
  0x8b   :  { %s9501_s23 = smov [#allocation18]   ;;  %s9502_s0 = smov [#allocation21]  }
  0x8c   :  { %s190_s6 = sshll.u32 %s9501_s23, 4  ;;  %s214_s17 = sshll.u32 %s9502_s0, 4  ;;  %s191_s6 = int_to_ptr.vmem [resolvable:$true] %s190_s6  ;;  %s215_s17 = int_to_ptr.vmem [resolvable:$true] %s214_s17 }
  0x8d   :  { %s9416_s11 = scalar_lea.vmem %s191_s6, 32  ;;  %p9421_p0 = scmp.lt.s32.totalorder %s191_s6, %s191_s6 }
  0x8e   :  { %p9417_p13 = scmp.ne.s32.totalorder %s191_s6, %s9416_s11  ;;  %p9422_p1 = scmp.lt.s32.totalorder %s9416_s11, %s9416_s11 }
  0x90   :  { %p9423_p2 = por %p9422_p1, %p9421_p0 }
  0x92   :  { %p9424_p3 = pnand %p9423_p2, %p9417_p13 }
  0x94   :  { %9427 = shalt.err (!%p9424_p3)
}
  0x95   :  { %196 = dma.hbm_to_vmem [thread:$0]  %s11313_s22, 32, %s191_s6, [#allocation17], %s9489_s1, %s9489_s1, %s9490_s4  }
  0x96   :  { %s9436_s20 = scalar_lea.vmem %s215_s17, 32  ;;  %p9441_p5 = scmp.lt.s32.totalorder %s215_s17, %s215_s17 }
  0x97   :  { %p9437_p4 = scmp.ne.s32.totalorder %s215_s17, %s9436_s20  ;;  %p9442_p6 = scmp.lt.s32.totalorder %s9436_s20, %s9436_s20 }
  0x99   :  { %p9443_p7 = por %p9442_p6, %p9441_p5 }
  0x9b   :  { %p9444_p8 = pnand %p9443_p7, %p9437_p4 }
  0x9d   :  { %9447 = shalt.err (!%p9444_p8)
}
  0x9e   :  { %220 = dma.hbm_to_vmem [thread:$0]  %s11315_s24, 32, %s215_s17, [#allocation20], %s9489_s1, %s9489_s1, %s9490_s4  }
  0x9f   :  { %s9503_s12 = smov [#allocation22]  }
  0xa0   :  { %s226_s8 = sshll.u32 %s9503_s12, 4  ;;  %s227_s8 = int_to_ptr.vmem [resolvable:$true] %s226_s8 }
  0xa1   :  { %s9456_s9 = scalar_lea.vmem %s227_s8, 32  ;;  %p9461_p10 = scmp.lt.s32.totalorder %s227_s8, %s227_s8 }
  0xa2   :  { %p9457_p9 = scmp.ne.s32.totalorder %s227_s8, %s9456_s9  ;;  %p9462_p11 = scmp.lt.s32.totalorder %s9456_s9, %s9456_s9 }
  0xa4   :  { %p9463_p12 = por %p9462_p11, %p9461_p10 }
  0xa6   :  { %p9464_p13 = pnand %p9463_p12, %p9457_p9 }
  0xa8   :  { %9467 = shalt.err (!%p9464_p13)
}
  0xa9   :  { %232 = dma.hbm_to_vmem [thread:$0]  %s11316_s25, 32, %s227_s8, [#allocation23], %s9489_s1, %s9489_s1, %s9490_s4  }
  0xaa   :  { %9468 = dma.done.wait [#allocation3], 512  }
  0xab   :  { %9469 = vsyncadd [#allocation3], 4294966784 }
  0xac   :  { %9470 = dma.done.wait [#allocation5], 96  }
  0xad   :  { %9471 = vsyncadd [#allocation5], 4294967200 }
  0xae   :  { %9472 = dma.done.wait [#allocation8], 64  }
  0xaf   :  { %9473 = vsyncadd [#allocation8], 4294967232 }
  0xb0   :  { %9474 = dma.done.wait [#allocation11], 64  }
  0xb1   :  { %9475 = vsyncadd [#allocation11], 4294967232 }
  0xb2   :  { %9476 = dma.done.wait [#allocation14], 64  }
  0xb3   :  { %9477 = vsyncadd [#allocation14], 4294967232 }
  0xb4   :  { %9478 = dma.done.wait [#allocation17], 64  }
  0xb5   :  { %9479 = vsyncadd [#allocation17], 4294967232 }
  0xb6   :  { %9480 = dma.done.wait [#allocation20], 64  }
  0xb7   :  { %9481 = vsyncadd [#allocation20], 4294967232 }
  0xb8   :  { %9482 = dma.done.wait [#allocation23], 32  }
  0xb9   :  { %9483 = vsyncadd [#allocation23], 4294967264  ;;  %v9504_v0 = vmov 0.0   ;;  %s11346_s4 = sld [smem:[#allocation38_spill]]  ;;  %vm321_vm0 = vcmask 523264   ;;  %v311_v19 = vlaneseq  ;;  %vm9505_vm1 = vmmov 0  }
  0xba   :  { %392 = vmatprep.mubr.f32.mxu0 %v9504_v0  ;;  %8304 = vmatprep.subr.mxu1 %v9504_v0  ;;  %s11347_s19 = sld [smem:[#allocation32_spill]]  ;;  %v309_v22 = vld [vmem:[#allocation4] sm:$0x3]  ;;  %s9506_s21 = smov 64   ;;  %vm410_vm2 = vcmask 130048   ;;  %vm568_vm3 = vcmask 64512  }
  0xbb   :  { %v9802_v20 = vshrl.u32 %v311_v19, 7  ;;  %8306 = vmatprep.mubr.msk.f32.mxu1 %vm9505_vm1, %v9504_v0  ;;  %s11348_s8 = sld [smem:[#allocation34_spill]]  ;;  %s9507_s13 = smov 48   ;;  %vm1767_vm4 = vcmask 261120   ;;  %vm1770_vm5 = vcmask 392192  }
  0xbc   :  { %s11349_s15 = sld [smem:[#allocation35_spill]]  ;;  %s9508_s3 = smov 112  }
  0xbd   :  { %v313_v21 = vsub.s32 0, %v9802_v20  ;;  %v317_v29 = vsub.s32 1, %v9802_v20  ;;  %s9509_s10 = smov 96   ;;  %s9510_s23 = smov 80  }
  0xbe   :  { %s11350_s17 = sld [smem:[#allocation40_spill]] }
  0xbf   :  { %v308_v1 = vld [vmem:[%s11346_s4 + $0x78] sm:$0xff]  ;;  %v307_v2 = vld [vmem:[%s11346_s4 + $0x70] sm:$0xff]  ;;  %v306_v3 = vld [vmem:[%s11346_s4 + $0x68] sm:$0xff]  ;;  %v314_v23 = vrot.slane %v309_v22, %v313_v21  ;;  %v9827_v32 = vrot.slane %v309_v22, %v317_v29  ;;  %s11351_s2 = sld [smem:[#allocation44_spill]] }
  0xc0   :  { %344 = vmatprep.subr.mxu0 %v308_v1  ;;  %v305_v4 = vld [vmem:[%s11346_s4 + $0x60] sm:$0xff]  ;;  %v304_v5 = vld [vmem:[%s11346_s4 + $0x58] sm:$0xff]  ;;  %v303_v6 = vld [vmem:[%s11346_s4 + $0x50] sm:$0xff]  ;;  %s11352_s0 = sld [smem:[#allocation42_spill]] }
  0xc1   :  { %345 = vmatpush1.msra.mxu0 %v307_v2  ;;  %v302_v7 = vld [vmem:[%s11346_s4 + $0x48] sm:$0xff]  ;;  %v301_v8 = vld [vmem:[%s11346_s4 + $0x40] sm:$0xff]  ;;  %v300_v9 = vld [vmem:[%s11346_s4 + $0x38] sm:$0xff]  ;;  %s11353_s5 = sld [smem:[#allocation36_spill]] }
  0xc2   :  { %346 = vmatprep.subr.mxu0 %v306_v3  ;;  %v299_v10 = vld [vmem:[%s11346_s4 + $0x30] sm:$0xff]  ;;  %v298_v11 = vld [vmem:[%s11346_s4 + $0x28] sm:$0xff]  ;;  %v297_v12 = vld [vmem:[%s11346_s4 + $0x20] sm:$0xff]  ;;  %s11354_s29 = sld [smem:[#allocation37_spill]] }
  0xc3   :  { %347 = vmatpush1.msra.mxu0 %v305_v4  ;;  %v296_v13 = vld [vmem:[%s11346_s4 + $0x18] sm:$0xff]  ;;  %v295_v14 = vld [vmem:[%s11346_s4 + $0x10] sm:$0xff]  ;;  %v294_v15 = vld [vmem:[%s11346_s4 + $0x8] sm:$0xff] }
  0xc4   :  { %348 = vmatprep.subr.mxu0 %v304_v5  ;;  %v293_v16 = vld [vmem:[%s11346_s4] sm:$0xff]  ;;  %v9798_v18 = vld [vmem:[%s11347_s19 + $0x8] sm:$0xff] }
  0xc5   :  { %349 = vmatpush1.msra.mxu0 %v303_v6  ;;  %v9789_v17 = vld [vmem:[%s11347_s19] sm:$0xff]  ;;  %v9861_v41 = vld [vmem:[%s11348_s8 + $0x8] sm:$0xff] }
  0xc6   :  { %350 = vmatprep.subr.mxu0 %v302_v7  ;;  %v9850_v36 = vld [vmem:[%s11348_s8] sm:$0xff]  ;;  %v9867_v44 = vld [vmem:[%s11349_s15 + $0x8] sm:$0xff] }
  0xc7   :  { %351 = vmatpush1.msra.mxu0 %v301_v8  ;;  %v9855_v38 = vld [vmem:[%s11349_s15] sm:$0xff] }
  0xc8   :  { %352 = vmatprep.subr.mxu0 %v300_v9 }
  0xc9   :  { %353 = vmatpush1.msra.mxu0 %v299_v10 }
  0xca   :  { %354 = vmatprep.subr.mxu0 %v298_v11 }
  0xcb   :  { %355 = vmatpush1.msra.mxu0 %v297_v12 }
  0xcc   :  { %356 = vmatprep.subr.mxu0 %v296_v13 }
  0xcd   :  { %357 = vmatpush1.msra.mxu0 %v295_v14 }
  0xce   :  { %358 = vmatprep.subr.mxu0 %v294_v15 }
  0xcf   :  { %359 = vmatpush1.msra.mxu0 %v293_v16 }
  0xd0   :  { %7755 = vmatmul.mubr.msk.f32.vlgmr.msra.gmra.mxu0 %vm321_vm0, %v9789_v17  ;;  %8329 = vmatprep.subr.mxu0 %v9504_v0 }
  0xd1   :  { %398 = vmatprep.mubr.f32.mxu0 %v9504_v0 }
  0xd4   :  { %7756 = vmatmul.mubr.msk.f32.gmra.mxu0 %vm321_vm0, %v9798_v18 }
  0xd5   :  { %8331 = vmatprep.mubr.msk.f32.mxu0 %vm9505_vm1, %v9504_v0 }
 0x190   :  { %v394_v24 = vpop.f32.mrf.mxu0 }
 0x191   :  { %v9811_v25 = vadd.f32 %v394_v24, %v314_v23 }
 0x192   :  { %v396_v26 = vpop.f32.mrf.mxu0 }
 0x193   :  { %408 = vrot.lane.b32.xlu0 %v9811_v25, %s9506_s21  ;;  %v9823_v31 = vmul.f32 0.25, %v9811_v25  ;;  %v9839_v35 = vadd.f32 %v396_v26, %v9827_v32 }
 0x194   :  { %v400_v27 = vpop.f32.mrf.mxu0 }
 0x195   :  { %v9815_v28 = vadd.f32 %v400_v27, %v314_v23 }
 0x196   :  { %v402_v3 = vpop.f32.mrf.mxu0 }
 0x197   :  { %487 = vrot.lane.b32.xlu0 %v9815_v28, %s9506_s21  ;;  %v9835_v34 = vmul.f32 0.25, %v9815_v28  ;;  %v9889_v6 = vadd.f32 %v402_v3, %v9827_v32 }
 0x205   :  { %v409_v30 = vpop.permute.xlu0 %408 }
 0x206   :  { %8305 = vmatpush3.xpose.msk.msra.mxu1 %vm410_vm2, %v409_v30 }
 0x207   :  { %8309 = vmatprep.subr.mxu1 %v9504_v0 }
 0x209   :  { %v488_v33 = vpop.permute.xlu0 %487  ;;  %8307 = vmatmul.mubr.msk.f32.vlgmr.msra.gmra.mxu1 %vm410_vm2, %v9823_v31 }
 0x20a   :  { %8310 = vmatpush3.xpose.msk.msra.mxu1 %vm410_vm2, %v488_v33  ;;  %8311 = vmatprep.mubr.msk.f32.mxu1 %vm9505_vm1, %v9504_v0 }
 0x20b   :  { %8314 = vmatprep.subr.mxu1 %v9504_v0 }
 0x20d   :  { %8312 = vmatmul.mubr.msk.f32.vlgmr.msra.gmra.mxu1 %vm410_vm2, %v9835_v34 }
 0x20e   :  { %8315 = vmatpush3.msra.mxu1 %v9839_v35  ;;  %8316 = vmatprep.mubr.msk.f32.mxu1 %vm9505_vm1, %v9504_v0 }
 0x20f   :  { %8319 = vmatprep.subr.mxu1 %v9504_v0 }
 0x2c9   :  { %v482_v37 = vpop.f32.mrf.mxu1 }
 0x2ca   :  { %v564_v39 = vmul.f32 %v482_v37, %v9850_v36 }
 0x2cb   :  { %v8308_v40 = vpop.f32.mrf.mxu1 }
 0x2cc   :  { %v566_v42 = vadd.f32 %v564_v39, %v9855_v38 }
 0x2cd   :  { %v560_v43 = vpop.f32.mrf.mxu1 }
 0x2ce   :  { %v565_v45 = vmul.f32 %v560_v43, %v9861_v41  ;;  %v569_v46 = vsel %vm568_vm3, %v566_v42, -inf }
 0x2cf   :  { %570 = vmax.xlane.f32.xlu1 %v569_v46  ;;  %v8313_v47 = vpop.f32.mrf.mxu1 }
 0x2d0   :  { %v567_v48 = vadd.f32 %v565_v45, %v9867_v44 }
 0x2d2   :  { %v572_v49 = vsel %vm568_vm3, %v567_v48, -inf }
 0x2d3   :  { %573 = vmax.xlane.f32.xlu1 %v572_v49 }
 0x2e4   :  { %739 = vrot.lane.b32.xlu1 %v9811_v25, %s9507_s13 }
 0x2e8   :  { %817 = vrot.lane.b32.xlu1 %v9815_v28, %s9507_s13 }
 0x2ec   :  { %737 = vrot.lane.b32.xlu1 %v9823_v31, %s9508_s3 }
 0x358   :  { %v571_v50 = vpop.xlane.xlu1 %570 }
 0x359   :  { %v575_v51 = vsub.f32 %v566_v42, %v571_v50 }
 0x35b   :  { %v577_v52 = vmul.f32 1.442695, %v575_v51 }
 0x35c   :  { %v574_v53 = vpop.xlane.xlu1 %573 }
 0x35d   :  { %9000 = vpow2.f32 %v577_v52  ;;  %v576_v54 = vsub.f32 %v567_v48, %v574_v53 }
 0x35f   :  { %v579_v55 = vmul.f32 1.442695, %v576_v54 }
 0x360   :  { %v740_v56 = vpop.permute.xlu1 %739 }
 0x361   :  { %9002 = vpow2.f32 %v579_v55 }
 0x364   :  { %v818_v57 = vpop.permute.xlu1 %817 }
 0x365   :  { %8330 = vmatpush3.xpose.msk.msra.mxu0 %vm410_vm2, %v818_v57 }
 0x366   :  { %8339 = vmatprep.subr.mxu0 %v9504_v0 }
 0x368   :  { %v738_v62 = vpop.permute.xlu1 %737 }
 0x36a   :  { %v9001_v58 = vpop.eup %9000 }
 0x36b   :  { %v581_v59 = vsel %vm568_vm3, %v9001_v58, 0.0 }
 0x36c   :  { %582 = vadd.xlane.f32.xlu0 %v581_v59 }
 0x36e   :  { %v9003_v60 = vpop.eup %9002 }
 0x36f   :  { %v584_v61 = vsel %vm568_vm3, %v9003_v60, 0.0 }
 0x370   :  { %585 = vadd.xlane.f32.xlu1 %v584_v61 }
 0x381   :  { %815 = vrot.lane.b32.xlu1 %v9835_v34, %s9508_s3 }
 0x3f5   :  { %v583_v63 = vpop.xlane.xlu0 %582 }
 0x3f6   :  { %9004 = vrcp.f32 %v583_v63 }
 0x3f9   :  { %v586_v1 = vpop.xlane.xlu1 %585 }
 0x3fa   :  { %9006 = vrcp.f32 %v586_v1 }
 0x3fd   :  { %v816_v2 = vpop.permute.xlu1 %815 }
 0x3fe   :  { %8332 = vmatmul.mubr.msk.f32.vlgmr.msra.gmra.mxu0 %vm410_vm2, %v816_v2 }
 0x3ff   :  { %8341 = vmatprep.mubr.msk.f32.mxu0 %vm9505_vm1, %v9504_v0 }
 0x403   :  { %v9005_v4 = vpop.eup %9004 }
 0x404   :  { %v589_v5 = vmul.f32 %v9005_v4, %v9001_v58 }
 0x406   :  { %8317 = vmatmul.mubr.msk.f32.vlgmr.msra.gmra.mxu1 %vm568_vm3, %v589_v5 }
 0x407   :  { %v9007_v7 = vpop.eup %9006  ;;  %8320 = vmatpush3.msra.mxu1 %v9889_v6  ;;  %8321 = vmatprep.mubr.msk.f32.mxu1 %vm9505_vm1, %v9504_v0 }
 0x408   :  { %8324 = vmatprep.subr.mxu1 %v9504_v0  ;;  %v590_v8 = vmul.f32 %v9007_v7, %v9003_v60 }
 0x40a   :  { %8322 = vmatmul.mubr.msk.f32.vlgmr.msra.gmra.mxu1 %vm568_vm3, %v590_v8 }
 0x40b   :  { %8325 = vmatpush3.xpose.msk.msra.mxu1 %vm410_vm2, %v740_v56  ;;  %8326 = vmatprep.mubr.msk.f32.mxu1 %vm9505_vm1, %v9504_v0 }
 0x40c   :  { %8334 = vmatprep.subr.mxu1 %v9504_v0 }
 0x40e   :  { %8327 = vmatmul.mubr.msk.f32.vlgmr.msra.gmra.mxu1 %vm410_vm2, %v738_v62 }
 0x40f   :  { %8336 = vmatprep.mubr.msk.f32.mxu1 %vm9505_vm1, %v9504_v0 }
 0x4be   :  { %v889_v9 = vpop.f32.mrf.mxu0 }
 0x4bf   :  { %v894_v10 = vmul.f32 %v889_v9, %v9861_v41 }
 0x4c0   :  { %v8333_v11 = vpop.f32.mrf.mxu0 }
 0x4c1   :  { %v896_v12 = vadd.f32 %v894_v10, %v9867_v44 }
 0x4c3   :  { %v900_v13 = vsel %vm568_vm3, %v896_v12, -inf }
 0x4c4   :  { %901 = vmax.xlane.f32.xlu1 %v900_v13 }
 0x4c6   :  { %v9907_v14 = vpop.f32.mrf.mxu1 }
 0x4c8   :  { %v8318_v15 = vpop.f32.mrf.mxu1 }
 0x4ca   :  { %v9909_v16 = vpop.f32.mrf.mxu1 }
 0x4cc   :  { %v8323_v19 = vpop.f32.mrf.mxu1 }
 0x4ce   :  { %v811_v22 = vpop.f32.mrf.mxu1 }
 0x4cf   :  { %v893_v23 = vmul.f32 %v811_v22, %v9850_v36 }
 0x4d0   :  { %v8328_v24 = vpop.f32.mrf.mxu1 }
 0x4d1   :  { %v895_v26 = vadd.f32 %v893_v23, %v9855_v38 }
 0x4d3   :  { %v897_v27 = vsel %vm568_vm3, %v895_v26, -inf }
 0x4d4   :  { %898 = vmax.xlane.f32.xlu0 %v897_v27 }
 0x4d5   :  { %1153 = vrot.lane.b32.xlu1 %v9815_v28, %s9485_s30 }
 0x54d   :  { %v902_v30 = vpop.xlane.xlu1 %901 }
 0x54e   :  { %v904_v32 = vsub.f32 %v896_v12, %v902_v30 }
 0x550   :  { %v907_v33 = vmul.f32 1.442695, %v904_v32 }
 0x551   :  { %v1154_v52 = vpop.permute.xlu1 %1153 }
 0x552   :  { %9008 = vpow2.f32 %v907_v33 }
 0x55d   :  { %v899_v40 = vpop.xlane.xlu0 %898 }
 0x55e   :  { %v903_v42 = vsub.f32 %v895_v26, %v899_v40 }
 0x55f   :  { %v9009_v37 = vpop.eup %9008 }
 0x560   :  { %v912_v39 = vsel %vm568_vm3, %v9009_v37, 0.0  ;;  %v905_v43 = vmul.f32 1.442695, %v903_v42 }
 0x561   :  { %913 = vadd.xlane.f32.xlu0 %v912_v39 }
 0x562   :  { %9010 = vpow2.f32 %v905_v43 }
 0x56f   :  { %v9011_v45 = vpop.eup %9010 }
 0x570   :  { %v909_v46 = vsel %vm568_vm3, %v9011_v45, 0.0 }
 0x577   :  { %920 = vrot.lane.b32.xlu0 %v9839_v35, %s9508_s3 }
 0x57b   :  { %997 = vrot.lane.b32.xlu0 %v9889_v6, %s9508_s3 }
 0x57f   :  { %1075 = vrot.lane.b32.xlu0 %v9811_v25, %s9485_s30 }
 0x59e   :  { %910 = vadd.xlane.f32.xlu0 %v909_v46 }
 0x5b4   :  { %1073 = vrot.lane.b32.xlu0 %v9823_v31, %s9509_s10 }
 0x5b8   :  { %1151 = vrot.lane.b32.xlu0 %v9835_v34, %s9509_s10 }
 0x5ea   :  { %v914_v47 = vpop.xlane.xlu0 %913 }
 0x5eb   :  { %9012 = vrcp.f32 %v914_v47 }
 0x5ee   :  { %v921_v48 = vpop.permute.xlu0 %920 }
 0x5ef   :  { %8335 = vmatpush3.msra.mxu1 %v921_v48 }
 0x5f0   :  { %8344 = vmatprep.subr.mxu1 %v9504_v0 }
 0x5f2   :  { %v998_v49 = vpop.permute.xlu0 %997 }
 0x5f3   :  { %8340 = vmatpush3.msra.mxu0 %v998_v49 }
 0x5f4   :  { %8349 = vmatprep.subr.mxu0 %v9504_v0 }
 0x5f6   :  { %v1076_v53 = vpop.permute.xlu0 %1075 }
 0x5f8   :  { %v9013_v50 = vpop.eup %9012 }
 0x5f9   :  { %v918_v51 = vmul.f32 %v9013_v50, %v9009_v37 }
 0x5fb   :  { %8342 = vmatmul.mubr.msk.f32.vlgmr.msra.gmra.mxu0 %vm568_vm3, %v918_v51 }
 0x5fc   :  { %8350 = vmatpush3.xpose.msk.msra.mxu0 %vm410_vm2, %v1154_v52  ;;  %8351 = vmatprep.mubr.msk.f32.mxu0 %vm9505_vm1, %v9504_v0 }
 0x5fd   :  { %8359 = vmatprep.subr.mxu0 %v9504_v0 }
 0x627   :  { %v911_v54 = vpop.xlane.xlu0 %910 }
 0x628   :  { %9014 = vrcp.f32 %v911_v54 }
 0x62b   :  { %v1074_v55 = vpop.permute.xlu0 %1073 }
 0x62f   :  { %v1152_v56 = vpop.permute.xlu0 %1151 }
 0x630   :  { %8352 = vmatmul.mubr.msk.f32.vlgmr.msra.gmra.mxu0 %vm410_vm2, %v1152_v56 }
 0x631   :  { %8361 = vmatprep.mubr.msk.f32.mxu0 %vm9505_vm1, %v9504_v0 }
 0x635   :  { %v9015_v57 = vpop.eup %9014 }
 0x636   :  { %v917_v58 = vmul.f32 %v9015_v57, %v9011_v45 }
 0x638   :  { %8337 = vmatmul.mubr.msk.f32.vlgmr.msra.gmra.mxu1 %vm568_vm3, %v917_v58 }
 0x639   :  { %8345 = vmatpush3.xpose.msk.msra.mxu1 %vm410_vm2, %v1076_v53  ;;  %8346 = vmatprep.mubr.msk.f32.mxu1 %vm9505_vm1, %v9504_v0 }
 0x63a   :  { %8354 = vmatprep.subr.mxu1 %v9504_v0 }
 0x63c   :  { %8347 = vmatmul.mubr.msk.f32.vlgmr.msra.gmra.mxu1 %vm410_vm2, %v1074_v55 }
 0x63d   :  { %8356 = vmatprep.mubr.msk.f32.mxu1 %vm9505_vm1, %v9504_v0 }
 0x6bb   :  { %v9946_v59 = vpop.f32.mrf.mxu0 }
 0x6bd   :  { %v8343_v60 = vpop.f32.mrf.mxu0 }
 0x6f0   :  { %v1225_v61 = vpop.f32.mrf.mxu0 }
 0x6f1   :  { %v1230_v62 = vmul.f32 %v1225_v61, %v9861_v41 }
 0x6f2   :  { %v8353_v63 = vpop.f32.mrf.mxu0 }
 0x6f3   :  { %v1232_v1 = vadd.f32 %v1230_v62, %v9867_v44 }
 0x6f5   :  { %v1236_v2 = vsel %vm568_vm3, %v1232_v1, -inf }
 0x6f6   :  { %1237 = vmax.xlane.f32.xlu1 %v1236_v2 }
 0x6f8   :  { %v9951_v3 = vpop.f32.mrf.mxu1 }
 0x6fa   :  { %v8338_v4 = vpop.f32.mrf.mxu1 }
 0x6fc   :  { %v1147_v5 = vpop.f32.mrf.mxu1 }
 0x6fd   :  { %v1229_v7 = vmul.f32 %v1147_v5, %v9850_v36 }
 0x6fe   :  { %v8348_v8 = vpop.f32.mrf.mxu1 }
 0x6ff   :  { %v1231_v9 = vadd.f32 %v1229_v7, %v9855_v38 }
 0x701   :  { %v1233_v10 = vsel %vm568_vm3, %v1231_v9, -inf }
 0x702   :  { %1234 = vmax.xlane.f32.xlu0 %v1233_v10 }
 0x707   :  { %1331 = vrot.lane.b32.xlu1 %v9889_v6, %s9509_s10 }
 0x70b   :  { %1409 = vrot.lane.b32.xlu1 %v9811_v25, %s9489_s1 }
 0x70f   :  { %1407 = vrot.lane.b32.xlu1 %v9823_v31, %s9510_s23 }
 0x77f   :  { %v1238_v11 = vpop.xlane.xlu1 %1237 }
 0x780   :  { %v1240_v12 = vsub.f32 %v1232_v1, %v1238_v11  ;;  %v1778_v11 = vld [vmem:[%s11350_s17 + $0x28] sm:$0xff] }
 0x782   :  { %v1243_v13 = vmul.f32 1.442695, %v1240_v12  ;;  %v1777_v12 = vld [vmem:[%s11350_s17 + $0x20] sm:$0xff] }
 0x783   :  { %v1332_v15 = vpop.permute.xlu1 %1331 }
 0x784   :  { %9016 = vpow2.f32 %v1243_v13  ;;  %8360 = vmatpush3.msra.mxu0 %v1332_v15  ;;  %v1776_v13 = vld [vmem:[%s11350_s17 + $0x18] sm:$0xff]  ;;  %v1775_v15 = vld [vmem:[%s11350_s17 + $0x10] sm:$0xff] }
 0x785   :  { %8369 = vmatprep.subr.mxu0 %v9504_v0 }
 0x787   :  { %v1410_v40 = vpop.permute.xlu1 %1409 }
 0x78b   :  { %v1235_v25 = vpop.xlane.xlu0 %1234  ;;  %v1408_v43 = vpop.permute.xlu1 %1407 }
 0x78c   :  { %v1239_v23 = vsub.f32 %v1231_v9, %v1235_v25  ;;  %v1773_v25 = vld [vmem:[%s11350_s17] sm:$0xff] }
 0x78e   :  { %v1241_v24 = vmul.f32 1.442695, %v1239_v23 }
 0x790   :  { %9018 = vpow2.f32 %v1241_v24 }
 0x791   :  { %v9017_v19 = vpop.eup %9016 }
 0x792   :  { %v1248_v22 = vsel %vm568_vm3, %v9017_v19, 0.0 }
 0x793   :  { %1249 = vadd.xlane.f32.xlu0 %v1248_v22 }
 0x79d   :  { %v9019_v31 = vpop.eup %9018 }
 0x79e   :  { %v1245_v26 = vsel %vm568_vm3, %v9019_v31, 0.0 }
 0x7a9   :  { %1255 = vrot.lane.b32.xlu0 %v9839_v35, %s9509_s10 }
 0x7c8   :  { %1246 = vadd.xlane.f32.xlu0 %v1245_v26 }
 0x7de   :  { %1487 = vrot.lane.b32.xlu0 %v9815_v28, %s9489_s1 }
 0x7e2   :  { %1485 = vrot.lane.b32.xlu0 %v9835_v34, %s9510_s23 }
 0x81c   :  { %v1250_v27 = vpop.xlane.xlu0 %1249 }
 0x81d   :  { %9020 = vrcp.f32 %v1250_v27 }
 0x820   :  { %v1256_v30 = vpop.permute.xlu0 %1255 }
 0x821   :  { %8355 = vmatpush3.msra.mxu1 %v1256_v30 }
 0x822   :  { %8364 = vmatprep.subr.mxu1 %v9504_v0 }
 0x82a   :  { %v9021_v32 = vpop.eup %9020 }
 0x82b   :  { %v1254_v33 = vmul.f32 %v9021_v32, %v9017_v19  ;;  %v1774_v19 = vld [vmem:[%s11350_s17 + $0x8] sm:$0xff] }
 0x82d   :  { %8362 = vmatmul.mubr.msk.f32.vlgmr.msra.gmra.mxu0 %vm568_vm3, %v1254_v33 }
 0x82e   :  { %8371 = vmatprep.mubr.msk.f32.mxu0 %vm9505_vm1, %v9504_v0 }
 0x851   :  { %v1247_v37 = vpop.xlane.xlu0 %1246 }
 0x852   :  { %9022 = vrcp.f32 %v1247_v37 }
 0x855   :  { %v1488_v39 = vpop.permute.xlu0 %1487 }
 0x856   :  { %8370 = vmatpush3.xpose.msk.msra.mxu0 %vm410_vm2, %v1488_v39 }
 0x857   :  { %8379 = vmatprep.subr.mxu0 %v9504_v0 }
 0x859   :  { %v1486_v28 = vpop.permute.xlu0 %1485 }
 0x85a   :  { %8372 = vmatmul.mubr.msk.f32.vlgmr.msra.gmra.mxu0 %vm410_vm2, %v1486_v28 }
 0x85b   :  { %8381 = vmatprep.mubr.msk.f32.mxu0 %vm9505_vm1, %v9504_v0 }
 0x85f   :  { %v9023_v34 = vpop.eup %9022 }
 0x860   :  { %v1253_v42 = vmul.f32 %v9023_v34, %v9019_v31 }
 0x862   :  { %8357 = vmatmul.mubr.msk.f32.vlgmr.msra.gmra.mxu1 %vm568_vm3, %v1253_v42 }
 0x863   :  { %8365 = vmatpush3.xpose.msk.msra.mxu1 %vm410_vm2, %v1410_v40  ;;  %8366 = vmatprep.mubr.msk.f32.mxu1 %vm9505_vm1, %v9504_v0 }
 0x864   :  { %8374 = vmatprep.subr.mxu1 %v9504_v0 }
 0x866   :  { %8367 = vmatmul.mubr.msk.f32.vlgmr.msra.gmra.mxu1 %vm410_vm2, %v1408_v43 }
 0x867   :  { %8376 = vmatprep.mubr.msk.f32.mxu1 %vm9505_vm1, %v9504_v0 }
 0x8ed   :  { %v1403_v45 = vpop.f32.mrf.mxu0 }
 0x8ef   :  { %v8363_v46 = vpop.f32.mrf.mxu0 }
 0x91a   :  { %v1559_v47 = vpop.f32.mrf.mxu0 }
 0x91b   :  { %v1564_v48 = vmul.f32 %v1559_v47, %v9861_v41 }
 0x91c   :  { %v8373_v49 = vpop.f32.mrf.mxu0 }
 0x91d   :  { %v1566_v50 = vadd.f32 %v1564_v48, %v9867_v44 }
 0x91f   :  { %v1570_v51 = vsel %vm568_vm3, %v1566_v50, -inf }
 0x920   :  { %1571 = vmax.xlane.f32.xlu0 %v1570_v51 }
 0x922   :  { %v1327_v52 = vpop.f32.mrf.mxu1 }
 0x924   :  { %v8358_v53 = vpop.f32.mrf.mxu1 }
 0x926   :  { %v1481_v54 = vpop.f32.mrf.mxu1 }
 0x927   :  { %v1563_v55 = vmul.f32 %v1481_v54, %v9850_v36 }
 0x928   :  { %v8368_v56 = vpop.f32.mrf.mxu1 }
 0x929   :  { %v1565_v57 = vadd.f32 %v1563_v55, %v9855_v38 }
 0x92b   :  { %v1567_v58 = vsel %vm568_vm3, %v1565_v57, -inf }
 0x92c   :  { %1568 = vmax.xlane.f32.xlu1 %v1567_v58 }
 0x9a9   :  { %v1572_v60 = vpop.xlane.xlu0 %1571 }
 0x9aa   :  { %v1574_v61 = vsub.f32 %v1566_v50, %v1572_v60 }
 0x9ac   :  { %v1577_v41 = vmul.f32 1.442695, %v1574_v61  ;;  %v2033_v61 = vld [vmem:[%s11351_s2 + $0x38] sm:$0xff] }
 0x9ae   :  { %9024 = vpow2.f32 %v1577_v41  ;;  %v2032_v41 = vld [vmem:[%s11351_s2 + $0x30] sm:$0xff] }
 0x9b5   :  { %v1569_v62 = vpop.xlane.xlu1 %1568 }
 0x9b6   :  { %v1573_v44 = vsub.f32 %v1565_v57, %v1569_v62  ;;  %v2031_v62 = vld [vmem:[%s11351_s2 + $0x28] sm:$0xff] }
 0x9b8   :  { %v1575_v63 = vmul.f32 1.442695, %v1573_v44  ;;  %v2030_v44 = vld [vmem:[%s11351_s2 + $0x20] sm:$0xff] }
 0x9ba   :  { %9026 = vpow2.f32 %v1575_v63  ;;  %v2029_v63 = vld [vmem:[%s11351_s2 + $0x18] sm:$0xff] }
 0x9bb   :  { %v9025_v1 = vpop.eup %9024 }
 0x9bc   :  { %v1582_v2 = vsel %vm568_vm3, %v9025_v1, 0.0 }
 0x9bd   :  { %1583 = vadd.xlane.f32.xlu1 %v1582_v2  ;;  %v1936_v2 = vld [vmem:[%s11352_s0 + $0x30] sm:$0xff] }
 0x9c7   :  { %v9027_v4 = vpop.eup %9026 }
 0x9c8   :  { %v1579_v36 = vsel %vm568_vm3, %v9027_v4, 0.0 }
 0x9c9   :  { %1580 = vadd.xlane.f32.xlu0 %v1579_v36  ;;  %v1935_v36 = vld [vmem:[%s11352_s0 + $0x28] sm:$0xff] }
 0x9ce   :  { %1665 = vrot.lane.b32.xlu1 %v9889_v6, %s9510_s23 }
 0x9d2   :  { %1743 = vrot.lane.b32.xlu1 %v9951_v3, %s9489_s1 }
 0x9d6   :  { %1751 = vrot.lane.b32.xlu1 %v1327_v52, %s9485_s30 }
 0x9df   :  { %1589 = vrot.lane.b32.xlu0 %v9839_v35, %s9510_s23  ;;  %v1780_v35 = vld [vmem:[%s11350_s17 + $0x38] sm:$0xff] }
 0x9e3   :  { %1745 = vrot.lane.b32.xlu0 %v9946_v59, %s9489_s1  ;;  %v1779_v59 = vld [vmem:[%s11350_s17 + $0x30] sm:$0xff] }
 0x9e7   :  { %1753 = vrot.lane.b32.xlu0 %v1403_v45, %s9485_s30  ;;  %v7781_v45 = vld [vmem:[#allocation6] ss:$0 sm:$0xff] }
 0xa46   :  { %v1584_v38 = vpop.xlane.xlu1 %1583 }
 0xa47   :  { %9028 = vrcp.f32 %v1584_v38  ;;  %v2027_v38 = vld [vmem:[%s11351_s2 + $0x8] sm:$0xff] }
 0xa4a   :  { %v1666_v5 = vpop.permute.xlu1 %1665 }
 0xa4b   :  { %8380 = vmatpush3.msra.mxu0 %v1666_v5  ;;  %v281_v5 = vld [vmem:[#allocation2] sm:$0xff] }
 0xa4e   :  { %v1744_v27 = vpop.permute.xlu1 %1743 }
 0xa4f   :  { %v1765_v33 = vsel %vm410_vm2, %v9907_v14, %v1744_v27 }
 0xa52   :  { %v1581_v7 = vpop.xlane.xlu0 %1580  ;;  %v1752_v32 = vpop.permute.xlu1 %1751 }
 0xa53   :  { %9030 = vrcp.f32 %v1581_v7  ;;  %v1768_v39 = vsel %vm1767_vm4, %v1765_v33, %v1752_v32  ;;  %v1934_v7 = vld [vmem:[%s11352_s0 + $0x20] sm:$0xff] }
 0xa54   :  { %v9029_v6 = vpop.eup %9028 }
 0xa55   :  { %v1588_v8 = vmul.f32 %v9029_v6, %v9025_v1  ;;  %v1937_v1 = vld [vmem:[%s11352_s0 + $0x38] sm:$0xff]  ;;  %v2026_v6 = vld [vmem:[%s11351_s2] sm:$0xff] }
 0xa56   :  { %v1590_v9 = vpop.permute.xlu0 %1589  ;;  %8403 = vmatprep.subr.mxu0 %v1937_v1 }
 0xa57   :  { %8375 = vmatpush3.msra.mxu1 %v1590_v9  ;;  %8382 = vmatmul.mubr.msk.f32.vlgmr.msra.gmra.mxu0 %vm568_vm3, %v1588_v8  ;;  %v1933_v8 = vld [vmem:[%s11352_s0 + $0x18] sm:$0xff]  ;;  %v282_v9 = vld [vmem:[#allocation2 + $0x8] sm:$0xff] }
 0xa58   :  { %8384 = vmatprep.subr.mxu1 %v1780_v35  ;;  %8404 = vmatpush3.msra.mxu0 %v1937_v1  ;;  %v10171_v1 = vld [vmem:[%s11354_s29 + $0x8] sm:$0xff] }
 0xa59   :  { %8405 = vmatprep.subr.mxu0 %v1936_v2 }
 0xa5a   :  { %v1746_v26 = vpop.permute.xlu0 %1745  ;;  %8406 = vmatpush3.msra.mxu0 %v1936_v2 }
 0xa5b   :  { %v1766_v28 = vsel %vm410_vm2, %v9909_v16, %v1746_v26  ;;  %8407 = vmatprep.subr.mxu0 %v1935_v36 }
 0xa5c   :  { %8408 = vmatpush3.msra.mxu0 %v1935_v36 }
 0xa5d   :  { %8409 = vmatprep.subr.mxu0 %v1934_v7 }
 0xa5e   :  { %v1754_v30 = vpop.permute.xlu0 %1753  ;;  %8410 = vmatpush3.msra.mxu0 %v1934_v7 }
 0xa5f   :  { %v1769_v40 = vsel %vm1767_vm4, %v1766_v28, %v1754_v30  ;;  %8411 = vmatprep.subr.mxu0 %v1933_v8 }
 0xa60   :  { %v9031_v3 = vpop.eup %9030  ;;  %8412 = vmatpush3.msra.mxu0 %v1933_v8 }
 0xa61   :  { %v1587_v10 = vmul.f32 %v9031_v3, %v9027_v4  ;;  %v2028_v4 = vld [vmem:[%s11351_s2 + $0x10] sm:$0xff] }
 0xa62   :  { %v283_v3 = vld [vmem:[#allocation2 + $0x10] sm:$0xff] }
 0xa63   :  { %8377 = vmatmul.mubr.msk.f32.vlgmr.msra.gmra.mxu1 %vm568_vm3, %v1587_v10  ;;  %v1932_v10 = vld [vmem:[%s11352_s0 + $0x10] sm:$0xff] }
 0xa64   :  { %8385 = vmatpush3.msra.mxu1 %v1780_v35  ;;  %v1931_v35 = vld [vmem:[%s11352_s0 + $0x8] sm:$0xff]  ;;  %8413 = vmatprep.subr.mxu0 %v1932_v10 }
 0xa65   :  { %8386 = vmatprep.subr.mxu1 %v1779_v59  ;;  %8414 = vmatpush3.msra.mxu0 %v1932_v10 }
 0xa66   :  { %8387 = vmatpush3.msra.mxu1 %v1779_v59  ;;  %v284_v59 = vld [vmem:[#allocation2 + $0x18] sm:$0xff]  ;;  %8415 = vmatprep.subr.mxu0 %v1931_v35 }
 0xa67   :  { %8388 = vmatprep.subr.mxu1 %v1778_v11  ;;  %8416 = vmatpush3.msra.mxu0 %v1931_v35 }
 0xa68   :  { %8389 = vmatpush3.msra.mxu1 %v1778_v11  ;;  %v1930_v11 = vld [vmem:[%s11352_s0] sm:$0xff] }
 0xa69   :  { %8390 = vmatprep.subr.mxu1 %v1777_v12  ;;  %8417 = vmatprep.subr.mxu0 %v1930_v11 }
 0xa6a   :  { %8391 = vmatpush3.msra.mxu1 %v1777_v12  ;;  %8418 = vmatpush3.msra.mxu0 %v1930_v11 }
 0xa6b   :  { %8392 = vmatprep.subr.mxu1 %v1776_v13  ;;  %8451 = vmatprep.subr.mxu0 %v9504_v0 }
 0xa6c   :  { %8393 = vmatpush3.msra.mxu1 %v1776_v13 }
 0xa6d   :  { %8394 = vmatprep.subr.mxu1 %v1775_v15 }
 0xa6e   :  { %8395 = vmatpush3.msra.mxu1 %v1775_v15 }
 0xa6f   :  { %8396 = vmatprep.subr.mxu1 %v1774_v19 }
 0xa70   :  { %8397 = vmatpush3.msra.mxu1 %v1774_v19 }
 0xa71   :  { %8398 = vmatprep.subr.mxu1 %v1773_v25 }
 0xa72   :  { %8399 = vmatpush3.msra.mxu1 %v1773_v25 }
 0xa73   :  { %8422 = vmatprep.subr.mxu1 %v2033_v61 }
 0xb17   :  { %v1737_v22 = vpop.f32.mrf.mxu0 }
 0xb18   :  { %1761 = vrot.lane.b32.xlu0 %v1737_v22, %s9507_s13 }
 0xb19   :  { %v8383_v23 = vpop.f32.mrf.mxu0 }
 0xb23   :  { %v1661_v24 = vpop.f32.mrf.mxu1 }
 0xb24   :  { %1759 = vrot.lane.b32.xlu1 %v1661_v24, %s9507_s13 }
 0xb25   :  { %v8378_v31 = vpop.f32.mrf.mxu1 }
 0xb8a   :  { %v1762_v37 = vpop.permute.xlu0 %1761 }
 0xb8b   :  { %v1772_v43 = vsel %vm1770_vm5, %v1769_v40, %v1762_v37  ;;  %v7784_v40 = vld [vmem:[#allocation15] ss:$0 sm:$0xff] }
 0xb96   :  { %v1760_v34 = vpop.permute.xlu1 %1759 }
 0xb97   :  { %v1771_v42 = vsel %vm1770_vm5, %v1768_v39, %v1760_v34 }
 0xb98   :  { %8400 = vmatprep.mubr.msk.f32.mxu1 %vm321_vm0, %v1771_v42 }
 0xb99   :  { %8401 = vmatmul.mubr.msk.f32.vlgmr.msra.gmra.mxu1 %vm321_vm0, %v1772_v43 }
 0xb9a   :  { %8423 = vmatpush3.msra.mxu1 %v2033_v61  ;;  %8438 = vmatprep.mubr.msk.f32.mxu1 %vm321_vm0, %v281_v5 }
 0xb9b   :  { %8424 = vmatprep.subr.mxu1 %v2032_v41 }
 0xb9c   :  { %8425 = vmatpush3.msra.mxu1 %v2032_v41 }
 0xb9d   :  { %8426 = vmatprep.subr.mxu1 %v2031_v62 }
 0xb9e   :  { %8427 = vmatpush3.msra.mxu1 %v2031_v62  ;;  %v10161_v62 = vld [vmem:[%s11353_s5 + $0x8] sm:$0xff] }
 0xb9f   :  { %8428 = vmatprep.subr.mxu1 %v2030_v44 }
 0xba0   :  { %8429 = vmatpush3.msra.mxu1 %v2030_v44 }
 0xba1   :  { %8430 = vmatprep.subr.mxu1 %v2029_v63 }
 0xba2   :  { %8431 = vmatpush3.msra.mxu1 %v2029_v63  ;;  %v10166_v63 = vld [vmem:[%s11353_s5] sm:$0xff] }
 0xba3   :  { %8432 = vmatprep.subr.mxu1 %v2028_v4 }
 0xba4   :  { %8433 = vmatpush3.msra.mxu1 %v2028_v4 }
 0xba5   :  { %8434 = vmatprep.subr.mxu1 %v2027_v38 }
 0xba6   :  { %8435 = vmatpush3.msra.mxu1 %v2027_v38  ;;  %v10177_v38 = vld [vmem:[%s11354_s29] sm:$0xff] }
 0xba7   :  { %8436 = vmatprep.subr.mxu1 %v2026_v6 }
 0xba8   :  { %8437 = vmatpush3.msra.mxu1 %v2026_v6 }
 0xba9   :  { %8439 = vmatmul.mubr.msk.f32.vlgmr.msra.gmra.mxu1 %vm321_vm0, %v282_v9  ;;  %8444 = vmatprep.subr.mxu1 %v9504_v0 }
 0xbaa   :  { %8441 = vmatprep.mubr.msk.f32.mxu1 %vm321_vm0, %v283_v3 }
 0xbad   :  { %8442 = vmatmul.mubr.msk.f32.gmra.mxu1 %vm321_vm0, %v284_v59 }
 0xbae   :  { %8448 = vmatprep.mubr.msk.f32.mxu1 %vm9505_vm1, %v9504_v0 }
 0xc59   :  { %v8402_v14 = vpop.f32.mrf.mxu1 }
 0xc5a   :  { %v1866_v46 = vadd.f32 %v8402_v14, %v7781_v45  ;;  %v7785_v14 = vld [vmem:[#allocation16] ss:$0 sm:$0xff] }
 0xc5b   :  { %v1860_v47 = vpop.f32.mrf.mxu1 }
 0xc5c   :  { %v1861_v48 = vadd.f32 %v7781_v45, %v1860_v47  ;;  %v1870_v49 = vadd.f32 %v1866_v46, %v9798_v18 }
 0xc5e   :  { %v1876_v16 = vsel %vm321_vm0, %v1870_v49, 0.0  ;;  %v1869_v50 = vadd.f32 %v1861_v48, %v9789_v17 }
 0xc5f   :  { %1877 = vadd.xlane.f32.xlu0 %v1876_v16 }
 0xc60   :  { %v1873_v51 = vsel %vm321_vm0, %v1869_v50, 0.0 }
 0xc61   :  { %1874 = vadd.xlane.f32.xlu1 %v1873_v51 }
 0xc69   :  { %v8440_v16 = vpop.f32.mrf.mxu1 }
 0xc6b   :  { %v2119_v51 = vpop.f32.mrf.mxu1 }
 0xce8   :  { %v1878_v52 = vpop.xlane.xlu0 %1877 }
 0xce9   :  { %v1881_v53 = vmul.f32 0.015625, %v1878_v52 }
 0xcea   :  { %v1875_v54 = vpop.xlane.xlu1 %1874 }
 0xceb   :  { %v10048_v55 = vsub.f32 %v1870_v49, %v1881_v53  ;;  %v1880_v56 = vmul.f32 0.015625, %v1875_v54  ;;  %v7789_v49 = vld [vmem:[#allocation9] ss:$0 sm:$0xff]  ;;  %v8443_v53 = vpop.f32.mrf.mxu1 }
 0xcec   :  { %v10128_v52 = vadd.f32 %v7789_v49, %v2119_v51  ;;  %v10133_v54 = vadd.f32 %v8443_v53, %v7789_v49 }
 0xced   :  { %v10050_v57 = vsub.f32 %v1869_v50, %v1880_v56  ;;  %v1885_v58 = vmul.f32 %v10048_v55, %v10048_v55  ;;  %v10126_v50 = vadd.f32 %v8440_v16, %v7789_v49 }
 0xcef   :  { %v1889_v18 = vsel %vm321_vm0, %v1885_v58, 0.0  ;;  %v1884_v17 = vmul.f32 %v10050_v57, %v10050_v57  ;;  %8445 = vmatpush3.xpose.msk.msra.mxu1 %vm410_vm2, %v10126_v50 }
 0xcf0   :  { %1890 = vadd.xlane.f32.xlu1 %v1889_v18  ;;  %8446 = vmatprep.subr.mxu1 %v9504_v0 }
 0xcf1   :  { %v1886_v60 = vsel %vm321_vm0, %v1884_v17, 0.0 }
 0xcf2   :  { %1887 = vadd.xlane.f32.xlu0 %v1886_v60 }
 0xcf3   :  { %8447 = vmatpush3.xpose.msk.msra.mxu1 %vm410_vm2, %v10128_v52 }
 0xcf4   :  { %8465 = vmatprep.subr.mxu1 %v9504_v0 }
 0xd79   :  { %v1891_v12 = vpop.xlane.xlu1 %1890 }
 0xd7a   :  { %v1893_v13 = vmul.f32 0.015625, %v1891_v12 }
 0xd7b   :  { %v1888_v15 = vpop.xlane.xlu0 %1887 }
 0xd7c   :  { %v1895_v19 = vadd.f32 1e-12, %v1893_v13  ;;  %v1892_v22 = vmul.f32 0.015625, %v1888_v15 }
 0xd7e   :  { %9032 = vrsqrt.f32 %v1895_v19  ;;  %v1894_v25 = vadd.f32 1e-12, %v1892_v22  ;;  %vm1905_vm6 = vcmp.eq.f32.partialorder %v1895_v19, inf  ;;  %v1908_v31 = vand.u32 2147483648, %v1895_v19 }
 0xd7f   :  { %vm1907_vm7 = vcmp.eq.f32.partialorder %v1895_v19, 0.0 }
 0xd80   :  { %9034 = vrsqrt.f32 %v1894_v25  ;;  %vm1898_vm8 = vcmp.eq.f32.partialorder %v1894_v25, inf  ;;  %v1901_v33 = vand.u32 2147483648, %v1894_v25  ;;  %vm1900_vm9 = vcmp.eq.f32.partialorder %v1894_v25, 0.0 }
 0xd8b   :  { %v9033_v23 = vpop.eup %9032 }
 0xd8c   :  { %v1904_v24 = vmul.f32 %v9033_v23, %v1895_v19 }
 0xd8d   :  { %v9035_v26 = vpop.eup %9034 }
 0xd8e   :  { %v1906_v27 = vsel %vm1905_vm6, %v1895_v19, %v1904_v24  ;;  %v1897_v32 = vmul.f32 %v9035_v26, %v1894_v25 }
 0xd8f   :  { %v1909_v30 = vsel %vm1907_vm7, %v1908_v31, %v1906_v27 }
 0xd90   :  { %9036 = vrcp.f32 %v1909_v30  ;;  %v1899_v37 = vsel %vm1898_vm8, %v1894_v25, %v1897_v32 }
 0xd91   :  { %v1902_v39 = vsel %vm1900_vm9, %v1901_v33, %v1899_v37 }
 0xd92   :  { %9038 = vrcp.f32 %v1902_v39 }
 0xd9d   :  { %v9037_v28 = vpop.eup %9036 }
 0xd9e   :  { %v1913_v34 = vmul.f32 %v9037_v28, %v10048_v55  ;;  %v2129_v55 = vpop.f32.mrf.mxu1 }
 0xd9f   :  { %v9039_v42 = vpop.eup %9038  ;;  %v10139_v56 = vadd.f32 %v7789_v49, %v2129_v55 }
 0xda0   :  { %v1911_v43 = vmul.f32 %v9039_v42, %v10050_v57  ;;  %v1921_v45 = vmul.f32 %v7784_v40, %v1913_v34  ;;  %v7786_v57 = vld [vmem:[#allocation7] ss:$0 sm:$0xff] }
 0xda2   :  { %v1920_v46 = vmul.f32 %v7784_v40, %v1911_v43  ;;  %v10118_v48 = vadd.f32 %v7785_v14, %v1921_v45 }
 0xda4   :  { %v10116_v47 = vadd.f32 %v7785_v14, %v1920_v46 }
 0xda6   :  { %8419 = vmatprep.mubr.msk.f32.mxu0 %vm321_vm0, %v10116_v47 }
 0xda7   :  { %8420 = vmatmul.mubr.msk.f32.vlgmr.msra.gmra.mxu0 %vm321_vm0, %v10118_v48 }
 0xda8   :  { %8455 = vmatprep.mubr.msk.f32.mxu0 %vm9505_vm1, %v9504_v0  ;;  %8452 = vmatpush3.xpose.msk.msra.mxu0 %vm410_vm2, %v10133_v54 }
 0xda9   :  { %8453 = vmatprep.subr.mxu0 %v9504_v0 }
 0xdac   :  { %8454 = vmatpush3.xpose.msk.msra.mxu0 %vm410_vm2, %v10139_v56 }
 0xdad   :  { %8458 = vmatprep.subr.mxu0 %v9504_v0 }
 0xe67   :  { %v8421_v58 = vpop.f32.mrf.mxu0 }
 0xe68   :  { %v2023_v18 = vadd.f32 %v8421_v58, %v7786_v57 }
 0xe69   :  { %v2017_v17 = vpop.f32.mrf.mxu0 }
 0xe6a   :  { %v10146_v60 = vmul.f32 0.25, %v2023_v18  ;;  %v2018_v61 = vadd.f32 %v7786_v57, %v2017_v17 }
 0xe6c   :  { %v10148_v41 = vmul.f32 0.25, %v2018_v61  ;;  %8456 = vmatmul.mubr.msk.f32.vlgmr.msra.gmra.mxu0 %vm410_vm2, %v10146_v60 }
 0xe6d   :  { %8462 = vmatprep.mubr.msk.f32.mxu0 %vm9505_vm1, %v9504_v0 }
 0xe6e   :  { %8449 = vmatmul.mubr.msk.f32.vlgmr.msra.gmra.mxu1 %vm410_vm2, %v10148_v41 }
 0xe6f   :  { %8469 = vmatprep.mubr.msk.f32.mxu1 %vm9505_vm1, %v9504_v0 }
 0xf2c   :  { %v2294_v44 = vpop.f32.mrf.mxu0 }
 0xf2d   :  { %v2299_v2 = vmul.f32 %v2294_v44, %v10161_v62 }
 0xf2e   :  { %v2215_v4 = vpop.f32.mrf.mxu1  ;;  %v8457_v36 = vpop.f32.mrf.mxu0 }
 0xf2f   :  { %v2298_v5 = vmul.f32 %v2215_v4, %v10166_v63  ;;  %v2301_v7 = vadd.f32 %v2299_v2, %v10171_v1 }
 0xf30   :  { %v8450_v6 = vpop.f32.mrf.mxu1 }
 0xf31   :  { %v2305_v8 = vsel %vm410_vm2, %v2301_v7, -inf  ;;  %v2300_v9 = vadd.f32 %v2298_v5, %v10177_v38 }
 0xf32   :  { %2306 = vmax.xlane.f32.xlu1 %v2305_v8 }
 0xf33   :  { %v2302_v3 = vsel %vm410_vm2, %v2300_v9, -inf }
 0xf34   :  { %2303 = vmax.xlane.f32.xlu0 %v2302_v3 }
 0xf43   :  { %2405 = vrot.lane.b32.xlu1 %v10133_v54, %s9506_s21 }
 0xf47   :  { %2324 = vrot.lane.b32.xlu1 %v10128_v52, %s9506_s21 }
 0xf4a   :  { %2326 = vrot.lane.b32.xlu0 %v10126_v50, %s9506_s21 }
 0xf4b   :  { %2486 = vrot.lane.b32.xlu1 %v10126_v50, %s9508_s3 }
 0xf4e   :  { %2403 = vrot.lane.b32.xlu0 %v10139_v56, %s9506_s21 }
 0xfbb   :  { %v2307_v10 = vpop.xlane.xlu1 %2306 }
 0xfbc   :  { %v2309_v35 = vsub.f32 %v2301_v7, %v2307_v10 }
 0xfbd   :  { %v2304_v59 = vpop.xlane.xlu0 %2303 }
 0xfbe   :  { %v2312_v11 = vmul.f32 1.442695, %v2309_v35  ;;  %v2308_v12 = vsub.f32 %v2300_v9, %v2304_v59 }
 0xfbf   :  { %v2406_v13 = vpop.permute.xlu1 %2405 }
 0xfc0   :  { %9040 = vpow2.f32 %v2312_v11  ;;  %v2310_v15 = vmul.f32 1.442695, %v2308_v12  ;;  %8466 = vmatpush3.msra.mxu1 %v2406_v13 }
 0xfc1   :  { %v2327_v19 = vpop.permute.xlu0 %2326  ;;  %8467 = vmatprep.subr.mxu1 %v9504_v0 }
 0xfc2   :  { %9042 = vpow2.f32 %v2310_v15  ;;  %8459 = vmatpush3.msra.mxu0 %v2327_v19 }
 0xfc3   :  { %v2325_v22 = vpop.permute.xlu1 %2324  ;;  %8460 = vmatprep.subr.mxu0 %v9504_v0 }
 0xfc4   :  { %8461 = vmatpush3.msra.mxu0 %v2325_v22 }
 0xfc5   :  { %v2404_v25 = vpop.permute.xlu0 %2403  ;;  %8472 = vmatprep.subr.mxu0 %v9504_v0 }
 0xfc6   :  { %8468 = vmatpush3.msra.mxu1 %v2404_v25 }
 0xfc7   :  { %8479 = vmatprep.subr.mxu1 %v9504_v0  ;;  %v2487_v27 = vpop.permute.xlu1 %2486 }
 0xfcd   :  { %v9041_v23 = vpop.eup %9040 }
 0xfce   :  { %v2317_v24 = vsel %vm410_vm2, %v9041_v23, 0.0 }
 0xfcf   :  { %v9043_v31 = vpop.eup %9042  ;;  %2318 = vadd.xlane.f32.xlu1 %v2317_v24 }
 0xfd0   :  { %v2314_v26 = vsel %vm410_vm2, %v9043_v31, 0.0 }
 0xfd1   :  { %2315 = vadd.xlane.f32.xlu0 %v2314_v26 }
 0xfe0   :  { %2484 = vrot.lane.b32.xlu1 %v10128_v52, %s9508_s3 }
 0xfe4   :  { %2482 = vrot.lane.b32.xlu1 %v10148_v41, %s9508_s3 }
 0xfe7   :  { %2568 = vrot.lane.b32.xlu0 %v10133_v54, %s9508_s3 }
 0xfeb   :  { %2566 = vrot.lane.b32.xlu0 %v10139_v56, %s9508_s3 }
 0xfef   :  { %2564 = vrot.lane.b32.xlu0 %v10146_v60, %s9508_s3 }
0x1058   :  { %v2319_v30 = vpop.xlane.xlu1 %2318 }
0x1059   :  { %9044 = vrcp.f32 %v2319_v30 }
0x105a   :  { %v2316_v32 = vpop.xlane.xlu0 %2315 }
0x105b   :  { %9046 = vrcp.f32 %v2316_v32 }
0x105c   :  { %v2485_v42 = vpop.permute.xlu1 %2484 }
0x105e   :  { %v2569_v33 = vpop.permute.xlu0 %2568 }
0x1060   :  { %v2483_v45 = vpop.permute.xlu1 %2482 }
0x1062   :  { %v2567_v40 = vpop.permute.xlu0 %2566 }
0x1066   :  { %v9045_v37 = vpop.eup %9044  ;;  %v2565_v43 = vpop.permute.xlu0 %2564 }
0x1067   :  { %v2323_v39 = vmul.f32 %v9045_v37, %v9041_v23 }
0x1068   :  { %v9047_v28 = vpop.eup %9046 }
0x1069   :  { %8470 = vmatmul.mubr.msk.f32.vlgmr.msra.gmra.mxu1 %vm410_vm2, %v2323_v39  ;;  %v2322_v34 = vmul.f32 %v9047_v28, %v9043_v31 }
0x106a   :  { %8480 = vmatpush3.xpose.msk.msra.mxu1 %vm410_vm2, %v2569_v33  ;;  %8483 = vmatprep.mubr.msk.f32.mxu1 %vm9505_vm1, %v9504_v0 }
0x106b   :  { %8463 = vmatmul.mubr.msk.f32.vlgmr.msra.gmra.mxu0 %vm410_vm2, %v2322_v34  ;;  %8481 = vmatprep.subr.mxu1 %v9504_v0 }
0x106c   :  { %8473 = vmatpush3.xpose.msk.msra.mxu0 %vm410_vm2, %v2487_v27  ;;  %8476 = vmatprep.mubr.msk.f32.mxu0 %vm9505_vm1, %v9504_v0 }
0x106d   :  { %8474 = vmatprep.subr.mxu0 %v9504_v0 }
0x106e   :  { %8482 = vmatpush3.xpose.msk.msra.mxu1 %vm410_vm2, %v2567_v40 }
0x106f   :  { %8493 = vmatprep.subr.mxu1 %v9504_v0 }
0x1070   :  { %8475 = vmatpush3.xpose.msk.msra.mxu0 %vm410_vm2, %v2485_v42 }
0x1071   :  { %8484 = vmatmul.mubr.msk.f32.vlgmr.msra.gmra.mxu1 %vm410_vm2, %v2565_v43  ;;  %8486 = vmatprep.subr.mxu0 %v9504_v0 }
0x1072   :  { %8497 = vmatprep.mubr.msk.f32.mxu1 %vm9505_vm1, %v9504_v0 }
0x1073   :  { %8477 = vmatmul.mubr.msk.f32.vlgmr.msra.gmra.mxu0 %vm410_vm2, %v2483_v45 }
0x1074   :  { %8490 = vmatprep.mubr.msk.f32.mxu0 %vm9505_vm1, %v9504_v0 }
0x1129   :  { %v10230_v14 = vpop.f32.mrf.mxu1 }
0x112b   :  { %v10232_v46 = vpop.f32.mrf.mxu0  ;;  %v8471_v49 = vpop.f32.mrf.mxu1 }
0x112d   :  { %v8464_v16 = vpop.f32.mrf.mxu0 }
0x1131   :  { %v2642_v51 = vpop.f32.mrf.mxu1 }
0x1132   :  { %v2647_v53 = vmul.f32 %v2642_v51, %v10161_v62 }
0x1133   :  { %v2560_v55 = vpop.f32.mrf.mxu0  ;;  %v8485_v57 = vpop.f32.mrf.mxu1 }
0x1134   :  { %v2646_v58 = vmul.f32 %v2560_v55, %v10166_v63  ;;  %v2649_v18 = vadd.f32 %v2647_v53, %v10171_v1 }
0x1135   :  { %v8478_v17 = vpop.f32.mrf.mxu0 }
0x1136   :  { %v2653_v61 = vsel %vm410_vm2, %v2649_v18, -inf  ;;  %v2648_v44 = vadd.f32 %v2646_v58, %v10177_v38 }
0x1137   :  { %2654 = vmax.xlane.f32.xlu0 %v2653_v61 }
0x1138   :  { %v2650_v2 = vsel %vm410_vm2, %v2648_v44, -inf }
0x1139   :  { %2651 = vmax.xlane.f32.xlu1 %v2650_v2 }
0x114a   :  { %2753 = vrot.lane.b32.xlu1 %v10133_v54, %s9507_s13 }
0x114d   :  { %2674 = vrot.lane.b32.xlu0 %v10126_v50, %s9507_s13 }
0x114e   :  { %2672 = vrot.lane.b32.xlu1 %v10128_v52, %s9507_s13 }
0x1151   :  { %2751 = vrot.lane.b32.xlu0 %v10139_v56, %s9507_s13 }
0x1152   :  { %2834 = vrot.lane.b32.xlu1 %v10126_v50, %s9509_s10 }
0x11c0   :  { %v2655_v4 = vpop.xlane.xlu0 %2654 }
0x11c1   :  { %v2657_v36 = vsub.f32 %v2649_v18, %v2655_v4 }
0x11c2   :  { %v2652_v5 = vpop.xlane.xlu1 %2651 }
0x11c3   :  { %v2660_v7 = vmul.f32 1.442695, %v2657_v36  ;;  %v2656_v6 = vsub.f32 %v2648_v44, %v2652_v5 }
0x11c4   :  { %v2675_v8 = vpop.permute.xlu0 %2674 }
0x11c5   :  { %9048 = vpow2.f32 %v2660_v7  ;;  %v2658_v9 = vmul.f32 1.442695, %v2656_v6  ;;  %8487 = vmatpush3.msra.mxu0 %v2675_v8 }
0x11c6   :  { %v2754_v3 = vpop.permute.xlu1 %2753  ;;  %8488 = vmatprep.subr.mxu0 %v9504_v0 }
0x11c7   :  { %9050 = vpow2.f32 %v2658_v9  ;;  %8494 = vmatpush3.msra.mxu1 %v2754_v3 }
0x11c8   :  { %8495 = vmatprep.subr.mxu1 %v9504_v0  ;;  %v2752_v10 = vpop.permute.xlu0 %2751 }
0x11c9   :  { %8496 = vmatpush3.msra.mxu1 %v2752_v10 }
0x11ca   :  { %v2673_v35 = vpop.permute.xlu1 %2672  ;;  %8507 = vmatprep.subr.mxu1 %v9504_v0 }
0x11cb   :  { %8489 = vmatpush3.msra.mxu0 %v2673_v35 }
0x11cc   :  { %8500 = vmatprep.subr.mxu0 %v9504_v0 }
0x11ce   :  { %v2835_v15 = vpop.permute.xlu1 %2834 }
0x11d2   :  { %v9049_v59 = vpop.eup %9048 }
0x11d3   :  { %v2665_v11 = vsel %vm410_vm2, %v9049_v59, 0.0 }
0x11d4   :  { %v9051_v12 = vpop.eup %9050  ;;  %2666 = vadd.xlane.f32.xlu1 %v2665_v11 }
0x11d5   :  { %v2662_v13 = vsel %vm410_vm2, %v9051_v12, 0.0 }
0x11d6   :  { %2663 = vadd.xlane.f32.xlu0 %v2662_v13 }
0x11e5   :  { %2832 = vrot.lane.b32.xlu1 %v10128_v52, %s9509_s10 }
0x11e9   :  { %2830 = vrot.lane.b32.xlu1 %v10148_v41, %s9509_s10 }
0x11ec   :  { %2916 = vrot.lane.b32.xlu0 %v10133_v54, %s9509_s10 }
0x11f0   :  { %2914 = vrot.lane.b32.xlu0 %v10139_v56, %s9509_s10 }
0x11f4   :  { %2912 = vrot.lane.b32.xlu0 %v10146_v60, %s9509_s10 }
0x125d   :  { %v2667_v19 = vpop.xlane.xlu1 %2666 }
0x125e   :  { %9052 = vrcp.f32 %v2667_v19 }
0x125f   :  { %v2664_v22 = vpop.xlane.xlu0 %2663 }
0x1260   :  { %9054 = vrcp.f32 %v2664_v22 }
0x1261   :  { %v2833_v30 = vpop.permute.xlu1 %2832 }
0x1263   :  { %v2917_v25 = vpop.permute.xlu0 %2916 }
0x1265   :  { %v2831_v33 = vpop.permute.xlu1 %2830 }
0x1267   :  { %v2915_v27 = vpop.permute.xlu0 %2914 }
0x126b   :  { %v9053_v23 = vpop.eup %9052  ;;  %v2913_v32 = vpop.permute.xlu0 %2912 }
0x126c   :  { %v2671_v24 = vmul.f32 %v9053_v23, %v9049_v59 }
0x126d   :  { %v9055_v31 = vpop.eup %9054 }
0x126e   :  { %8498 = vmatmul.mubr.msk.f32.vlgmr.msra.gmra.mxu1 %vm410_vm2, %v2671_v24  ;;  %v2670_v26 = vmul.f32 %v9055_v31, %v9051_v12 }
0x126f   :  { %8508 = vmatpush3.xpose.msk.msra.mxu1 %vm410_vm2, %v2917_v25  ;;  %8511 = vmatprep.mubr.msk.f32.mxu1 %vm9505_vm1, %v9504_v0 }
0x1270   :  { %8491 = vmatmul.mubr.msk.f32.vlgmr.msra.gmra.mxu0 %vm410_vm2, %v2670_v26  ;;  %8509 = vmatprep.subr.mxu1 %v9504_v0 }
0x1271   :  { %8501 = vmatpush3.xpose.msk.msra.mxu0 %vm410_vm2, %v2835_v15  ;;  %8504 = vmatprep.mubr.msk.f32.mxu0 %vm9505_vm1, %v9504_v0 }
0x1272   :  { %8502 = vmatprep.subr.mxu0 %v9504_v0 }
0x1273   :  { %8510 = vmatpush3.xpose.msk.msra.mxu1 %vm410_vm2, %v2915_v27 }
0x1274   :  { %8521 = vmatprep.subr.mxu1 %v9504_v0 }
0x1275   :  { %8503 = vmatpush3.xpose.msk.msra.mxu0 %vm410_vm2, %v2833_v30 }
0x1276   :  { %8512 = vmatmul.mubr.msk.f32.vlgmr.msra.gmra.mxu1 %vm410_vm2, %v2913_v32  ;;  %8514 = vmatprep.subr.mxu0 %v9504_v0 }
0x1277   :  { %8525 = vmatprep.mubr.msk.f32.mxu1 %vm9505_vm1, %v9504_v0 }
0x1278   :  { %8505 = vmatmul.mubr.msk.f32.vlgmr.msra.gmra.mxu0 %vm410_vm2, %v2831_v33 }
0x1279   :  { %8518 = vmatprep.mubr.msk.f32.mxu0 %vm9505_vm1, %v9504_v0 }
0x132e   :  { %v10286_v37 = vpop.f32.mrf.mxu1 }
0x1330   :  { %v10288_v39 = vpop.f32.mrf.mxu0  ;;  %v8499_v28 = vpop.f32.mrf.mxu1 }
0x1332   :  { %v8492_v34 = vpop.f32.mrf.mxu0 }
0x1336   :  { %v2990_v40 = vpop.f32.mrf.mxu1 }
0x1337   :  { %v2995_v42 = vmul.f32 %v2990_v40, %v10161_v62 }
0x1338   :  { %v2908_v43 = vpop.f32.mrf.mxu0  ;;  %v8513_v45 = vpop.f32.mrf.mxu1 }
0x1339   :  { %v2994_v49 = vmul.f32 %v2908_v43, %v10166_v63  ;;  %v2997_v16 = vadd.f32 %v2995_v42, %v10171_v1 }
0x133a   :  { %v8506_v51 = vpop.f32.mrf.mxu0 }
0x133b   :  { %v3001_v53 = vsel %vm410_vm2, %v2997_v16, -inf  ;;  %v2996_v55 = vadd.f32 %v2994_v49, %v10177_v38 }
0x133c   :  { %3002 = vmax.xlane.f32.xlu0 %v3001_v53 }
0x133d   :  { %v2998_v57 = vsel %vm410_vm2, %v2996_v55, -inf }
0x133e   :  { %2999 = vmax.xlane.f32.xlu1 %v2998_v57 }
0x134f   :  { %3101 = vrot.lane.b32.xlu1 %v10133_v54, %s9485_s30 }
0x1352   :  { %3022 = vrot.lane.b32.xlu0 %v10126_v50, %s9485_s30 }
0x1353   :  { %3020 = vrot.lane.b32.xlu1 %v10128_v52, %s9485_s30 }
0x1356   :  { %3099 = vrot.lane.b32.xlu0 %v10139_v56, %s9485_s30 }
0x1357   :  { %3182 = vrot.lane.b32.xlu1 %v10126_v50, %s9510_s23 }
0x13c5   :  { %v3003_v58 = vpop.xlane.xlu0 %3002 }
0x13c6   :  { %v3005_v18 = vsub.f32 %v2997_v16, %v3003_v58 }
0x13c7   :  { %v3000_v17 = vpop.xlane.xlu1 %2999 }
0x13c8   :  { %v3008_v61 = vmul.f32 1.442695, %v3005_v18  ;;  %v3004_v44 = vsub.f32 %v2996_v55, %v3000_v17 }
0x13c9   :  { %v3023_v2 = vpop.permute.xlu0 %3022 }
0x13ca   :  { %9056 = vpow2.f32 %v3008_v61  ;;  %v3006_v4 = vmul.f32 1.442695, %v3004_v44  ;;  %8515 = vmatpush3.msra.mxu0 %v3023_v2  ;;  %v3562_v2 = vld [vmem:[%s11305_s14 + $0x30] sm:$0xff] }
0x13cb   :  { %v3102_v36 = vpop.permute.xlu1 %3101  ;;  %8516 = vmatprep.subr.mxu0 %v9504_v0 }
0x13cc   :  { %9058 = vpow2.f32 %v3006_v4  ;;  %8522 = vmatpush3.msra.mxu1 %v3102_v36  ;;  %v3561_v4 = vld [vmem:[%s11305_s14 + $0x28] sm:$0xff]  ;;  %v3560_v36 = vld [vmem:[%s11305_s14 + $0x20] sm:$0xff] }
0x13cd   :  { %8523 = vmatprep.subr.mxu1 %v9504_v0  ;;  %v3100_v5 = vpop.permute.xlu0 %3099 }
0x13ce   :  { %8524 = vmatpush3.msra.mxu1 %v3100_v5  ;;  %v3559_v5 = vld [vmem:[%s11305_s14 + $0x18] sm:$0xff] }
0x13cf   :  { %v3021_v7 = vpop.permute.xlu1 %3020  ;;  %8535 = vmatprep.subr.mxu1 %v9504_v0 }
0x13d0   :  { %8517 = vmatpush3.msra.mxu0 %v3021_v7  ;;  %v3558_v7 = vld [vmem:[%s11305_s14 + $0x10] sm:$0xff] }
0x13d1   :  { %8528 = vmatprep.subr.mxu0 %v9504_v0 }
0x13d3   :  { %v3183_v10 = vpop.permute.xlu1 %3182 }
0x13d7   :  { %v9057_v6 = vpop.eup %9056 }
0x13d8   :  { %v3013_v8 = vsel %vm410_vm2, %v9057_v6, 0.0 }
0x13d9   :  { %v9059_v9 = vpop.eup %9058  ;;  %3014 = vadd.xlane.f32.xlu1 %v3013_v8  ;;  %v3556_v8 = vld [vmem:[%s11305_s14] sm:$0xff] }
0x13da   :  { %v3010_v3 = vsel %vm410_vm2, %v9059_v9, 0.0 }
0x13db   :  { %3011 = vadd.xlane.f32.xlu0 %v3010_v3 }
0x13ea   :  { %3180 = vrot.lane.b32.xlu1 %v10128_v52, %s9510_s23 }
0x13ee   :  { %3178 = vrot.lane.b32.xlu1 %v10148_v41, %s9510_s23 }
0x13f1   :  { %3264 = vrot.lane.b32.xlu0 %v10133_v54, %s9510_s23 }
0x13f5   :  { %3262 = vrot.lane.b32.xlu0 %v10139_v56, %s9510_s23 }
0x13f9   :  { %3260 = vrot.lane.b32.xlu0 %v10146_v60, %s9510_s23 }
0x1462   :  { %v3015_v35 = vpop.xlane.xlu1 %3014 }
0x1463   :  { %9060 = vrcp.f32 %v3015_v35 }
0x1464   :  { %v3012_v59 = vpop.xlane.xlu0 %3011 }
0x1465   :  { %9062 = vrcp.f32 %v3012_v59 }
0x1466   :  { %v3181_v60 = vpop.permute.xlu1 %3180 }
0x1468   :  { %v3265_v11 = vpop.permute.xlu0 %3264 }
0x146a   :  { %v3179_v25 = vpop.permute.xlu1 %3178 }
0x146c   :  { %v3263_v19 = vpop.permute.xlu0 %3262 }
0x1470   :  { %v9061_v12 = vpop.eup %9060  ;;  %v3261_v22 = vpop.permute.xlu0 %3260 }
0x1471   :  { %v3019_v13 = vmul.f32 %v9061_v12, %v9057_v6  ;;  %v3557_v6 = vld [vmem:[%s11305_s14 + $0x8] sm:$0xff] }
0x1472   :  { %v9063_v15 = vpop.eup %9062 }
0x1473   :  { %8526 = vmatmul.mubr.msk.f32.vlgmr.msra.gmra.mxu1 %vm410_vm2, %v3019_v13  ;;  %v3018_v41 = vmul.f32 %v9063_v15, %v9059_v9 }
0x1474   :  { %8536 = vmatpush3.xpose.msk.msra.mxu1 %vm410_vm2, %v3265_v11  ;;  %8539 = vmatprep.mubr.msk.f32.mxu1 %vm9505_vm1, %v9504_v0 }
0x1475   :  { %8519 = vmatmul.mubr.msk.f32.vlgmr.msra.gmra.mxu0 %vm410_vm2, %v3018_v41  ;;  %8537 = vmatprep.subr.mxu1 %v9504_v0 }
0x1476   :  { %8529 = vmatpush3.xpose.msk.msra.mxu0 %vm410_vm2, %v3183_v10  ;;  %8532 = vmatprep.mubr.msk.f32.mxu0 %vm9505_vm1, %v9504_v0 }
0x1477   :  { %8530 = vmatprep.subr.mxu0 %v9504_v0 }
0x1478   :  { %8538 = vmatpush3.xpose.msk.msra.mxu1 %vm410_vm2, %v3263_v19 }
0x1479   :  { %8549 = vmatprep.subr.mxu1 %v9504_v0 }
0x147a   :  { %8531 = vmatpush3.xpose.msk.msra.mxu0 %vm410_vm2, %v3181_v60 }
0x147b   :  { %8540 = vmatmul.mubr.msk.f32.vlgmr.msra.gmra.mxu1 %vm410_vm2, %v3261_v22  ;;  %8542 = vmatprep.subr.mxu0 %v9504_v0 }
0x147c   :  { %8553 = vmatprep.mubr.msk.f32.mxu1 %vm9505_vm1, %v9504_v0 }
0x147d   :  { %8533 = vmatmul.mubr.msk.f32.vlgmr.msra.gmra.mxu0 %vm410_vm2, %v3179_v25 }
0x147e   :  { %8546 = vmatprep.mubr.msk.f32.mxu0 %vm9505_vm1, %v9504_v0 }
0x1533   :  { %v3174_v23 = vpop.f32.mrf.mxu1 }
0x1535   :  { %v3095_v24 = vpop.f32.mrf.mxu0  ;;  %v8527_v31 = vpop.f32.mrf.mxu1 }
0x1536   :  { %v7826_v31 = vld [vmem:[#allocation10] ss:$0 sm:$0xff] }
0x1537   :  { %v8520_v26 = vpop.f32.mrf.mxu0 }
0x153b   :  { %v3338_v27 = vpop.f32.mrf.mxu1 }
0x153c   :  { %v3343_v30 = vmul.f32 %v3338_v27, %v10161_v62 }
0x153d   :  { %v3256_v32 = vpop.f32.mrf.mxu0  ;;  %v8541_v33 = vpop.f32.mrf.mxu1 }
0x153e   :  { %v3342_v28 = vmul.f32 %v3256_v32, %v10166_v63  ;;  %v3345_v34 = vadd.f32 %v3343_v30, %v10171_v1 }
0x153f   :  { %v8534_v40 = vpop.f32.mrf.mxu0 }
0x1540   :  { %v3349_v42 = vsel %vm410_vm2, %v3345_v34, -inf  ;;  %v3344_v43 = vadd.f32 %v3342_v28, %v10177_v38 }
0x1541   :  { %3350 = vmax.xlane.f32.xlu0 %v3349_v42 }
0x1542   :  { %v3346_v45 = vsel %vm410_vm2, %v3344_v43, -inf }
0x1543   :  { %3347 = vmax.xlane.f32.xlu1 %v3346_v45 }
0x1554   :  { %3449 = vrot.lane.b32.xlu1 %v10133_v54, %s9489_s1 }
0x1557   :  { %3370 = vrot.lane.b32.xlu0 %v10126_v50, %s9489_s1 }
0x15ca   :  { %v3351_v62 = vpop.xlane.xlu0 %3350 }
0x15cb   :  { %v3353_v49 = vsub.f32 %v3345_v34, %v3351_v62 }
0x15cc   :  { %v3348_v63 = vpop.xlane.xlu1 %3347 }
0x15cd   :  { %v3356_v16 = vmul.f32 1.442695, %v3353_v49  ;;  %v3352_v1 = vsub.f32 %v3344_v43, %v3348_v63 }
0x15ce   :  { %v3371_v51 = vpop.permute.xlu0 %3370 }
0x15cf   :  { %9064 = vpow2.f32 %v3356_v16  ;;  %v3354_v53 = vmul.f32 1.442695, %v3352_v1  ;;  %8543 = vmatpush3.msra.mxu0 %v3371_v51  ;;  %v3719_v16 = vld [vmem:[%s11307_s16 + $0x38] sm:$0xff]  ;;  %v3718_v1 = vld [vmem:[%s11307_s16 + $0x30] sm:$0xff]  ;;  %v3717_v51 = vld [vmem:[%s11307_s16 + $0x28] sm:$0xff] }
0x15d0   :  { %v3450_v38 = vpop.permute.xlu1 %3449  ;;  %8544 = vmatprep.subr.mxu0 %v9504_v0 }
0x15d1   :  { %9066 = vpow2.f32 %v3354_v53  ;;  %8550 = vmatpush3.msra.mxu1 %v3450_v38  ;;  %v3716_v53 = vld [vmem:[%s11307_s16 + $0x20] sm:$0xff]  ;;  %v3715_v38 = vld [vmem:[%s11307_s16 + $0x18] sm:$0xff] }
0x15d2   :  { %8551 = vmatprep.subr.mxu1 %v9504_v0 }
0x15dc   :  { %v9065_v54 = vpop.eup %9064 }
0x15dd   :  { %v3361_v55 = vsel %vm410_vm2, %v9065_v54, 0.0 }
0x15de   :  { %v9067_v50 = vpop.eup %9066  ;;  %3362 = vadd.xlane.f32.xlu1 %v3361_v55  ;;  %v3713_v55 = vld [vmem:[%s11307_s16 + $0x8] sm:$0xff] }
0x15df   :  { %v3358_v57 = vsel %vm410_vm2, %v9067_v50, 0.0 }
0x15e0   :  { %3359 = vadd.xlane.f32.xlu0 %v3358_v57  ;;  %v3825_v57 = vld [vmem:[%s11309_s18 + $0x78] sm:$0xff] }
0x15ef   :  { %3368 = vrot.lane.b32.xlu1 %v10128_v52, %s9489_s1 }
0x15f3   :  { %3528 = vrot.lane.b32.xlu1 %v10288_v39, %s9489_s1 }
0x15f6   :  { %3447 = vrot.lane.b32.xlu0 %v10139_v56, %s9489_s1 }
0x15f7   :  { %3536 = vrot.lane.b32.xlu1 %v3095_v24, %s9485_s30 }
0x15fa   :  { %3530 = vrot.lane.b32.xlu0 %v10286_v37, %s9489_s1  ;;  %v3563_v37 = vld [vmem:[%s11305_s14 + $0x38] sm:$0xff] }
0x15fe   :  { %3538 = vrot.lane.b32.xlu0 %v3174_v23, %s9485_s30 }
0x1667   :  { %v3363_v58 = vpop.xlane.xlu1 %3362 }
0x1668   :  { %9068 = vrcp.f32 %v3363_v58  ;;  %v3824_v58 = vld [vmem:[%s11309_s18 + $0x70] sm:$0xff] }
0x1669   :  { %v3360_v18 = vpop.xlane.xlu0 %3359 }
0x166a   :  { %9070 = vrcp.f32 %v3360_v18  ;;  %v3823_v18 = vld [vmem:[%s11309_s18 + $0x68] sm:$0xff] }
0x166b   :  { %v3369_v17 = vpop.permute.xlu1 %3368 }
0x166c   :  { %8545 = vmatpush3.msra.mxu0 %v3369_v17  ;;  %v3822_v17 = vld [vmem:[%s11309_s18 + $0x60] sm:$0xff] }
0x166d   :  { %v3448_v52 = vpop.permute.xlu0 %3447  ;;  %8556 = vmatprep.subr.mxu0 %v3563_v37 }
0x166e   :  { %8552 = vmatpush3.msra.mxu1 %v3448_v52  ;;  %v3821_v52 = vld [vmem:[%s11309_s18 + $0x58] sm:$0xff] }
0x166f   :  { %v3529_v11 = vpop.permute.xlu1 %3528  ;;  %8575 = vmatprep.subr.mxu1 %v3719_v16 }
0x1670   :  { %v3550_v15 = vsel %vm410_vm2, %v10232_v46, %v3529_v11 }
0x1671   :  { %v3531_v59 = vpop.permute.xlu0 %3530 }
0x1672   :  { %v3551_v19 = vsel %vm410_vm2, %v10230_v14, %v3531_v59 }
0x1673   :  { %v3537_v13 = vpop.permute.xlu1 %3536 }
0x1674   :  { %v3552_v60 = vsel %vm1767_vm4, %v3550_v15, %v3537_v13 }
0x1675   :  { %v9069_v61 = vpop.eup %9068  ;;  %v3539_v12 = vpop.permute.xlu0 %3538 }
0x1676   :  { %v3367_v39 = vmul.f32 %v9069_v61, %v9065_v54  ;;  %v3553_v25 = vsel %vm1767_vm4, %v3551_v19, %v3539_v12  ;;  %v3714_v54 = vld [vmem:[%s11307_s16 + $0x10] sm:$0xff] }
0x1677   :  { %v9071_v44 = vpop.eup %9070  ;;  %v3820_v61 = vld [vmem:[%s11309_s18 + $0x50] sm:$0xff] }
0x1678   :  { %8554 = vmatmul.mubr.msk.f32.vlgmr.msra.gmra.mxu1 %vm410_vm2, %v3367_v39  ;;  %v3366_v56 = vmul.f32 %v9071_v44, %v9067_v50  ;;  %v3712_v50 = vld [vmem:[%s11307_s16] sm:$0xff]  ;;  %v3819_v39 = vld [vmem:[%s11309_s18 + $0x48] sm:$0xff] }
0x1679   :  { %8576 = vmatpush3.msra.mxu1 %v3719_v16  ;;  %v3818_v44 = vld [vmem:[%s11309_s18 + $0x40] sm:$0xff] }
0x167a   :  { %8547 = vmatmul.mubr.msk.f32.vlgmr.msra.gmra.mxu0 %vm410_vm2, %v3366_v56  ;;  %8577 = vmatprep.subr.mxu1 %v3718_v1  ;;  %v3817_v56 = vld [vmem:[%s11309_s18 + $0x38] sm:$0xff] }
0x167b   :  { %8557 = vmatpush3.msra.mxu0 %v3563_v37  ;;  %8578 = vmatpush3.msra.mxu1 %v3718_v1  ;;  %v3816_v37 = vld [vmem:[%s11309_s18 + $0x30] sm:$0xff] }
0x167c   :  { %8558 = vmatprep.subr.mxu0 %v3562_v2  ;;  %8579 = vmatprep.subr.mxu1 %v3717_v51 }
0x167d   :  { %8559 = vmatpush3.msra.mxu0 %v3562_v2  ;;  %8580 = vmatpush3.msra.mxu1 %v3717_v51  ;;  %v3815_v2 = vld [vmem:[%s11309_s18 + $0x28] sm:$0xff] }
0x167e   :  { %8560 = vmatprep.subr.mxu0 %v3561_v4  ;;  %8581 = vmatprep.subr.mxu1 %v3716_v53 }
0x167f   :  { %8561 = vmatpush3.msra.mxu0 %v3561_v4  ;;  %8582 = vmatpush3.msra.mxu1 %v3716_v53  ;;  %v3814_v4 = vld [vmem:[%s11309_s18 + $0x20] sm:$0xff] }
0x1680   :  { %8562 = vmatprep.subr.mxu0 %v3560_v36  ;;  %8583 = vmatprep.subr.mxu1 %v3715_v38 }
0x1681   :  { %8563 = vmatpush3.msra.mxu0 %v3560_v36  ;;  %8584 = vmatpush3.msra.mxu1 %v3715_v38 }
0x1682   :  { %8564 = vmatprep.subr.mxu0 %v3559_v5  ;;  %8585 = vmatprep.subr.mxu1 %v3714_v54 }
0x1683   :  { %8565 = vmatpush3.msra.mxu0 %v3559_v5  ;;  %8586 = vmatpush3.msra.mxu1 %v3714_v54 }
0x1684   :  { %8566 = vmatprep.subr.mxu0 %v3558_v7  ;;  %8587 = vmatprep.subr.mxu1 %v3713_v55 }
0x1685   :  { %8567 = vmatpush3.msra.mxu0 %v3558_v7  ;;  %8588 = vmatpush3.msra.mxu1 %v3713_v55 }
0x1686   :  { %8568 = vmatprep.subr.mxu0 %v3557_v6  ;;  %8589 = vmatprep.subr.mxu1 %v3712_v50 }
0x1687   :  { %8569 = vmatpush3.msra.mxu0 %v3557_v6  ;;  %8590 = vmatpush3.msra.mxu1 %v3712_v50 }
0x1688   :  { %8570 = vmatprep.subr.mxu0 %v3556_v8 }
0x1689   :  { %8571 = vmatpush3.msra.mxu0 %v3556_v8 }
0x168a   :  { %8594 = vmatprep.subr.mxu0 %v3825_v57 }
0x1738   :  { %v3522_v9 = vpop.f32.mrf.mxu1 }
0x1739   :  { %3546 = vrot.lane.b32.xlu0 %v3522_v9, %s9507_s13 }
0x173a   :  { %v3443_v3 = vpop.f32.mrf.mxu0  ;;  %v8555_v10 = vpop.f32.mrf.mxu1 }
0x173b   :  { %3544 = vrot.lane.b32.xlu1 %v3443_v3, %s9507_s13 }
0x173c   :  { %v8548_v35 = vpop.f32.mrf.mxu0 }
0x17ab   :  { %v3547_v41 = vpop.permute.xlu0 %3546 }
0x17ac   :  { %v3555_v24 = vsel %vm1770_vm5, %v3553_v25, %v3547_v41  ;;  %v7829_v25 = vld [vmem:[#allocation18] ss:$0 sm:$0xff] }
0x17ad   :  { %v3545_v22 = vpop.permute.xlu1 %3544 }
0x17ae   :  { %v3554_v23 = vsel %vm1770_vm5, %v3552_v60, %v3545_v22 }
0x17af   :  { %8572 = vmatprep.mubr.msk.f32.mxu0 %vm321_vm0, %v3554_v23 }
0x17b0   :  { %8573 = vmatmul.mubr.msk.f32.vlgmr.msra.gmra.mxu0 %vm321_vm0, %v3555_v24 }
0x17b1   :  { %8595 = vmatpush3.msra.mxu0 %v3825_v57 }
0x17b2   :  { %8596 = vmatprep.subr.mxu0 %v3824_v58 }
0x17b3   :  { %8597 = vmatpush3.msra.mxu0 %v3824_v58 }
0x17b4   :  { %8598 = vmatprep.subr.mxu0 %v3823_v18 }
0x17b5   :  { %8599 = vmatpush3.msra.mxu0 %v3823_v18 }
0x17b6   :  { %8600 = vmatprep.subr.mxu0 %v3822_v17 }
0x17b7   :  { %8601 = vmatpush3.msra.mxu0 %v3822_v17 }
0x17b8   :  { %8602 = vmatprep.subr.mxu0 %v3821_v52 }
0x17b9   :  { %8603 = vmatpush3.msra.mxu0 %v3821_v52 }
0x17ba   :  { %8604 = vmatprep.subr.mxu0 %v3820_v61 }
0x17bb   :  { %8605 = vmatpush3.msra.mxu0 %v3820_v61 }
0x17bc   :  { %8606 = vmatprep.subr.mxu0 %v3819_v39 }
0x17bd   :  { %8607 = vmatpush3.msra.mxu0 %v3819_v39 }
0x17be   :  { %8608 = vmatprep.subr.mxu0 %v3818_v44 }
0x17bf   :  { %8609 = vmatpush3.msra.mxu0 %v3818_v44 }
0x17c0   :  { %8610 = vmatprep.subr.mxu0 %v3817_v56 }
0x17c1   :  { %8611 = vmatpush3.msra.mxu0 %v3817_v56  ;;  %v7852_v56 = vld [vmem:[%s11346_s4 + $0xf8] sm:$0xff] }
0x17c2   :  { %8612 = vmatprep.subr.mxu0 %v3816_v37  ;;  %4020 = vmatprep.subr.mxu1 %v7852_v56 }
0x17c3   :  { %8613 = vmatpush3.msra.mxu0 %v3816_v37  ;;  %v7851_v37 = vld [vmem:[%s11346_s4 + $0xf0] sm:$0xff] }
0x17c4   :  { %8614 = vmatprep.subr.mxu0 %v3815_v2 }
0x17c5   :  { %8615 = vmatpush3.msra.mxu0 %v3815_v2  ;;  %v7850_v2 = vld [vmem:[%s11346_s4 + $0xe8] sm:$0xff] }
0x17c6   :  { %8616 = vmatprep.subr.mxu0 %v3814_v4 }
0x17c7   :  { %8617 = vmatpush3.msra.mxu0 %v3814_v4  ;;  %v7849_v4 = vld [vmem:[%s11346_s4 + $0xe0] sm:$0xff] }
0x1870   :  { %v8574_v26 = vpop.f32.mrf.mxu0 }
0x1871   :  { %v3649_v46 = vadd.f32 %v8574_v26, %v7826_v31  ;;  %v7830_v26 = vld [vmem:[#allocation19] ss:$0 sm:$0xff] }
0x1872   :  { %v3643_v27 = vpop.f32.mrf.mxu0 }
0x1873   :  { %v3653_v30 = vadd.f32 %v3649_v46, %v10118_v48  ;;  %v3644_v14 = vadd.f32 %v7826_v31, %v3643_v27 }
0x1875   :  { %v3652_v32 = vadd.f32 %v3644_v14, %v10116_v47  ;;  %v3659_v33 = vsel %vm321_vm0, %v3653_v30, 0.0  ;;  %v3813_v14 = vld [vmem:[%s11309_s18 + $0x18] sm:$0xff] }
0x1876   :  { %3660 = vadd.xlane.f32.xlu0 %v3659_v33  ;;  %8618 = vmatprep.subr.mxu0 %v3813_v14  ;;  %v3811_v33 = vld [vmem:[%s11309_s18 + $0x8] sm:$0xff] }
0x1877   :  { %v3656_v28 = vsel %vm321_vm0, %v3652_v32, 0.0  ;;  %8619 = vmatpush3.msra.mxu0 %v3813_v14 }
0x1878   :  { %3657 = vadd.xlane.f32.xlu1 %v3656_v28  ;;  %v3810_v28 = vld [vmem:[%s11309_s18] sm:$0xff] }
0x18ff   :  { %v3661_v34 = vpop.xlane.xlu0 %3660 }
0x1900   :  { %v3663_v40 = vmul.f32 0.015625, %v3661_v34  ;;  %v7831_v34 = vld [vmem:[#allocation12] ss:$0 sm:$0xff] }
0x1901   :  { %v3658_v42 = vpop.xlane.xlu1 %3657 }
0x1902   :  { %v10408_v43 = vsub.f32 %v3653_v30, %v3663_v40  ;;  %v3662_v45 = vmul.f32 0.015625, %v3658_v42 }
0x1904   :  { %v10410_v62 = vsub.f32 %v3652_v32, %v3662_v45  ;;  %v3667_v48 = vmul.f32 %v10408_v43, %v10408_v43  ;;  %v3812_v32 = vld [vmem:[%s11309_s18 + $0x10] sm:$0xff] }
0x1905   :  { %8620 = vmatprep.subr.mxu0 %v3812_v32 }
0x1906   :  { %v3671_v49 = vsel %vm321_vm0, %v3667_v48, 0.0  ;;  %v3666_v47 = vmul.f32 %v10410_v62, %v10410_v62  ;;  %8621 = vmatpush3.msra.mxu0 %v3812_v32 }
0x1907   :  { %3672 = vadd.xlane.f32.xlu1 %v3671_v49  ;;  %8622 = vmatprep.subr.mxu0 %v3811_v33  ;;  %v7834_v49 = vld [vmem:[#allocation13] ss:$0 sm:$0xff] }
0x1908   :  { %v3668_v63 = vsel %vm321_vm0, %v3666_v47, 0.0  ;;  %8623 = vmatpush3.msra.mxu0 %v3811_v33 }
0x1909   :  { %3669 = vadd.xlane.f32.xlu0 %v3668_v63  ;;  %8624 = vmatprep.subr.mxu0 %v3810_v28 }
0x190a   :  { %8625 = vmatpush3.msra.mxu0 %v3810_v28 }
0x190b   :  { %8644 = vmatprep.subr.mxu0 %v9504_v0 }
0x1990   :  { %v3673_v36 = vpop.xlane.xlu1 %3672 }
0x1991   :  { %v3675_v5 = vmul.f32 0.015625, %v3673_v36  ;;  %v7848_v36 = vld [vmem:[%s11346_s4 + $0xd8] sm:$0xff] }
0x1992   :  { %v3670_v7 = vpop.xlane.xlu0 %3669 }
0x1993   :  { %v3677_v6 = vadd.f32 1e-12, %v3675_v5  ;;  %v3674_v8 = vmul.f32 0.015625, %v3670_v7  ;;  %v7847_v5 = vld [vmem:[%s11346_s4 + $0xd0] sm:$0xff]  ;;  %v7846_v7 = vld [vmem:[%s11346_s4 + $0xc8] sm:$0xff] }
0x1995   :  { %9072 = vrsqrt.f32 %v3677_v6  ;;  %v3676_v9 = vadd.f32 1e-12, %v3674_v8  ;;  %vm3687_vm10 = vcmp.eq.f32.partialorder %v3677_v6, inf  ;;  %v3690_v35 = vand.u32 2147483648, %v3677_v6  ;;  %v7844_v8 = vld [vmem:[%s11346_s4 + $0xb8] sm:$0xff] }
0x1996   :  { %vm3689_vm11 = vcmp.eq.f32.partialorder %v3677_v6, 0.0 }
0x1997   :  { %9074 = vrsqrt.f32 %v3676_v9  ;;  %vm3680_vm12 = vcmp.eq.f32.partialorder %v3676_v9, inf  ;;  %v3683_v15 = vand.u32 2147483648, %v3676_v9  ;;  %vm3682_vm13 = vcmp.eq.f32.partialorder %v3676_v9, 0.0 }
0x19a2   :  { %v9073_v3 = vpop.eup %9072 }
0x19a3   :  { %v3686_v10 = vmul.f32 %v9073_v3, %v3677_v6  ;;  %v7842_v3 = vld [vmem:[%s11346_s4 + $0xa8] sm:$0xff] }
0x19a4   :  { %v9075_v59 = vpop.eup %9074 }
0x19a5   :  { %v3688_v11 = vsel %vm3687_vm10, %v3677_v6, %v3686_v10  ;;  %v3679_v13 = vmul.f32 %v9075_v59, %v3676_v9  ;;  %v7845_v6 = vld [vmem:[%s11346_s4 + $0xc0] sm:$0xff]  ;;  %v7839_v59 = vld [vmem:[%s11346_s4 + $0x90] sm:$0xff] }
0x19a6   :  { %v3691_v12 = vsel %vm3689_vm11, %v3690_v35, %v3688_v11  ;;  %v7841_v10 = vld [vmem:[%s11346_s4 + $0xa0] sm:$0xff]  ;;  %v7840_v35 = vld [vmem:[%s11346_s4 + $0x98] sm:$0xff]  ;;  %v7838_v11 = vld [vmem:[%s11346_s4 + $0x88] sm:$0xff] }
0x19a7   :  { %9076 = vrcp.f32 %v3691_v12  ;;  %v3681_v41 = vsel %vm3680_vm12, %v3676_v9, %v3679_v13  ;;  %v7843_v9 = vld [vmem:[%s11346_s4 + $0xb0] sm:$0xff]  ;;  %v7837_v12 = vld [vmem:[%s11346_s4 + $0x80] sm:$0xff] }
0x19a8   :  { %v3684_v19 = vsel %vm3682_vm13, %v3683_v15, %v3681_v41 }
0x19a9   :  { %9078 = vrcp.f32 %v3684_v19 }
0x19b4   :  { %v9077_v60 = vpop.eup %9076 }
0x19b5   :  { %v3695_v22 = vmul.f32 %v9077_v60, %v10408_v43 }
0x19b6   :  { %v9079_v23 = vpop.eup %9078 }
0x19b7   :  { %v3693_v24 = vmul.f32 %v9079_v23, %v10410_v62  ;;  %v3703_v31 = vmul.f32 %v7829_v25, %v3695_v22 }
0x19b9   :  { %v3702_v46 = vmul.f32 %v7829_v25, %v3693_v24  ;;  %v3711_v30 = vadd.f32 %v7830_v26, %v3703_v31 }
0x19bb   :  { %v3710_v27 = vadd.f32 %v7830_v26, %v3702_v46 }
0x19bd   :  { %8591 = vmatprep.mubr.msk.f32.mxu1 %vm321_vm0, %v3710_v27 }
0x19be   :  { %8592 = vmatmul.mubr.msk.f32.vlgmr.msra.gmra.mxu1 %vm321_vm0, %v3711_v30 }
0x19bf   :  { %4068 = vmatprep.mubr.f32.mxu1 %v9504_v0  ;;  %4021 = vmatpush1.msra.mxu1 %v7851_v37  ;;  %v10625_v37 = vld [vmem:[%s11348_s8 + $0x8] sm:$0xff] }
0x19c0   :  { %4022 = vmatprep.subr.mxu1 %v7850_v2 }
0x19c1   :  { %4023 = vmatpush1.msra.mxu1 %v7849_v4 }
0x19c2   :  { %4024 = vmatprep.subr.mxu1 %v7848_v36 }
0x19c3   :  { %4025 = vmatpush1.msra.mxu1 %v7847_v5  ;;  %v10632_v5 = vld [vmem:[%s11349_s15 + $0x8] sm:$0xff] }
0x19c4   :  { %4026 = vmatprep.subr.mxu1 %v7846_v7 }
0x19c5   :  { %4027 = vmatpush1.msra.mxu1 %v7845_v6 }
0x19c6   :  { %4028 = vmatprep.subr.mxu1 %v7844_v8 }
0x19c7   :  { %4029 = vmatpush1.msra.mxu1 %v7843_v9 }
0x19c8   :  { %4030 = vmatprep.subr.mxu1 %v7842_v3 }
0x19c9   :  { %4031 = vmatpush1.msra.mxu1 %v7841_v10 }
0x19ca   :  { %4032 = vmatprep.subr.mxu1 %v7840_v35 }
0x19cb   :  { %4033 = vmatpush1.msra.mxu1 %v7839_v59 }
0x19cc   :  { %4034 = vmatprep.subr.mxu1 %v7838_v11 }
0x19cd   :  { %4035 = vmatpush1.msra.mxu1 %v7837_v12 }
0x19ce   :  { %8629 = vmatprep.subr.mxu1 %v9504_v0 }
0x1a7e   :  { %v8593_v40 = vpop.f32.mrf.mxu1 }
0x1a7f   :  { %v3805_v42 = vadd.f32 %v8593_v40, %v7831_v34 }
0x1a80   :  { %v3799_v43 = vpop.f32.mrf.mxu1 }
0x1a81   :  { %v3800_v45 = vadd.f32 %v7831_v34, %v3799_v43  ;;  %v3809_v48 = vmax.f32 %v3805_v42, 0.0  ;;  %v7835_v42 = vld [vmem:[#allocation21] ss:$0 sm:$0xff] }
0x1a83   :  { %v3808_v62 = vmax.f32 %v3800_v45, 0.0  ;;  %v7836_v45 = vld [vmem:[#allocation22] ss:$0 sm:$0xff] }
0x1a85   :  { %8626 = vmatprep.mubr.f32.mxu0 %v3808_v62 }
0x1a86   :  { %8627 = vmatmul.mubr.f32.vlgmr.msra.gmra.mxu0 %v3809_v48 }
0x1a87   :  { %8646 = vmatprep.mubr.msk.f32.mxu0 %vm9505_vm1, %v9504_v0 }
0x1b46   :  { %v8628_v47 = vpop.f32.mrf.mxu0 }
0x1b47   :  { %v3905_v63 = vadd.f32 %v8628_v47, %v7834_v49  ;;  %v3986_v47 = vld [vmem:[#allocation4 + $0x2] sm:$0x3] }
0x1b48   :  { %v3899_v16 = vpop.f32.mrf.mxu0 }
0x1b49   :  { %v3909_v1 = vadd.f32 %v3905_v63, %v3711_v30  ;;  %v3900_v51 = vadd.f32 %v7834_v49, %v3899_v16  ;;  %v3991_v63 = vrot.slane %v3986_v47, %v313_v21  ;;  %v3995_v16 = vrot.slane %v3986_v47, %v317_v29 }
0x1b4b   :  { %v3908_v53 = vadd.f32 %v3900_v51, %v3710_v27  ;;  %v3915_v38 = vsel %vm321_vm0, %v3909_v1, 0.0 }
0x1b4c   :  { %3916 = vadd.xlane.f32.xlu1 %v3915_v38 }
0x1b4d   :  { %v3912_v54 = vsel %vm321_vm0, %v3908_v53, 0.0 }
0x1b4e   :  { %3913 = vadd.xlane.f32.xlu0 %v3912_v54 }
0x1bd5   :  { %v3917_v55 = vpop.xlane.xlu1 %3916 }
0x1bd6   :  { %v3919_v50 = vmul.f32 0.015625, %v3917_v55 }
0x1bd7   :  { %v3914_v57 = vpop.xlane.xlu0 %3913 }
0x1bd8   :  { %v10500_v58 = vsub.f32 %v3909_v1, %v3919_v50  ;;  %v3918_v18 = vmul.f32 0.015625, %v3914_v57 }
0x1bda   :  { %v10502_v17 = vsub.f32 %v3908_v53, %v3918_v18  ;;  %v3923_v52 = vmul.f32 %v10500_v58, %v10500_v58 }
0x1bdc   :  { %v3927_v61 = vsel %vm321_vm0, %v3923_v52, 0.0  ;;  %v3922_v39 = vmul.f32 %v10502_v17, %v10502_v17 }
0x1bdd   :  { %3928 = vadd.xlane.f32.xlu1 %v3927_v61 }
0x1bde   :  { %v3924_v44 = vsel %vm321_vm0, %v3922_v39, 0.0  ;;  %v10619_v39 = vld [vmem:[%s11349_s15] sm:$0xff] }
0x1bdf   :  { %3925 = vadd.xlane.f32.xlu0 %v3924_v44 }
0x1c66   :  { %v3929_v13 = vpop.xlane.xlu1 %3928 }
0x1c67   :  { %v3931_v15 = vmul.f32 0.015625, %v3929_v13 }
0x1c68   :  { %v3926_v41 = vpop.xlane.xlu0 %3925 }
0x1c69   :  { %v3933_v19 = vadd.f32 1e-12, %v3931_v15  ;;  %v3930_v60 = vmul.f32 0.015625, %v3926_v41 }
0x1c6b   :  { %9080 = vrsqrt.f32 %v3933_v19  ;;  %v3932_v22 = vadd.f32 1e-12, %v3930_v60  ;;  %vm3943_vm14 = vcmp.eq.f32.partialorder %v3933_v19, inf  ;;  %v3946_v24 = vand.u32 2147483648, %v3933_v19 }
0x1c6c   :  { %vm3945_vm15 = vcmp.eq.f32.partialorder %v3933_v19, 0.0 }
0x1c6d   :  { %9082 = vrsqrt.f32 %v3932_v22  ;;  %vm3936_vm6 = vcmp.eq.f32.partialorder %v3932_v22, inf  ;;  %v3939_v30 = vand.u32 2147483648, %v3932_v22  ;;  %vm3938_vm7 = vcmp.eq.f32.partialorder %v3932_v22, 0.0 }
0x1c78   :  { %v9081_v25 = vpop.eup %9080 }
0x1c79   :  { %v3942_v23 = vmul.f32 %v9081_v25, %v3933_v19 }
0x1c7a   :  { %v9083_v31 = vpop.eup %9082 }
0x1c7b   :  { %v3944_v26 = vsel %vm3943_vm14, %v3933_v19, %v3942_v23  ;;  %v3935_v27 = vmul.f32 %v9083_v31, %v3932_v22 }
0x1c7c   :  { %v3947_v46 = vsel %vm3945_vm15, %v3946_v24, %v3944_v26 }
0x1c7d   :  { %9084 = vrcp.f32 %v3947_v46  ;;  %v3937_v14 = vsel %vm3936_vm6, %v3932_v22, %v3935_v27 }
0x1c7e   :  { %v3940_v32 = vsel %vm3938_vm7, %v3939_v30, %v3937_v14 }
0x1c7f   :  { %9086 = vrcp.f32 %v3940_v32 }
0x1c8a   :  { %v9085_v33 = vpop.eup %9084 }
0x1c8b   :  { %v3951_v40 = vmul.f32 %v9085_v33, %v10500_v58 }
0x1c8c   :  { %v9087_v28 = vpop.eup %9086 }
0x1c8d   :  { %v3949_v34 = vmul.f32 %v9087_v28, %v10502_v17  ;;  %v3959_v48 = vmul.f32 %v7835_v42, %v3951_v40  ;;  %v10613_v17 = vld [vmem:[%s11348_s8] sm:$0xff] }
0x1c8f   :  { %v3958_v43 = vmul.f32 %v7835_v42, %v3949_v34  ;;  %v10566_v49 = vadd.f32 %v7836_v45, %v3959_v48 }
0x1c91   :  { %v10561_v62 = vadd.f32 %v7836_v45, %v3958_v43 }
0x1c93   :  { %7853 = vmatmul.mubr.msk.f32.vlgmr.msra.gmra.mxu1 %vm321_vm0, %v10561_v62 }
0x1c94   :  { %4074 = vmatprep.mubr.f32.mxu1 %v9504_v0 }
0x1c97   :  { %7854 = vmatmul.mubr.msk.f32.gmra.mxu1 %vm321_vm0, %v10566_v49 }
0x1c98   :  { %8631 = vmatprep.mubr.msk.f32.mxu1 %vm9505_vm1, %v9504_v0 }
0x1d53   :  { %v4070_v1 = vpop.f32.mrf.mxu1 }
0x1d54   :  { %v10576_v51 = vadd.f32 %v4070_v1, %v3991_v63 }
0x1d55   :  { %v4072_v53 = vpop.f32.mrf.mxu1 }
0x1d56   :  { %v10578_v38 = vadd.f32 %v4072_v53, %v3995_v16  ;;  %4084 = vrot.lane.b32.xlu0 %v10576_v51, %s9506_s21  ;;  %v10592_v21 = vmul.f32 0.25, %v10576_v51 }
0x1d57   :  { %v4076_v54 = vpop.f32.mrf.mxu1 }
0x1d58   :  { %v10582_v55 = vadd.f32 %v4076_v54, %v3991_v63 }
0x1d59   :  { %v4078_v50 = vpop.f32.mrf.mxu1 }
0x1d5a   :  { %v10584_v57 = vadd.f32 %v4078_v50, %v3995_v16  ;;  %4162 = vrot.lane.b32.xlu1 %v10582_v55, %s9506_s21  ;;  %v10601_v58 = vmul.f32 0.25, %v10582_v55 }
0x1d5c   :  { %8645 = vmatpush3.msra.mxu0 %v10584_v57 }
0x1d5d   :  { %8654 = vmatprep.subr.mxu0 %v9504_v0 }
0x1dc8   :  { %v4085_v20 = vpop.permute.xlu0 %4084 }
0x1dc9   :  { %8630 = vmatpush3.xpose.msk.msra.mxu1 %vm410_vm2, %v4085_v20 }
0x1dca   :  { %8634 = vmatprep.subr.mxu1 %v9504_v0 }
0x1dcc   :  { %v4163_v29 = vpop.permute.xlu1 %4162  ;;  %8632 = vmatmul.mubr.msk.f32.vlgmr.msra.gmra.mxu1 %vm410_vm2, %v10592_v21 }
0x1dcd   :  { %8635 = vmatpush3.xpose.msk.msra.mxu1 %vm410_vm2, %v4163_v29  ;;  %8636 = vmatprep.mubr.msk.f32.mxu1 %vm9505_vm1, %v9504_v0 }
0x1dce   :  { %8639 = vmatprep.subr.mxu1 %v9504_v0 }
0x1dd0   :  { %8637 = vmatmul.mubr.msk.f32.vlgmr.msra.gmra.mxu1 %vm410_vm2, %v10601_v58 }
0x1dd1   :  { %8640 = vmatpush3.msra.mxu1 %v10578_v38  ;;  %8641 = vmatprep.mubr.msk.f32.mxu1 %vm9505_vm1, %v9504_v0 }
0x1dd2   :  { %8649 = vmatprep.subr.mxu1 %v9504_v0 }
0x1e8c   :  { %v4157_v18 = vpop.f32.mrf.mxu1 }
0x1e8d   :  { %v4239_v52 = vmul.f32 %v10613_v17, %v4157_v18 }
0x1e8e   :  { %v8633_v61 = vpop.f32.mrf.mxu1 }
0x1e8f   :  { %v4241_v44 = vadd.f32 %v10619_v39, %v4239_v52 }
0x1e90   :  { %v4235_v56 = vpop.f32.mrf.mxu1 }
0x1e91   :  { %v4240_v2 = vmul.f32 %v10625_v37, %v4235_v56  ;;  %v4243_v4 = vsel %vm568_vm3, %v4241_v44, -inf }
0x1e92   :  { %4244 = vmax.xlane.f32.xlu1 %v4243_v4  ;;  %v8638_v36 = vpop.f32.mrf.mxu1 }
0x1e93   :  { %v4242_v7 = vadd.f32 %v10632_v5, %v4240_v2 }
0x1e95   :  { %v4246_v6 = vsel %vm568_vm3, %v4242_v7, -inf }
0x1e96   :  { %4247 = vmax.xlane.f32.xlu0 %v4246_v6 }
0x1ea3   :  { %4491 = vrot.lane.b32.xlu1 %v10582_v55, %s9507_s13 }
0x1f1b   :  { %v4245_v8 = vpop.xlane.xlu1 %4244 }
0x1f1c   :  { %v4249_v9 = vsub.f32 %v4241_v44, %v4245_v8 }
0x1f1e   :  { %v4251_v3 = vmul.f32 1.442695, %v4249_v9 }
0x1f1f   :  { %v4248_v10 = vpop.xlane.xlu0 %4247  ;;  %v4492_v41 = vpop.permute.xlu1 %4491 }
0x1f20   :  { %9088 = vpow2.f32 %v4251_v3  ;;  %v4250_v35 = vsub.f32 %v4242_v7, %v4248_v10 }
0x1f22   :  { %v4253_v59 = vmul.f32 1.442695, %v4250_v35 }
0x1f24   :  { %9090 = vpow2.f32 %v4253_v59 }
0x1f2d   :  { %v9089_v11 = vpop.eup %9088 }
0x1f2e   :  { %v4255_v12 = vsel %vm568_vm3, %v9089_v11, 0.0 }
0x1f2f   :  { %4256 = vadd.xlane.f32.xlu0 %v4255_v12 }
0x1f31   :  { %v9091_v13 = vpop.eup %9090 }
0x1f32   :  { %v4258_v15 = vsel %vm568_vm3, %v9091_v13, 0.0 }
0x1f33   :  { %4259 = vadd.xlane.f32.xlu1 %v4258_v15 }
0x1f44   :  { %4411 = vrot.lane.b32.xlu1 %v10592_v21, %s9508_s3 }
0x1f45   :  { %4413 = vrot.lane.b32.xlu0 %v10576_v51, %s9507_s13 }
0x1f49   :  { %4489 = vrot.lane.b32.xlu0 %v10601_v58, %s9508_s3 }
0x1fb8   :  { %v4257_v19 = vpop.xlane.xlu0 %4256 }
0x1fb9   :  { %9092 = vrcp.f32 %v4257_v19 }
0x1fbc   :  { %v4260_v60 = vpop.xlane.xlu1 %4259  ;;  %v4414_v23 = vpop.permute.xlu0 %4413 }
0x1fbd   :  { %9094 = vrcp.f32 %v4260_v60 }
0x1fc0   :  { %v4412_v26 = vpop.permute.xlu1 %4411  ;;  %v4490_v46 = vpop.permute.xlu0 %4489 }
0x1fc6   :  { %v9093_v22 = vpop.eup %9092 }
0x1fc7   :  { %v4263_v25 = vmul.f32 %v9093_v22, %v9089_v11 }
0x1fc9   :  { %8642 = vmatmul.mubr.msk.f32.vlgmr.msra.gmra.mxu1 %vm568_vm3, %v4263_v25 }
0x1fca   :  { %v9095_v24 = vpop.eup %9094  ;;  %8650 = vmatpush3.xpose.msk.msra.mxu1 %vm410_vm2, %v4414_v23  ;;  %8651 = vmatprep.mubr.msk.f32.mxu1 %vm9505_vm1, %v9504_v0 }
0x1fcb   :  { %v4264_v31 = vmul.f32 %v9095_v24, %v9091_v13  ;;  %8659 = vmatprep.subr.mxu1 %v9504_v0 }
0x1fcd   :  { %8647 = vmatmul.mubr.msk.f32.vlgmr.msra.gmra.mxu0 %vm568_vm3, %v4264_v31  ;;  %8652 = vmatmul.mubr.msk.f32.vlgmr.msra.gmra.mxu1 %vm410_vm2, %v4412_v26 }
0x1fce   :  { %8655 = vmatpush3.xpose.msk.msra.mxu0 %vm410_vm2, %v4492_v41  ;;  %8656 = vmatprep.mubr.msk.f32.mxu0 %vm9505_vm1, %v9504_v0 }
0x1fcf   :  { %8664 = vmatprep.subr.mxu0 %v9504_v0  ;;  %8661 = vmatprep.mubr.msk.f32.mxu1 %vm9505_vm1, %v9504_v0 }
0x1fd1   :  { %8657 = vmatmul.mubr.msk.f32.vlgmr.msra.gmra.mxu0 %vm410_vm2, %v4490_v46 }
0x1fd2   :  { %8666 = vmatprep.mubr.msk.f32.mxu0 %vm9505_vm1, %v9504_v0 }
0x2089   :  { %v10662_v27 = vpop.f32.mrf.mxu1 }
0x208b   :  { %v8643_v30 = vpop.f32.mrf.mxu1 }
0x208d   :  { %v10664_v14 = vpop.f32.mrf.mxu0  ;;  %v4485_v32 = vpop.f32.mrf.mxu1 }
0x208e   :  { %v4567_v33 = vmul.f32 %v10613_v17, %v4485_v32 }
0x208f   :  { %v8648_v28 = vpop.f32.mrf.mxu0  ;;  %v8653_v34 = vpop.f32.mrf.mxu1 }
0x2090   :  { %v4569_v40 = vadd.f32 %v10619_v39, %v4567_v33 }
0x2091   :  { %v4563_v42 = vpop.f32.mrf.mxu0 }
0x2092   :  { %v4568_v43 = vmul.f32 %v10625_v37, %v4563_v42  ;;  %v4571_v45 = vsel %vm568_vm3, %v4569_v40, -inf }
0x2093   :  { %v8658_v48 = vpop.f32.mrf.mxu0  ;;  %4572 = vmax.xlane.f32.xlu1 %v4571_v45 }
0x2094   :  { %v4570_v47 = vadd.f32 %v10632_v5, %v4568_v43 }
0x2096   :  { %v4574_v63 = vsel %vm568_vm3, %v4570_v47, -inf }
0x2097   :  { %4575 = vmax.xlane.f32.xlu0 %v4574_v63 }
0x20a4   :  { %4671 = vrot.lane.b32.xlu1 %v10584_v57, %s9508_s3 }
0x20a8   :  { %4749 = vrot.lane.b32.xlu1 %v10576_v51, %s9485_s30 }
0x20ad   :  { %4594 = vrot.lane.b32.xlu0 %v10578_v38, %s9508_s3 }
0x211c   :  { %v4573_v16 = vpop.xlane.xlu1 %4572 }
0x211d   :  { %v4577_v1 = vsub.f32 %v4569_v40, %v4573_v16 }
0x211f   :  { %v4579_v53 = vmul.f32 1.442695, %v4577_v1 }
0x2120   :  { %v4576_v54 = vpop.xlane.xlu0 %4575  ;;  %v4672_v50 = vpop.permute.xlu1 %4671 }
0x2121   :  { %9096 = vpow2.f32 %v4579_v53  ;;  %v4578_v20 = vsub.f32 %v4570_v47, %v4576_v54  ;;  %8665 = vmatpush3.msra.mxu0 %v4672_v50 }
0x2122   :  { %8674 = vmatprep.subr.mxu0 %v9504_v0 }
0x2123   :  { %v4581_v29 = vmul.f32 1.442695, %v4578_v20 }
0x2124   :  { %v4595_v18 = vpop.permute.xlu0 %4594  ;;  %v4750_v2 = vpop.permute.xlu1 %4749 }
0x2125   :  { %9098 = vpow2.f32 %v4581_v29  ;;  %8660 = vmatpush3.msra.mxu1 %v4595_v18 }
0x2126   :  { %8669 = vmatprep.subr.mxu1 %v9504_v0 }
0x212e   :  { %v9097_v52 = vpop.eup %9096 }
0x212f   :  { %v4583_v61 = vsel %vm568_vm3, %v9097_v52, 0.0 }
0x2130   :  { %4584 = vadd.xlane.f32.xlu0 %v4583_v61 }
0x2132   :  { %v9099_v44 = vpop.eup %9098 }
0x2133   :  { %v4586_v56 = vsel %vm568_vm3, %v9099_v44, 0.0 }
0x2134   :  { %4587 = vadd.xlane.f32.xlu1 %v4586_v56 }
0x2145   :  { %4747 = vrot.lane.b32.xlu1 %v10592_v21, %s9509_s10 }
0x2146   :  { %4827 = vrot.lane.b32.xlu0 %v10582_v55, %s9485_s30 }
0x214a   :  { %4825 = vrot.lane.b32.xlu0 %v10601_v58, %s9509_s10 }
0x21b9   :  { %v4585_v4 = vpop.xlane.xlu0 %4584 }
0x21ba   :  { %9100 = vrcp.f32 %v4585_v4 }
0x21bd   :  { %v4588_v36 = vpop.xlane.xlu1 %4587  ;;  %v4828_v9 = vpop.permute.xlu0 %4827 }
0x21be   :  { %9102 = vrcp.f32 %v4588_v36 }
0x21c1   :  { %v4748_v10 = vpop.permute.xlu1 %4747  ;;  %v4826_v35 = vpop.permute.xlu0 %4825 }
0x21c7   :  { %v9101_v7 = vpop.eup %9100 }
0x21c8   :  { %v4591_v6 = vmul.f32 %v9101_v7, %v9097_v52 }
0x21ca   :  { %8662 = vmatmul.mubr.msk.f32.vlgmr.msra.gmra.mxu1 %vm568_vm3, %v4591_v6 }
0x21cb   :  { %v9103_v8 = vpop.eup %9102  ;;  %8670 = vmatpush3.xpose.msk.msra.mxu1 %vm410_vm2, %v4750_v2  ;;  %8671 = vmatprep.mubr.msk.f32.mxu1 %vm9505_vm1, %v9504_v0 }
0x21cc   :  { %v4592_v3 = vmul.f32 %v9103_v8, %v9099_v44  ;;  %8679 = vmatprep.subr.mxu1 %v9504_v0 }
0x21ce   :  { %8667 = vmatmul.mubr.msk.f32.vlgmr.msra.gmra.mxu0 %vm568_vm3, %v4592_v3  ;;  %8672 = vmatmul.mubr.msk.f32.vlgmr.msra.gmra.mxu1 %vm410_vm2, %v4748_v10 }
0x21cf   :  { %8675 = vmatpush3.xpose.msk.msra.mxu0 %vm410_vm2, %v4828_v9  ;;  %8676 = vmatprep.mubr.msk.f32.mxu0 %vm9505_vm1, %v9504_v0 }
0x21d0   :  { %8684 = vmatprep.subr.mxu0 %v9504_v0  ;;  %8681 = vmatprep.mubr.msk.f32.mxu1 %vm9505_vm1, %v9504_v0 }
0x21d2   :  { %8677 = vmatmul.mubr.msk.f32.vlgmr.msra.gmra.mxu0 %vm410_vm2, %v4826_v35 }
0x21d3   :  { %8686 = vmatprep.mubr.msk.f32.mxu0 %vm9505_vm1, %v9504_v0 }
0x228a   :  { %v10704_v59 = vpop.f32.mrf.mxu1 }
0x228c   :  { %v8663_v11 = vpop.f32.mrf.mxu1 }
0x228e   :  { %v10706_v12 = vpop.f32.mrf.mxu0  ;;  %v4821_v13 = vpop.f32.mrf.mxu1 }
0x228f   :  { %v4903_v15 = vmul.f32 %v10613_v17, %v4821_v13 }
0x2290   :  { %v8668_v41 = vpop.f32.mrf.mxu0  ;;  %v8673_v19 = vpop.f32.mrf.mxu1 }
0x2291   :  { %v4905_v60 = vadd.f32 %v10619_v39, %v4903_v15 }
0x2292   :  { %v4899_v22 = vpop.f32.mrf.mxu0 }
0x2293   :  { %v4904_v25 = vmul.f32 %v10625_v37, %v4899_v22  ;;  %v4907_v23 = vsel %vm568_vm3, %v4905_v60, -inf }
0x2294   :  { %v8678_v24 = vpop.f32.mrf.mxu0  ;;  %4908 = vmax.xlane.f32.xlu1 %v4907_v23  ;;  %v7885_v23 = vld [vmem:[%s11350_s17 + $0x70] sm:$0xff] }
0x2295   :  { %v4906_v31 = vadd.f32 %v10632_v5, %v4904_v25  ;;  %v7884_v24 = vld [vmem:[%s11350_s17 + $0x68] sm:$0xff] }
0x2297   :  { %v4910_v26 = vsel %vm568_vm3, %v4906_v31, -inf }
0x2298   :  { %4911 = vmax.xlane.f32.xlu0 %v4910_v26  ;;  %v7882_v26 = vld [vmem:[%s11350_s17 + $0x58] sm:$0xff] }
0x22a5   :  { %5005 = vrot.lane.b32.xlu1 %v10584_v57, %s9509_s10 }
0x22a9   :  { %5083 = vrot.lane.b32.xlu1 %v10576_v51, %s9489_s1 }
0x22ae   :  { %4929 = vrot.lane.b32.xlu0 %v10578_v38, %s9509_s10 }
0x231d   :  { %v4909_v46 = vpop.xlane.xlu1 %4908 }
0x231e   :  { %v4913_v30 = vsub.f32 %v4905_v60, %v4909_v46  ;;  %v7881_v46 = vld [vmem:[%s11350_s17 + $0x50] sm:$0xff] }
0x2320   :  { %v4915_v32 = vmul.f32 1.442695, %v4913_v30  ;;  %v7880_v30 = vld [vmem:[%s11350_s17 + $0x48] sm:$0xff] }
0x2321   :  { %v4912_v33 = vpop.xlane.xlu0 %4911  ;;  %v5006_v28 = vpop.permute.xlu1 %5005 }
0x2322   :  { %9104 = vpow2.f32 %v4915_v32  ;;  %v4914_v34 = vsub.f32 %v4906_v31, %v4912_v33  ;;  %8685 = vmatpush3.msra.mxu0 %v5006_v28  ;;  %v7883_v31 = vld [vmem:[%s11350_s17 + $0x60] sm:$0xff] }
0x2323   :  { %8694 = vmatprep.subr.mxu0 %v9504_v0  ;;  %v7879_v32 = vld [vmem:[%s11350_s17 + $0x40] sm:$0xff] }
0x2324   :  { %v4917_v40 = vmul.f32 1.442695, %v4914_v34 }
0x2325   :  { %v4930_v42 = vpop.permute.xlu0 %4929  ;;  %v5084_v47 = vpop.permute.xlu1 %5083 }
0x2326   :  { %9106 = vpow2.f32 %v4917_v40  ;;  %8680 = vmatpush3.msra.mxu1 %v4930_v42 }
0x2327   :  { %8689 = vmatprep.subr.mxu1 %v9504_v0 }
0x232f   :  { %v9105_v51 = vpop.eup %9104 }
0x2330   :  { %v4919_v43 = vsel %vm568_vm3, %v9105_v51, 0.0 }
0x2331   :  { %4920 = vadd.xlane.f32.xlu0 %v4919_v43 }
0x2333   :  { %v9107_v45 = vpop.eup %9106 }
0x2334   :  { %v4922_v48 = vsel %vm568_vm3, %v9107_v45, 0.0 }
0x2335   :  { %4923 = vadd.xlane.f32.xlu1 %v4922_v48 }
0x2346   :  { %5081 = vrot.lane.b32.xlu1 %v10592_v21, %s9510_s23 }
0x2347   :  { %5161 = vrot.lane.b32.xlu0 %v10582_v55, %s9489_s1 }
0x234b   :  { %5159 = vrot.lane.b32.xlu0 %v10601_v58, %s9510_s23 }
0x23ba   :  { %v4921_v63 = vpop.xlane.xlu0 %4920 }
0x23bb   :  { %9108 = vrcp.f32 %v4921_v63 }
0x23be   :  { %v4924_v16 = vpop.xlane.xlu1 %4923  ;;  %v5162_v50 = vpop.permute.xlu0 %5161 }
0x23bf   :  { %9110 = vrcp.f32 %v4924_v16 }
0x23c2   :  { %v5082_v21 = vpop.permute.xlu1 %5081  ;;  %v5160_v58 = vpop.permute.xlu0 %5159 }
0x23c8   :  { %v9109_v1 = vpop.eup %9108 }
0x23c9   :  { %v4927_v53 = vmul.f32 %v9109_v1, %v9105_v51 }
0x23cb   :  { %8682 = vmatmul.mubr.msk.f32.vlgmr.msra.gmra.mxu1 %vm568_vm3, %v4927_v53 }
0x23cc   :  { %v9111_v54 = vpop.eup %9110  ;;  %8690 = vmatpush3.xpose.msk.msra.mxu1 %vm410_vm2, %v5084_v47  ;;  %8691 = vmatprep.mubr.msk.f32.mxu1 %vm9505_vm1, %v9504_v0 }
0x23cd   :  { %v4928_v55 = vmul.f32 %v9111_v54, %v9107_v45  ;;  %8699 = vmatprep.subr.mxu1 %v9504_v0 }
0x23cf   :  { %8687 = vmatmul.mubr.msk.f32.vlgmr.msra.gmra.mxu0 %vm568_vm3, %v4928_v55  ;;  %8692 = vmatmul.mubr.msk.f32.vlgmr.msra.gmra.mxu1 %vm410_vm2, %v5082_v21  ;;  %v9180_v55 = vld [vmem:[#allocation2] sm:$0xff] }
0x23d0   :  { %8695 = vmatpush3.xpose.msk.msra.mxu0 %vm410_vm2, %v5162_v50  ;;  %8696 = vmatprep.mubr.msk.f32.mxu0 %vm9505_vm1, %v9504_v0 }
0x23d1   :  { %8704 = vmatprep.subr.mxu0 %v9504_v0  ;;  %8701 = vmatprep.mubr.msk.f32.mxu1 %vm9505_vm1, %v9504_v0 }
0x23d3   :  { %8697 = vmatmul.mubr.msk.f32.vlgmr.msra.gmra.mxu0 %vm410_vm2, %v5160_v58 }
0x23d4   :  { %8706 = vmatprep.mubr.msk.f32.mxu0 %vm9505_vm1, %v9504_v0 }
0x248b   :  { %v5001_v20 = vpop.f32.mrf.mxu1 }
0x248d   :  { %v8683_v29 = vpop.f32.mrf.mxu1 }
0x248f   :  { %v5077_v18 = vpop.f32.mrf.mxu0  ;;  %v5155_v52 = vpop.f32.mrf.mxu1 }
0x2490   :  { %v5237_v61 = vmul.f32 %v10613_v17, %v5155_v52 }
0x2491   :  { %v8688_v44 = vpop.f32.mrf.mxu0  ;;  %v8693_v56 = vpop.f32.mrf.mxu1 }
0x2492   :  { %v5239_v2 = vadd.f32 %v10619_v39, %v5237_v61 }
0x2493   :  { %v5233_v4 = vpop.f32.mrf.mxu0 }
0x2494   :  { %v5238_v36 = vmul.f32 %v10625_v37, %v5233_v4  ;;  %v5241_v7 = vsel %vm568_vm3, %v5239_v2, -inf }
0x2495   :  { %v8698_v6 = vpop.f32.mrf.mxu0  ;;  %5242 = vmax.xlane.f32.xlu1 %v5241_v7 }
0x2496   :  { %v5240_v8 = vadd.f32 %v10632_v5, %v5238_v36 }
0x2498   :  { %v5244_v9 = vsel %vm568_vm3, %v5240_v8, -inf }
0x2499   :  { %5245 = vmax.xlane.f32.xlu0 %v5244_v9  ;;  %v7910_v9 = vld [vmem:[%s11351_s2 + $0x78] sm:$0xff] }
0x251e   :  { %v5243_v3 = vpop.xlane.xlu1 %5242 }
0x251f   :  { %v5247_v10 = vsub.f32 %v5239_v2, %v5243_v3  ;;  %v7909_v3 = vld [vmem:[%s11351_s2 + $0x70] sm:$0xff] }
0x2521   :  { %v5249_v35 = vmul.f32 1.442695, %v5247_v10  ;;  %v7899_v10 = vld [vmem:[%s11352_s0 + $0x78] sm:$0xff] }
0x2522   :  { %v5246_v17 = vpop.xlane.xlu0 %5245 }
0x2523   :  { %9112 = vpow2.f32 %v5249_v35  ;;  %v5248_v11 = vsub.f32 %v5240_v8, %v5246_v17  ;;  %v7908_v35 = vld [vmem:[%s11351_s2 + $0x68] sm:$0xff]  ;;  %v7898_v17 = vld [vmem:[%s11352_s0 + $0x70] sm:$0xff] }
0x2525   :  { %v5251_v13 = vmul.f32 1.442695, %v5248_v11  ;;  %v7907_v11 = vld [vmem:[%s11351_s2 + $0x60] sm:$0xff] }
0x2527   :  { %9114 = vpow2.f32 %v5251_v13  ;;  %v7897_v13 = vld [vmem:[%s11352_s0 + $0x68] sm:$0xff] }
0x2530   :  { %v9113_v39 = vpop.eup %9112 }
0x2531   :  { %v5253_v37 = vsel %vm568_vm3, %v9113_v39, 0.0 }
0x2532   :  { %5254 = vadd.xlane.f32.xlu0 %v5253_v37  ;;  %v7896_v37 = vld [vmem:[%s11352_s0 + $0x60] sm:$0xff] }
0x2534   :  { %v9115_v15 = vpop.eup %9114 }
0x2535   :  { %v5256_v41 = vsel %vm568_vm3, %v9115_v15, 0.0 }
0x2536   :  { %5257 = vadd.xlane.f32.xlu1 %v5256_v41  ;;  %v7895_v41 = vld [vmem:[%s11352_s0 + $0x58] sm:$0xff] }
0x2547   :  { %5339 = vrot.lane.b32.xlu1 %v10584_v57, %s9510_s23 }
0x2548   :  { %5263 = vrot.lane.b32.xlu0 %v10578_v38, %s9510_s23 }
0x254b   :  { %5417 = vrot.lane.b32.xlu1 %v10704_v59, %s9489_s1 }
0x254c   :  { %5419 = vrot.lane.b32.xlu0 %v10706_v12, %s9489_s1  ;;  %v7886_v12 = vld [vmem:[%s11350_s17 + $0x78] sm:$0xff] }
0x254f   :  { %5425 = vrot.lane.b32.xlu1 %v5001_v20, %s9485_s30 }
0x2550   :  { %5427 = vrot.lane.b32.xlu0 %v5077_v18, %s9485_s30 }
0x25bb   :  { %v5255_v5 = vpop.xlane.xlu0 %5254 }
0x25bc   :  { %9116 = vrcp.f32 %v5255_v5  ;;  %v7904_v5 = vld [vmem:[%s11351_s2 + $0x48] sm:$0xff] }
0x25bf   :  { %v5264_v19 = vpop.permute.xlu0 %5263  ;;  %v5258_v60 = vpop.xlane.xlu1 %5257 }
0x25c0   :  { %9118 = vrcp.f32 %v5258_v60  ;;  %8700 = vmatpush3.msra.mxu1 %v5264_v19  ;;  %v7894_v19 = vld [vmem:[%s11352_s0 + $0x50] sm:$0xff]  ;;  %v7903_v60 = vld [vmem:[%s11351_s2 + $0x40] sm:$0xff] }
0x25c1   :  { %8709 = vmatprep.subr.mxu1 %v7886_v12 }
0x25c3   :  { %v5340_v57 = vpop.permute.xlu1 %5339  ;;  %v5420_v51 = vpop.permute.xlu0 %5419 }
0x25c4   :  { %8705 = vmatpush3.msra.mxu0 %v5340_v57  ;;  %v5440_v1 = vsel %vm410_vm2, %v10664_v14, %v5420_v51  ;;  %v7893_v57 = vld [vmem:[%s11352_s0 + $0x48] sm:$0xff] }
0x25c5   :  { %8728 = vmatprep.subr.mxu0 %v7899_v10 }
0x25c7   :  { %v5418_v42 = vpop.permute.xlu1 %5417  ;;  %v5428_v48 = vpop.permute.xlu0 %5427 }
0x25c8   :  { %v5439_v45 = vsel %vm410_vm2, %v10662_v27, %v5418_v42  ;;  %v5442_v53 = vsel %vm1767_vm4, %v5440_v1, %v5428_v48  ;;  %v7887_v27 = vld [vmem:[#allocation6 + $0x1] ss:$0 sm:$0xff] }
0x25c9   :  { %v9117_v22 = vpop.eup %9116 }
0x25ca   :  { %v5261_v38 = vmul.f32 %v9117_v22, %v9113_v39  ;;  %v7906_v39 = vld [vmem:[%s11351_s2 + $0x58] sm:$0xff]  ;;  %v7892_v22 = vld [vmem:[%s11352_s0 + $0x40] sm:$0xff] }
0x25cb   :  { %v5426_v43 = vpop.permute.xlu1 %5425 }
0x25cc   :  { %8702 = vmatmul.mubr.msk.f32.vlgmr.msra.gmra.mxu1 %vm568_vm3, %v5261_v38  ;;  %v5441_v47 = vsel %vm1767_vm4, %v5439_v45, %v5426_v43  ;;  %v9181_v38 = vld [vmem:[#allocation2 + $0x8] sm:$0xff] }
0x25cd   :  { %v9119_v59 = vpop.eup %9118  ;;  %8710 = vmatpush3.msra.mxu1 %v7886_v12 }
0x25ce   :  { %v5262_v25 = vmul.f32 %v9119_v59, %v9115_v15  ;;  %8711 = vmatprep.subr.mxu1 %v7885_v23  ;;  %v7905_v15 = vld [vmem:[%s11351_s2 + $0x50] sm:$0xff] }
0x25cf   :  { %8712 = vmatpush3.msra.mxu1 %v7885_v23  ;;  %v9182_v59 = vld [vmem:[#allocation2 + $0x10] sm:$0xff] }
0x25d0   :  { %8707 = vmatmul.mubr.msk.f32.vlgmr.msra.gmra.mxu0 %vm568_vm3, %v5262_v25  ;;  %8713 = vmatprep.subr.mxu1 %v7884_v24  ;;  %v9183_v25 = vld [vmem:[#allocation2 + $0x18] sm:$0xff] }
0x25d1   :  { %8714 = vmatpush3.msra.mxu1 %v7884_v24  ;;  %8729 = vmatpush3.msra.mxu0 %v7899_v10  ;;  %v10925_v10 = vld [vmem:[%s11354_s29] sm:$0xff] }
0x25d2   :  { %8715 = vmatprep.subr.mxu1 %v7883_v31  ;;  %8730 = vmatprep.subr.mxu0 %v7898_v17 }
0x25d3   :  { %8716 = vmatpush3.msra.mxu1 %v7883_v31  ;;  %8731 = vmatpush3.msra.mxu0 %v7898_v17 }
0x25d4   :  { %8717 = vmatprep.subr.mxu1 %v7882_v26  ;;  %8732 = vmatprep.subr.mxu0 %v7897_v13 }
0x25d5   :  { %8718 = vmatpush3.msra.mxu1 %v7882_v26  ;;  %8733 = vmatpush3.msra.mxu0 %v7897_v13  ;;  %v10932_v13 = vld [vmem:[%s11353_s5 + $0x8] sm:$0xff] }
0x25d6   :  { %8719 = vmatprep.subr.mxu1 %v7881_v46  ;;  %8734 = vmatprep.subr.mxu0 %v7896_v37 }
0x25d7   :  { %8720 = vmatpush3.msra.mxu1 %v7881_v46  ;;  %8735 = vmatpush3.msra.mxu0 %v7896_v37 }
0x25d8   :  { %8721 = vmatprep.subr.mxu1 %v7880_v30  ;;  %8736 = vmatprep.subr.mxu0 %v7895_v41 }
0x25d9   :  { %8722 = vmatpush3.msra.mxu1 %v7880_v30  ;;  %8737 = vmatpush3.msra.mxu0 %v7895_v41 }
0x25da   :  { %8723 = vmatprep.subr.mxu1 %v7879_v32  ;;  %8738 = vmatprep.subr.mxu0 %v7894_v19 }
0x25db   :  { %8724 = vmatpush3.msra.mxu1 %v7879_v32  ;;  %8739 = vmatpush3.msra.mxu0 %v7894_v19 }
0x25dc   :  { %8747 = vmatprep.subr.mxu1 %v7910_v9  ;;  %8740 = vmatprep.subr.mxu0 %v7893_v57 }
0x25dd   :  { %8741 = vmatpush3.msra.mxu0 %v7893_v57 }
0x25de   :  { %8742 = vmatprep.subr.mxu0 %v7892_v22 }
0x25df   :  { %8743 = vmatpush3.msra.mxu0 %v7892_v22 }
0x25e0   :  { %8769 = vmatprep.subr.mxu0 %v9504_v0 }
0x268c   :  { %v5335_v33 = vpop.f32.mrf.mxu1 }
0x268d   :  { %5433 = vrot.lane.b32.xlu1 %v5335_v33, %s9507_s13 }
0x268e   :  { %v8703_v28 = vpop.f32.mrf.mxu1 }
0x2690   :  { %v5411_v34 = vpop.f32.mrf.mxu0 }
0x2691   :  { %5435 = vrot.lane.b32.xlu0 %v5411_v34, %s9507_s13 }
0x2692   :  { %v8708_v40 = vpop.f32.mrf.mxu0 }
0x26ff   :  { %v5434_v63 = vpop.permute.xlu1 %5433 }
0x2700   :  { %v5443_v16 = vsel %vm1770_vm5, %v5441_v47, %v5434_v63  ;;  %v7890_v63 = vld [vmem:[#allocation15 + $0x1] ss:$0 sm:$0xff] }
0x2701   :  { %8725 = vmatprep.mubr.msk.f32.mxu1 %vm321_vm0, %v5443_v16 }
0x2703   :  { %v5436_v54 = vpop.permute.xlu0 %5435 }
0x2704   :  { %v5444_v50 = vsel %vm1770_vm5, %v5442_v53, %v5436_v54  ;;  %v7891_v54 = vld [vmem:[#allocation16 + $0x1] ss:$0 sm:$0xff] }
0x2705   :  { %8726 = vmatmul.mubr.msk.f32.vlgmr.msra.gmra.mxu1 %vm321_vm0, %v5444_v50 }
0x2706   :  { %8763 = vmatprep.mubr.msk.f32.mxu1 %vm321_vm0, %v9180_v55  ;;  %8748 = vmatpush3.msra.mxu1 %v7910_v9 }
0x2707   :  { %8749 = vmatprep.subr.mxu1 %v7909_v3 }
0x2708   :  { %8750 = vmatpush3.msra.mxu1 %v7909_v3 }
0x2709   :  { %8751 = vmatprep.subr.mxu1 %v7908_v35 }
0x270a   :  { %8752 = vmatpush3.msra.mxu1 %v7908_v35 }
0x270b   :  { %8753 = vmatprep.subr.mxu1 %v7907_v11 }
0x270c   :  { %8754 = vmatpush3.msra.mxu1 %v7907_v11 }
0x270d   :  { %8755 = vmatprep.subr.mxu1 %v7906_v39 }
0x270e   :  { %8756 = vmatpush3.msra.mxu1 %v7906_v39 }
0x270f   :  { %8757 = vmatprep.subr.mxu1 %v7905_v15 }
0x2710   :  { %8758 = vmatpush3.msra.mxu1 %v7905_v15  ;;  %v10938_v15 = vld [vmem:[%s11354_s29 + $0x8] sm:$0xff] }
0x2711   :  { %8759 = vmatprep.subr.mxu1 %v7904_v5 }
0x2712   :  { %8760 = vmatpush3.msra.mxu1 %v7904_v5 }
0x2713   :  { %8761 = vmatprep.subr.mxu1 %v7903_v60 }
0x2714   :  { %8762 = vmatpush3.msra.mxu1 %v7903_v60 }
0x2715   :  { %8764 = vmatmul.mubr.msk.f32.vlgmr.msra.gmra.mxu1 %vm321_vm0, %v9181_v38  ;;  %8790 = vmatprep.subr.mxu1 %v9504_v0 }
0x2716   :  { %8766 = vmatprep.mubr.msk.f32.mxu1 %vm321_vm0, %v9182_v59 }
0x2719   :  { %8767 = vmatmul.mubr.msk.f32.gmra.mxu1 %vm321_vm0, %v9183_v25 }
0x271a   :  { %8794 = vmatprep.mubr.msk.f32.mxu1 %vm9505_vm1, %v9504_v0 }
0x27c5   :  { %v8727_v21 = vpop.f32.mrf.mxu1 }
0x27c6   :  { %v5540_v58 = vadd.f32 %v8727_v21, %v7887_v27  ;;  %v7911_v21 = vld [vmem:[#allocation9 + $0x1] ss:$0 sm:$0xff] }
0x27c7   :  { %v5534_v20 = vpop.f32.mrf.mxu1 }
0x27c8   :  { %v5544_v29 = vadd.f32 %v5540_v58, %v10566_v49  ;;  %v5535_v18 = vadd.f32 %v7887_v27, %v5534_v20 }
0x27ca   :  { %v5543_v52 = vadd.f32 %v5535_v18, %v10561_v62  ;;  %v5552_v14 = vsel %vm321_vm0, %v5544_v29, 0.0 }
0x27cb   :  { %5553 = vadd.xlane.f32.xlu0 %v5552_v14  ;;  %v7900_v14 = vld [vmem:[#allocation7 + $0x1] ss:$0 sm:$0xff] }
0x27cc   :  { %v5549_v61 = vsel %vm321_vm0, %v5543_v52, 0.0 }
0x27cd   :  { %5550 = vadd.xlane.f32.xlu1 %v5549_v61 }
0x27d5   :  { %v8765_v58 = vpop.f32.mrf.mxu1 }
0x27d6   :  { %v10884_v20 = vadd.f32 %v8765_v58, %v7911_v21 }
0x2854   :  { %v5554_v44 = vpop.xlane.xlu0 %5553 }
0x2855   :  { %v5556_v56 = vmul.f32 0.015625, %v5554_v44 }
0x2856   :  { %v5551_v2 = vpop.xlane.xlu1 %5550 }
0x2857   :  { %v10807_v4 = vsub.f32 %v5544_v29, %v5556_v56  ;;  %v5555_v36 = vmul.f32 0.015625, %v5551_v2  ;;  %v5786_v29 = vpop.f32.mrf.mxu1 }
0x2858   :  { %v10889_v18 = vadd.f32 %v7911_v21, %v5786_v29 }
0x2859   :  { %v10809_v7 = vsub.f32 %v5543_v52, %v5555_v36  ;;  %v5560_v49 = vmul.f32 %v10807_v4, %v10807_v4  ;;  %v8768_v56 = vpop.f32.mrf.mxu1 }
0x285a   :  { %v10894_v2 = vadd.f32 %v8768_v56, %v7911_v21 }
0x285b   :  { %v5564_v6 = vsel %vm321_vm0, %v5560_v49, 0.0  ;;  %v5559_v62 = vmul.f32 %v10809_v7, %v10809_v7  ;;  %v5796_v36 = vpop.f32.mrf.mxu1 }
0x285c   :  { %5565 = vadd.xlane.f32.xlu1 %v5564_v6  ;;  %v10905_v49 = vadd.f32 %v7911_v21, %v5796_v36 }
0x285d   :  { %v5561_v8 = vsel %vm321_vm0, %v5559_v62, 0.0 }
0x285e   :  { %5562 = vadd.xlane.f32.xlu0 %v5561_v8  ;;  %v10919_v8 = vld [vmem:[%s11353_s5] sm:$0xff] }
0x28e5   :  { %v5566_v12 = vpop.xlane.xlu1 %5565 }
0x28e6   :  { %v5568_v23 = vmul.f32 0.015625, %v5566_v12 }
0x28e7   :  { %v5563_v24 = vpop.xlane.xlu0 %5562 }
0x28e8   :  { %v5570_v31 = vadd.f32 1e-12, %v5568_v23  ;;  %v5567_v26 = vmul.f32 0.015625, %v5563_v24 }
0x28ea   :  { %9120 = vrsqrt.f32 %v5570_v31  ;;  %v5569_v46 = vadd.f32 1e-12, %v5567_v26  ;;  %vm5580_vm3 = vcmp.eq.f32.partialorder %v5570_v31, inf  ;;  %v5583_v33 = vand.u32 2147483648, %v5570_v31 }
0x28eb   :  { %vm5582_vm8 = vcmp.eq.f32.partialorder %v5570_v31, 0.0 }
0x28ec   :  { %9122 = vrsqrt.f32 %v5569_v46  ;;  %vm5573_vm9 = vcmp.eq.f32.partialorder %v5569_v46, inf  ;;  %v5576_v51 = vand.u32 2147483648, %v5569_v46  ;;  %vm5575_vm10 = vcmp.eq.f32.partialorder %v5569_v46, 0.0 }
0x28f7   :  { %v9121_v30 = vpop.eup %9120 }
0x28f8   :  { %v5579_v32 = vmul.f32 %v9121_v30, %v5570_v31 }
0x28f9   :  { %v9123_v28 = vpop.eup %9122 }
0x28fa   :  { %v5581_v34 = vsel %vm5580_vm3, %v5570_v31, %v5579_v32  ;;  %v5572_v42 = vmul.f32 %v9123_v28, %v5569_v46 }
0x28fb   :  { %v5584_v40 = vsel %vm5582_vm8, %v5583_v33, %v5581_v34 }
0x28fc   :  { %9124 = vrcp.f32 %v5584_v40  ;;  %v5574_v43 = vsel %vm5573_vm9, %v5569_v46, %v5572_v42 }
0x28fd   :  { %v5577_v45 = vsel %vm5575_vm10, %v5576_v51, %v5574_v43 }
0x28fe   :  { %9126 = vrcp.f32 %v5577_v45 }
0x2909   :  { %v9125_v48 = vpop.eup %9124 }
0x290a   :  { %v5588_v47 = vmul.f32 %v9125_v48, %v10807_v4 }
0x290b   :  { %v9127_v16 = vpop.eup %9126 }
0x290c   :  { %v5586_v1 = vmul.f32 %v9127_v16, %v10809_v7  ;;  %v5596_v53 = vmul.f32 %v7890_v63, %v5588_v47 }
0x290e   :  { %v5595_v50 = vmul.f32 %v7890_v63, %v5586_v1  ;;  %v10876_v27 = vadd.f32 %v7891_v54, %v5596_v53 }
0x2910   :  { %v10874_v55 = vadd.f32 %v7891_v54, %v5595_v50 }
0x2912   :  { %8744 = vmatprep.mubr.msk.f32.mxu0 %vm321_vm0, %v10874_v55 }
0x2913   :  { %8745 = vmatmul.mubr.msk.f32.vlgmr.msra.gmra.mxu0 %vm321_vm0, %v10876_v27 }
0x2914   :  { %8773 = vmatprep.mubr.msk.f32.mxu0 %vm9505_vm1, %v9504_v0  ;;  %8770 = vmatpush3.xpose.msk.msra.mxu0 %vm410_vm2, %v10884_v20 }
0x2915   :  { %8771 = vmatprep.subr.mxu0 %v9504_v0 }
0x2918   :  { %8772 = vmatpush3.xpose.msk.msra.mxu0 %vm410_vm2, %v10889_v18 }
0x2919   :  { %8776 = vmatprep.subr.mxu0 %v9504_v0 }
0x29d3   :  { %v8746_v52 = vpop.f32.mrf.mxu0 }
0x29d4   :  { %v5700_v7 = vadd.f32 %v8746_v52, %v7900_v14 }
0x29d5   :  { %v5694_v61 = vpop.f32.mrf.mxu0 }
0x29d6   :  { %v5695_v44 = vadd.f32 %v7900_v14, %v5694_v61  ;;  %v10909_v6 = vmul.f32 0.25, %v5700_v7 }
0x29d8   :  { %v10896_v4 = vmul.f32 0.25, %v5695_v44 }
0x29da   :  { %8774 = vmatmul.mubr.msk.f32.vlgmr.msra.gmra.mxu0 %vm410_vm2, %v10896_v4 }
0x29db   :  { %8777 = vmatpush3.xpose.msk.msra.mxu0 %vm410_vm2, %v10894_v2  ;;  %8780 = vmatprep.mubr.msk.f32.mxu0 %vm9505_vm1, %v9504_v0 }
0x29dc   :  { %8778 = vmatprep.subr.mxu0 %v9504_v0 }
0x29df   :  { %8779 = vmatpush3.xpose.msk.msra.mxu0 %vm410_vm2, %v10905_v49 }
0x29e0   :  { %8783 = vmatprep.subr.mxu0 %v9504_v0 }
0x29e2   :  { %8781 = vmatmul.mubr.msk.f32.vlgmr.msra.gmra.mxu0 %vm410_vm2, %v10909_v6 }
0x29e3   :  { %8787 = vmatprep.mubr.msk.f32.mxu0 %vm9505_vm1, %v9504_v0 }
0x2a9a   :  { %v5882_v62 = vpop.f32.mrf.mxu0 }
0x2a9b   :  { %v5965_v9 = vmul.f32 %v10919_v8, %v5882_v62 }
0x2a9c   :  { %v8775_v3 = vpop.f32.mrf.mxu0 }
0x2a9d   :  { %v5967_v35 = vadd.f32 %v10925_v10, %v5965_v9 }
0x2a9f   :  { %v5969_v17 = vsel %vm410_vm2, %v5967_v35, -inf }
0x2aa0   :  { %5970 = vmax.xlane.f32.xlu0 %v5969_v17 }
0x2aa2   :  { %v5961_v11 = vpop.f32.mrf.mxu0 }
0x2aa3   :  { %v5966_v39 = vmul.f32 %v10932_v13, %v5961_v11 }
0x2aa4   :  { %v8782_v37 = vpop.f32.mrf.mxu0 }
0x2aa5   :  { %v5968_v41 = vadd.f32 %v10938_v15, %v5966_v39 }
0x2aa7   :  { %v5972_v5 = vsel %vm410_vm2, %v5968_v41, -inf }
0x2aa8   :  { %5973 = vmax.xlane.f32.xlu1 %v5972_v5 }
0x2ab6   :  { %5993 = vrot.lane.b32.xlu0 %v10884_v20, %s9506_s21 }
0x2ab9   :  { %6072 = vrot.lane.b32.xlu1 %v10894_v2, %s9506_s21 }
0x2aba   :  { %6070 = vrot.lane.b32.xlu0 %v10905_v49, %s9506_s21 }
0x2abd   :  { %5991 = vrot.lane.b32.xlu1 %v10889_v18, %s9506_s21 }
0x2ac1   :  { %6153 = vrot.lane.b32.xlu1 %v10884_v20, %s9508_s3 }
0x2ac5   :  { %6151 = vrot.lane.b32.xlu1 %v10889_v18, %s9508_s3 }
0x2b29   :  { %v5971_v19 = vpop.xlane.xlu0 %5970 }
0x2b2a   :  { %v5975_v60 = vsub.f32 %v5967_v35, %v5971_v19 }
0x2b2c   :  { %v5977_v57 = vmul.f32 1.442695, %v5975_v60 }
0x2b2d   :  { %v5994_v22 = vpop.permute.xlu0 %5993 }
0x2b2e   :  { %9128 = vpow2.f32 %v5977_v57  ;;  %8784 = vmatpush3.msra.mxu0 %v5994_v22 }
0x2b2f   :  { %8785 = vmatprep.subr.mxu0 %v9504_v0 }
0x2b31   :  { %v5974_v38 = vpop.xlane.xlu1 %5973  ;;  %v6071_v23 = vpop.permute.xlu0 %6070 }
0x2b32   :  { %v5976_v59 = vsub.f32 %v5968_v41, %v5974_v38 }
0x2b34   :  { %v5979_v25 = vmul.f32 1.442695, %v5976_v59 }
0x2b35   :  { %v6073_v12 = vpop.permute.xlu1 %6072 }
0x2b36   :  { %9130 = vpow2.f32 %v5979_v25  ;;  %8791 = vmatpush3.msra.mxu1 %v6073_v12 }
0x2b37   :  { %8792 = vmatprep.subr.mxu1 %v9504_v0 }
0x2b38   :  { %8793 = vmatpush3.msra.mxu1 %v6071_v23 }
0x2b39   :  { %v5992_v24 = vpop.permute.xlu1 %5991  ;;  %8804 = vmatprep.subr.mxu1 %v9504_v0 }
0x2b3a   :  { %8786 = vmatpush3.msra.mxu0 %v5992_v24 }
0x2b3b   :  { %v9129_v31 = vpop.eup %9128  ;;  %8797 = vmatprep.subr.mxu0 %v9504_v0 }
0x2b3c   :  { %v5981_v26 = vsel %vm410_vm2, %v9129_v31, 0.0 }
0x2b3d   :  { %5982 = vadd.xlane.f32.xlu0 %v5981_v26  ;;  %v6154_v32 = vpop.permute.xlu1 %6153 }
0x2b41   :  { %v6152_v28 = vpop.permute.xlu1 %6151 }
0x2b43   :  { %v9131_v46 = vpop.eup %9130 }
0x2b44   :  { %v5984_v30 = vsel %vm410_vm2, %v9131_v46, 0.0 }
0x2b45   :  { %5985 = vadd.xlane.f32.xlu1 %v5984_v30 }
0x2b53   :  { %6235 = vrot.lane.b32.xlu0 %v10894_v2, %s9508_s3 }
0x2b56   :  { %6149 = vrot.lane.b32.xlu1 %v10896_v4, %s9508_s3 }
0x2b57   :  { %6233 = vrot.lane.b32.xlu0 %v10905_v49, %s9508_s3 }
0x2b5b   :  { %6231 = vrot.lane.b32.xlu0 %v10909_v6, %s9508_s3 }
0x2bc6   :  { %v5983_v33 = vpop.xlane.xlu0 %5982 }
0x2bc7   :  { %9132 = vrcp.f32 %v5983_v33 }
0x2bca   :  { %v6236_v51 = vpop.permute.xlu0 %6235 }
0x2bce   :  { %v5986_v34 = vpop.xlane.xlu1 %5985  ;;  %v6234_v47 = vpop.permute.xlu0 %6233 }
0x2bcf   :  { %9134 = vrcp.f32 %v5986_v34 }
0x2bd2   :  { %v6150_v48 = vpop.permute.xlu1 %6149  ;;  %v6232_v63 = vpop.permute.xlu0 %6231 }
0x2bd4   :  { %v9133_v40 = vpop.eup %9132 }
0x2bd5   :  { %v5989_v42 = vmul.f32 %v9133_v40, %v9129_v31 }
0x2bd7   :  { %8788 = vmatmul.mubr.msk.f32.vlgmr.msra.gmra.mxu0 %vm410_vm2, %v5989_v42 }
0x2bd8   :  { %8798 = vmatpush3.xpose.msk.msra.mxu0 %vm410_vm2, %v6154_v32  ;;  %8801 = vmatprep.mubr.msk.f32.mxu0 %vm9505_vm1, %v9504_v0 }
0x2bd9   :  { %8799 = vmatprep.subr.mxu0 %v9504_v0 }
0x2bdc   :  { %v9135_v43 = vpop.eup %9134  ;;  %8800 = vmatpush3.xpose.msk.msra.mxu0 %vm410_vm2, %v6152_v28 }
0x2bdd   :  { %v5990_v45 = vmul.f32 %v9135_v43, %v9131_v46  ;;  %8811 = vmatprep.subr.mxu0 %v9504_v0 }
0x2bdf   :  { %8795 = vmatmul.mubr.msk.f32.vlgmr.msra.gmra.mxu1 %vm410_vm2, %v5990_v45  ;;  %8802 = vmatmul.mubr.msk.f32.vlgmr.msra.gmra.mxu0 %vm410_vm2, %v6150_v48 }
0x2be0   :  { %8805 = vmatpush3.xpose.msk.msra.mxu1 %vm410_vm2, %v6236_v51  ;;  %8808 = vmatprep.mubr.msk.f32.mxu1 %vm9505_vm1, %v9504_v0 }
0x2be1   :  { %8806 = vmatprep.subr.mxu1 %v9504_v0  ;;  %8815 = vmatprep.mubr.msk.f32.mxu0 %vm9505_vm1, %v9504_v0 }
0x2be4   :  { %8807 = vmatpush3.xpose.msk.msra.mxu1 %vm410_vm2, %v6234_v47 }
0x2be5   :  { %8818 = vmatprep.subr.mxu1 %v9504_v0 }
0x2be7   :  { %8809 = vmatmul.mubr.msk.f32.vlgmr.msra.gmra.mxu1 %vm410_vm2, %v6232_v63 }
0x2be8   :  { %8822 = vmatprep.mubr.msk.f32.mxu1 %vm9505_vm1, %v9504_v0 }
0x2c97   :  { %v10988_v16 = vpop.f32.mrf.mxu0 }
0x2c99   :  { %v8789_v1 = vpop.f32.mrf.mxu0 }
0x2c9f   :  { %v10990_v53 = vpop.f32.mrf.mxu1  ;;  %v6227_v54 = vpop.f32.mrf.mxu0 }
0x2ca0   :  { %v6313_v50 = vmul.f32 %v10919_v8, %v6227_v54 }
0x2ca1   :  { %v8796_v21 = vpop.f32.mrf.mxu1  ;;  %v8803_v58 = vpop.f32.mrf.mxu0 }
0x2ca2   :  { %v6315_v29 = vadd.f32 %v10925_v10, %v6313_v50 }
0x2ca4   :  { %v6317_v52 = vsel %vm410_vm2, %v6315_v29, -inf }
0x2ca5   :  { %6318 = vmax.xlane.f32.xlu1 %v6317_v52 }
0x2ca7   :  { %v6309_v14 = vpop.f32.mrf.mxu1 }
0x2ca8   :  { %v6314_v61 = vmul.f32 %v10932_v13, %v6309_v14 }
0x2ca9   :  { %v8810_v44 = vpop.f32.mrf.mxu1 }
0x2caa   :  { %v6316_v56 = vadd.f32 %v10938_v15, %v6314_v61 }
0x2cac   :  { %v6320_v36 = vsel %vm410_vm2, %v6316_v56, -inf }
0x2cad   :  { %6321 = vmax.xlane.f32.xlu0 %v6320_v36 }
0x2cb6   :  { %6420 = vrot.lane.b32.xlu1 %v10894_v2, %s9507_s13 }
0x2cba   :  { %6339 = vrot.lane.b32.xlu1 %v10889_v18, %s9507_s13 }
0x2cbe   :  { %6501 = vrot.lane.b32.xlu1 %v10884_v20, %s9509_s10 }
0x2cc2   :  { %6499 = vrot.lane.b32.xlu1 %v10889_v18, %s9509_s10 }
0x2cc3   :  { %6341 = vrot.lane.b32.xlu0 %v10884_v20, %s9507_s13 }
0x2cc7   :  { %6418 = vrot.lane.b32.xlu0 %v10905_v49, %s9507_s13 }
0x2d2e   :  { %v6319_v7 = vpop.xlane.xlu1 %6318 }
0x2d2f   :  { %v6323_v62 = vsub.f32 %v6315_v29, %v6319_v7 }
0x2d31   :  { %v6325_v9 = vmul.f32 1.442695, %v6323_v62 }
0x2d32   :  { %v6421_v3 = vpop.permute.xlu1 %6420 }
0x2d33   :  { %9136 = vpow2.f32 %v6325_v9  ;;  %8819 = vmatpush3.msra.mxu1 %v6421_v3 }
0x2d34   :  { %8820 = vmatprep.subr.mxu1 %v9504_v0 }
0x2d36   :  { %v6322_v35 = vpop.xlane.xlu0 %6321  ;;  %v6340_v37 = vpop.permute.xlu1 %6339 }
0x2d37   :  { %v6324_v17 = vsub.f32 %v6316_v56, %v6322_v35 }
0x2d39   :  { %v6327_v11 = vmul.f32 1.442695, %v6324_v17 }
0x2d3a   :  { %v6342_v39 = vpop.permute.xlu0 %6341  ;;  %v6502_v22 = vpop.permute.xlu1 %6501 }
0x2d3b   :  { %9138 = vpow2.f32 %v6327_v11  ;;  %8812 = vmatpush3.msra.mxu0 %v6342_v39 }
0x2d3c   :  { %8813 = vmatprep.subr.mxu0 %v9504_v0 }
0x2d3d   :  { %8814 = vmatpush3.msra.mxu0 %v6340_v37 }
0x2d3e   :  { %v6419_v41 = vpop.permute.xlu0 %6418  ;;  %8825 = vmatprep.subr.mxu0 %v9504_v0  ;;  %v6500_v59 = vpop.permute.xlu1 %6499 }
0x2d3f   :  { %8821 = vmatpush3.msra.mxu1 %v6419_v41 }
0x2d40   :  { %v9137_v5 = vpop.eup %9136  ;;  %8832 = vmatprep.subr.mxu1 %v9504_v0 }
0x2d41   :  { %v6329_v19 = vsel %vm410_vm2, %v9137_v5, 0.0 }
0x2d42   :  { %6330 = vadd.xlane.f32.xlu0 %v6329_v19 }
0x2d48   :  { %v9139_v60 = vpop.eup %9138 }
0x2d49   :  { %v6332_v57 = vsel %vm410_vm2, %v9139_v60, 0.0 }
0x2d4a   :  { %6333 = vadd.xlane.f32.xlu1 %v6332_v57 }
0x2d58   :  { %6583 = vrot.lane.b32.xlu0 %v10894_v2, %s9509_s10 }
0x2d5b   :  { %6497 = vrot.lane.b32.xlu1 %v10896_v4, %s9509_s10 }
0x2d5c   :  { %6581 = vrot.lane.b32.xlu0 %v10905_v49, %s9509_s10 }
0x2d60   :  { %6579 = vrot.lane.b32.xlu0 %v10909_v6, %s9509_s10 }
0x2dcb   :  { %v6331_v38 = vpop.xlane.xlu0 %6330 }
0x2dcc   :  { %9140 = vrcp.f32 %v6331_v38 }
0x2dcf   :  { %v6584_v24 = vpop.permute.xlu0 %6583 }
0x2dd3   :  { %v6334_v25 = vpop.xlane.xlu1 %6333  ;;  %v6582_v30 = vpop.permute.xlu0 %6581 }
0x2dd4   :  { %9142 = vrcp.f32 %v6334_v25 }
0x2dd7   :  { %v6498_v46 = vpop.permute.xlu1 %6497  ;;  %v6580_v32 = vpop.permute.xlu0 %6579 }
0x2dd9   :  { %v9141_v12 = vpop.eup %9140 }
0x2dda   :  { %v6337_v23 = vmul.f32 %v9141_v12, %v9137_v5 }
0x2ddc   :  { %8816 = vmatmul.mubr.msk.f32.vlgmr.msra.gmra.mxu0 %vm410_vm2, %v6337_v23 }
0x2ddd   :  { %8826 = vmatpush3.xpose.msk.msra.mxu0 %vm410_vm2, %v6502_v22  ;;  %8829 = vmatprep.mubr.msk.f32.mxu0 %vm9505_vm1, %v9504_v0 }
0x2dde   :  { %8827 = vmatprep.subr.mxu0 %v9504_v0 }
0x2de1   :  { %v9143_v31 = vpop.eup %9142  ;;  %8828 = vmatpush3.xpose.msk.msra.mxu0 %vm410_vm2, %v6500_v59 }
0x2de2   :  { %v6338_v26 = vmul.f32 %v9143_v31, %v9139_v60  ;;  %8839 = vmatprep.subr.mxu0 %v9504_v0 }
0x2de4   :  { %8823 = vmatmul.mubr.msk.f32.vlgmr.msra.gmra.mxu1 %vm410_vm2, %v6338_v26  ;;  %8830 = vmatmul.mubr.msk.f32.vlgmr.msra.gmra.mxu0 %vm410_vm2, %v6498_v46 }
0x2de5   :  { %8833 = vmatpush3.xpose.msk.msra.mxu1 %vm410_vm2, %v6584_v24  ;;  %8836 = vmatprep.mubr.msk.f32.mxu1 %vm9505_vm1, %v9504_v0 }
0x2de6   :  { %8834 = vmatprep.subr.mxu1 %v9504_v0  ;;  %8843 = vmatprep.mubr.msk.f32.mxu0 %vm9505_vm1, %v9504_v0 }
0x2de9   :  { %8835 = vmatpush3.xpose.msk.msra.mxu1 %vm410_vm2, %v6582_v30 }
0x2dea   :  { %8846 = vmatprep.subr.mxu1 %v9504_v0 }
0x2dec   :  { %8837 = vmatmul.mubr.msk.f32.vlgmr.msra.gmra.mxu1 %vm410_vm2, %v6580_v32 }
0x2ded   :  { %8850 = vmatprep.mubr.msk.f32.mxu1 %vm9505_vm1, %v9504_v0 }
0x2e9c   :  { %v11044_v33 = vpop.f32.mrf.mxu0 }
0x2e9e   :  { %v8817_v28 = vpop.f32.mrf.mxu0 }
0x2ea4   :  { %v11046_v34 = vpop.f32.mrf.mxu1  ;;  %v6575_v40 = vpop.f32.mrf.mxu0 }
0x2ea5   :  { %v6661_v42 = vmul.f32 %v10919_v8, %v6575_v40 }
0x2ea6   :  { %v8824_v51 = vpop.f32.mrf.mxu1  ;;  %v8831_v43 = vpop.f32.mrf.mxu0 }
0x2ea7   :  { %v6663_v45 = vadd.f32 %v10925_v10, %v6661_v42 }
0x2ea9   :  { %v6665_v48 = vsel %vm410_vm2, %v6663_v45, -inf }
0x2eaa   :  { %6666 = vmax.xlane.f32.xlu1 %v6665_v48 }
0x2eac   :  { %v6657_v47 = vpop.f32.mrf.mxu1 }
0x2ead   :  { %v6662_v63 = vmul.f32 %v10932_v13, %v6657_v47 }
0x2eae   :  { %v8838_v1 = vpop.f32.mrf.mxu1 }
0x2eaf   :  { %v6664_v54 = vadd.f32 %v10938_v15, %v6662_v63 }
0x2eb1   :  { %v6668_v50 = vsel %vm410_vm2, %v6664_v54, -inf }
0x2eb2   :  { %6669 = vmax.xlane.f32.xlu0 %v6668_v50 }
0x2ebb   :  { %6768 = vrot.lane.b32.xlu1 %v10894_v2, %s9485_s30 }
0x2ebf   :  { %6687 = vrot.lane.b32.xlu1 %v10889_v18, %s9485_s30 }
0x2ec3   :  { %6849 = vrot.lane.b32.xlu1 %v10884_v20, %s9510_s23 }
0x2ec7   :  { %6847 = vrot.lane.b32.xlu1 %v10889_v18, %s9510_s23 }
0x2ec8   :  { %6689 = vrot.lane.b32.xlu0 %v10884_v20, %s9485_s30 }
0x2ecc   :  { %6766 = vrot.lane.b32.xlu0 %v10905_v49, %s9485_s30 }
0x2f33   :  { %v6667_v21 = vpop.xlane.xlu1 %6666 }
0x2f34   :  { %v6671_v58 = vsub.f32 %v6663_v45, %v6667_v21 }
0x2f36   :  { %v6673_v29 = vmul.f32 1.442695, %v6671_v58  ;;  %v7954_v58 = vld [vmem:[%s11305_s14 + $0x70] sm:$0xff] }
0x2f37   :  { %v6769_v52 = vpop.permute.xlu1 %6768 }
0x2f38   :  { %9144 = vpow2.f32 %v6673_v29  ;;  %8847 = vmatpush3.msra.mxu1 %v6769_v52  ;;  %v7953_v29 = vld [vmem:[%s11305_s14 + $0x68] sm:$0xff]  ;;  %v7952_v52 = vld [vmem:[%s11305_s14 + $0x60] sm:$0xff] }
0x2f39   :  { %8848 = vmatprep.subr.mxu1 %v9504_v0 }
0x2f3b   :  { %v6670_v14 = vpop.xlane.xlu0 %6669  ;;  %v6688_v36 = vpop.permute.xlu1 %6687 }
0x2f3c   :  { %v6672_v61 = vsub.f32 %v6664_v54, %v6670_v14  ;;  %v7951_v14 = vld [vmem:[%s11305_s14 + $0x58] sm:$0xff] }
0x2f3e   :  { %v6675_v44 = vmul.f32 1.442695, %v6672_v61  ;;  %v7950_v61 = vld [vmem:[%s11305_s14 + $0x50] sm:$0xff] }
0x2f3f   :  { %v6690_v56 = vpop.permute.xlu0 %6689  ;;  %v6850_v17 = vpop.permute.xlu1 %6849 }
0x2f40   :  { %9146 = vpow2.f32 %v6675_v44  ;;  %8840 = vmatpush3.msra.mxu0 %v6690_v56  ;;  %v7949_v44 = vld [vmem:[%s11305_s14 + $0x48] sm:$0xff]  ;;  %v7948_v56 = vld [vmem:[%s11305_s14 + $0x40] sm:$0xff] }
0x2f41   :  { %8841 = vmatprep.subr.mxu0 %v9504_v0 }
0x2f42   :  { %8842 = vmatpush3.msra.mxu0 %v6688_v36 }
0x2f43   :  { %v6767_v7 = vpop.permute.xlu0 %6766  ;;  %8853 = vmatprep.subr.mxu0 %v9504_v0  ;;  %v6848_v39 = vpop.permute.xlu1 %6847 }
0x2f44   :  { %8849 = vmatpush3.msra.mxu1 %v6767_v7 }
0x2f45   :  { %v9145_v62 = vpop.eup %9144  ;;  %8860 = vmatprep.subr.mxu1 %v9504_v0 }
0x2f46   :  { %v6677_v9 = vsel %vm410_vm2, %v9145_v62, 0.0 }
0x2f47   :  { %6678 = vadd.xlane.f32.xlu0 %v6677_v9 }
0x2f4d   :  { %v9147_v3 = vpop.eup %9146 }
0x2f4e   :  { %v6680_v35 = vsel %vm410_vm2, %v9147_v3, 0.0 }
0x2f4f   :  { %6681 = vadd.xlane.f32.xlu1 %v6680_v35 }
0x2f5d   :  { %6931 = vrot.lane.b32.xlu0 %v10894_v2, %s9510_s23 }
0x2f60   :  { %6845 = vrot.lane.b32.xlu1 %v10896_v4, %s9510_s23 }
0x2f61   :  { %6929 = vrot.lane.b32.xlu0 %v10905_v49, %s9510_s23 }
0x2f65   :  { %6927 = vrot.lane.b32.xlu0 %v10909_v6, %s9510_s23 }
0x2fd0   :  { %v6679_v11 = vpop.xlane.xlu0 %6678 }
0x2fd1   :  { %9148 = vrcp.f32 %v6679_v11 }
0x2fd4   :  { %v6932_v4 = vpop.permute.xlu0 %6931 }
0x2fd8   :  { %v6682_v37 = vpop.xlane.xlu1 %6681  ;;  %v6930_v57 = vpop.permute.xlu0 %6929 }
0x2fd9   :  { %9150 = vrcp.f32 %v6682_v37 }
0x2fdc   :  { %v6846_v60 = vpop.permute.xlu1 %6845  ;;  %v6928_v22 = vpop.permute.xlu0 %6927 }
0x2fde   :  { %v9149_v41 = vpop.eup %9148 }
0x2fdf   :  { %v6685_v5 = vmul.f32 %v9149_v41, %v9145_v62 }
0x2fe1   :  { %8844 = vmatmul.mubr.msk.f32.vlgmr.msra.gmra.mxu0 %vm410_vm2, %v6685_v5 }
0x2fe2   :  { %8854 = vmatpush3.xpose.msk.msra.mxu0 %vm410_vm2, %v6850_v17  ;;  %8857 = vmatprep.mubr.msk.f32.mxu0 %vm9505_vm1, %v9504_v0 }
0x2fe3   :  { %8855 = vmatprep.subr.mxu0 %v9504_v0 }
0x2fe6   :  { %v9151_v19 = vpop.eup %9150  ;;  %8856 = vmatpush3.xpose.msk.msra.mxu0 %vm410_vm2, %v6848_v39 }
0x2fe7   :  { %v6686_v6 = vmul.f32 %v9151_v19, %v9147_v3  ;;  %8867 = vmatprep.subr.mxu0 %v9504_v0 }
0x2fe9   :  { %8851 = vmatmul.mubr.msk.f32.vlgmr.msra.gmra.mxu1 %vm410_vm2, %v6686_v6  ;;  %8858 = vmatmul.mubr.msk.f32.vlgmr.msra.gmra.mxu0 %vm410_vm2, %v6846_v60 }
0x2fea   :  { %8861 = vmatpush3.xpose.msk.msra.mxu1 %vm410_vm2, %v6932_v4  ;;  %8864 = vmatprep.mubr.msk.f32.mxu1 %vm9505_vm1, %v9504_v0 }
0x2feb   :  { %8862 = vmatprep.subr.mxu1 %v9504_v0  ;;  %8871 = vmatprep.mubr.msk.f32.mxu0 %vm9505_vm1, %v9504_v0 }
0x2fee   :  { %8863 = vmatpush3.xpose.msk.msra.mxu1 %vm410_vm2, %v6930_v57  ;;  %v7956_v57 = vld [vmem:[#allocation10 + $0x1] ss:$0 sm:$0xff] }
0x2fef   :  { %8874 = vmatprep.subr.mxu1 %v9504_v0 }
0x2ff1   :  { %8865 = vmatmul.mubr.msk.f32.vlgmr.msra.gmra.mxu1 %vm410_vm2, %v6928_v22 }
0x2ff2   :  { %8878 = vmatprep.mubr.msk.f32.mxu1 %vm9505_vm1, %v9504_v0 }
0x30a1   :  { %v6762_v38 = vpop.f32.mrf.mxu0 }
0x30a3   :  { %v8845_v59 = vpop.f32.mrf.mxu0 }
0x30a9   :  { %v6841_v25 = vpop.f32.mrf.mxu1  ;;  %v6923_v12 = vpop.f32.mrf.mxu0 }
0x30aa   :  { %v7009_v23 = vmul.f32 %v10919_v8, %v6923_v12 }
0x30ab   :  { %v8852_v24 = vpop.f32.mrf.mxu1  ;;  %v8859_v31 = vpop.f32.mrf.mxu0 }
0x30ac   :  { %v7011_v26 = vadd.f32 %v10925_v10, %v7009_v23 }
0x30ae   :  { %v7013_v46 = vsel %vm410_vm2, %v7011_v26, -inf }
0x30af   :  { %7014 = vmax.xlane.f32.xlu1 %v7013_v46 }
0x30b1   :  { %v7005_v30 = vpop.f32.mrf.mxu1 }
0x30b2   :  { %v7010_v32 = vmul.f32 %v10932_v13, %v7005_v30 }
0x30b3   :  { %v8866_v28 = vpop.f32.mrf.mxu1 }
0x30b4   :  { %v7012_v40 = vadd.f32 %v10938_v15, %v7010_v32 }
0x30b6   :  { %v7016_v42 = vsel %vm410_vm2, %v7012_v40, -inf }
0x30b7   :  { %7017 = vmax.xlane.f32.xlu0 %v7016_v42  ;;  %v7968_v42 = vld [vmem:[%s11307_s16 + $0x78] sm:$0xff] }
0x30c0   :  { %7116 = vrot.lane.b32.xlu1 %v10894_v2, %s9489_s1 }
0x30cd   :  { %7037 = vrot.lane.b32.xlu0 %v10884_v20, %s9489_s1 }
0x3138   :  { %v7015_v8 = vpop.xlane.xlu1 %7014 }
0x3139   :  { %v7019_v10 = vsub.f32 %v7011_v26, %v7015_v8  ;;  %v7967_v8 = vld [vmem:[%s11307_s16 + $0x70] sm:$0xff] }
0x313b   :  { %v7021_v51 = vmul.f32 1.442695, %v7019_v10  ;;  %v7966_v10 = vld [vmem:[%s11307_s16 + $0x68] sm:$0xff] }
0x313c   :  { %v7117_v43 = vpop.permute.xlu1 %7116 }
0x313d   :  { %9152 = vpow2.f32 %v7021_v51  ;;  %8875 = vmatpush3.msra.mxu1 %v7117_v43  ;;  %v7965_v51 = vld [vmem:[%s11307_s16 + $0x60] sm:$0xff]  ;;  %v7964_v43 = vld [vmem:[%s11307_s16 + $0x58] sm:$0xff] }
0x313e   :  { %8876 = vmatprep.subr.mxu1 %v9504_v0 }
0x3140   :  { %v7018_v13 = vpop.xlane.xlu0 %7017 }
0x3141   :  { %v7020_v45 = vsub.f32 %v7012_v40, %v7018_v13  ;;  %v7963_v13 = vld [vmem:[%s11307_s16 + $0x50] sm:$0xff] }
0x3143   :  { %v7023_v15 = vmul.f32 1.442695, %v7020_v45  ;;  %v7962_v45 = vld [vmem:[%s11307_s16 + $0x48] sm:$0xff] }
0x3144   :  { %v7038_v48 = vpop.permute.xlu0 %7037 }
0x3145   :  { %9154 = vpow2.f32 %v7023_v15  ;;  %8868 = vmatpush3.msra.mxu0 %v7038_v48  ;;  %v7961_v15 = vld [vmem:[%s11307_s16 + $0x40] sm:$0xff]  ;;  %v7987_v48 = vld [vmem:[%s11309_s18 + $0xf8] sm:$0xff] }
0x3146   :  { %8869 = vmatprep.subr.mxu0 %v9504_v0 }
0x314a   :  { %v9153_v2 = vpop.eup %9152 }
0x314b   :  { %v7025_v47 = vsel %vm410_vm2, %v9153_v2, 0.0 }
0x314c   :  { %7026 = vadd.xlane.f32.xlu0 %v7025_v47  ;;  %v7985_v47 = vld [vmem:[%s11309_s18 + $0xe8] sm:$0xff] }
0x3152   :  { %v9155_v20 = vpop.eup %9154 }
0x3153   :  { %v7028_v63 = vsel %vm410_vm2, %v9155_v20, 0.0 }
0x3154   :  { %7029 = vadd.xlane.f32.xlu1 %v7028_v63  ;;  %v7983_v63 = vld [vmem:[%s11309_s18 + $0xd8] sm:$0xff] }
0x3162   :  { %7114 = vrot.lane.b32.xlu0 %v10905_v49, %s9489_s1 }
0x3165   :  { %7035 = vrot.lane.b32.xlu1 %v10889_v18, %s9489_s1 }
0x3166   :  { %7197 = vrot.lane.b32.xlu0 %v11046_v34, %s9489_s1 }
0x3169   :  { %7195 = vrot.lane.b32.xlu1 %v11044_v33, %s9489_s1  ;;  %v7955_v33 = vld [vmem:[%s11305_s14 + $0x78] sm:$0xff] }
0x316a   :  { %7205 = vrot.lane.b32.xlu0 %v6841_v25, %s9485_s30 }
0x316d   :  { %7203 = vrot.lane.b32.xlu1 %v6762_v38, %s9485_s30 }
0x31d5   :  { %v7027_v0 = vpop.xlane.xlu0 %7026 }
0x31d6   :  { %9156 = vrcp.f32 %v7027_v0  ;;  %v7982_v0 = vld [vmem:[%s11309_s18 + $0xd0] sm:$0xff] }
0x31d9   :  { %v7115_v1 = vpop.permute.xlu0 %7114 }
0x31da   :  { %8877 = vmatpush3.msra.mxu1 %v7115_v1  ;;  %v7981_v1 = vld [vmem:[%s11309_s18 + $0xc8] sm:$0xff] }
0x31db   :  { %8900 = vmatprep.subr.mxu1 %v7968_v42 }
0x31dd   :  { %v7030_v54 = vpop.xlane.xlu1 %7029  ;;  %v7198_v17 = vpop.permute.xlu0 %7197 }
0x31de   :  { %9158 = vrcp.f32 %v7030_v54  ;;  %v7218_v4 = vsel %vm410_vm2, %v10990_v53, %v7198_v17  ;;  %v7980_v54 = vld [vmem:[%s11309_s18 + $0xc0] sm:$0xff] }
0x31e1   :  { %v7036_v49 = vpop.permute.xlu1 %7035  ;;  %v7206_v5 = vpop.permute.xlu0 %7205 }
0x31e2   :  { %8870 = vmatpush3.msra.mxu0 %v7036_v49  ;;  %v7220_v19 = vsel %vm1767_vm4, %v7218_v4, %v7206_v5  ;;  %v7979_v49 = vld [vmem:[%s11309_s18 + $0xb8] sm:$0xff] }
0x31e3   :  { %v9157_v50 = vpop.eup %9156  ;;  %8881 = vmatprep.subr.mxu0 %v7955_v33 }
0x31e4   :  { %v7033_v18 = vmul.f32 %v9157_v50, %v9153_v2  ;;  %v7986_v2 = vld [vmem:[%s11309_s18 + $0xf0] sm:$0xff] }
0x31e5   :  { %v7196_v3 = vpop.permute.xlu1 %7195  ;;  %v7978_v50 = vld [vmem:[%s11309_s18 + $0xb0] sm:$0xff] }
0x31e6   :  { %8872 = vmatmul.mubr.msk.f32.vlgmr.msra.gmra.mxu0 %vm410_vm2, %v7033_v18  ;;  %v7217_v11 = vsel %vm410_vm2, %v10988_v16, %v7196_v3  ;;  %v7977_v18 = vld [vmem:[%s11309_s18 + $0xa8] sm:$0xff] }
0x31e7   :  { %8882 = vmatpush3.msra.mxu0 %v7955_v33 }
0x31e8   :  { %8883 = vmatprep.subr.mxu0 %v7954_v58 }
0x31e9   :  { %8884 = vmatpush3.msra.mxu0 %v7954_v58  ;;  %v7204_v35 = vpop.permute.xlu1 %7203 }
0x31ea   :  { %8885 = vmatprep.subr.mxu0 %v7953_v29  ;;  %v7219_v39 = vsel %vm1767_vm4, %v7217_v11, %v7204_v35 }
0x31eb   :  { %v9159_v34 = vpop.eup %9158  ;;  %8886 = vmatpush3.msra.mxu0 %v7953_v29 }
0x31ec   :  { %v7034_v21 = vmul.f32 %v9159_v34, %v9155_v20  ;;  %8887 = vmatprep.subr.mxu0 %v7952_v52  ;;  %v7984_v20 = vld [vmem:[%s11309_s18 + $0xe0] sm:$0xff] }
0x31ed   :  { %8888 = vmatpush3.msra.mxu0 %v7952_v52  ;;  %v7976_v34 = vld [vmem:[%s11309_s18 + $0xa0] sm:$0xff] }
0x31ee   :  { %8879 = vmatmul.mubr.msk.f32.vlgmr.msra.gmra.mxu1 %vm410_vm2, %v7034_v21  ;;  %8889 = vmatprep.subr.mxu0 %v7951_v14 }
0x31ef   :  { %8890 = vmatpush3.msra.mxu0 %v7951_v14  ;;  %8901 = vmatpush3.msra.mxu1 %v7968_v42 }
0x31f0   :  { %8891 = vmatprep.subr.mxu0 %v7950_v61  ;;  %8902 = vmatprep.subr.mxu1 %v7967_v8 }
0x31f1   :  { %8892 = vmatpush3.msra.mxu0 %v7950_v61  ;;  %8903 = vmatpush3.msra.mxu1 %v7967_v8 }
0x31f2   :  { %8893 = vmatprep.subr.mxu0 %v7949_v44  ;;  %8904 = vmatprep.subr.mxu1 %v7966_v10 }
0x31f3   :  { %8894 = vmatpush3.msra.mxu0 %v7949_v44  ;;  %8905 = vmatpush3.msra.mxu1 %v7966_v10 }
0x31f4   :  { %8895 = vmatprep.subr.mxu0 %v7948_v56  ;;  %8906 = vmatprep.subr.mxu1 %v7965_v51 }
0x31f5   :  { %8896 = vmatpush3.msra.mxu0 %v7948_v56  ;;  %8907 = vmatpush3.msra.mxu1 %v7965_v51 }
0x31f6   :  { %8908 = vmatprep.subr.mxu1 %v7964_v43  ;;  %8919 = vmatprep.subr.mxu0 %v7987_v48 }
0x31f7   :  { %8909 = vmatpush3.msra.mxu1 %v7964_v43 }
0x31f8   :  { %8910 = vmatprep.subr.mxu1 %v7963_v13 }
0x31f9   :  { %8911 = vmatpush3.msra.mxu1 %v7963_v13 }
0x31fa   :  { %8912 = vmatprep.subr.mxu1 %v7962_v45 }
0x31fb   :  { %8913 = vmatpush3.msra.mxu1 %v7962_v45 }
0x31fc   :  { %8914 = vmatprep.subr.mxu1 %v7961_v15 }
0x31fd   :  { %8915 = vmatpush3.msra.mxu1 %v7961_v15 }
0x32a6   :  { %v7110_v36 = vpop.f32.mrf.mxu0 }
0x32a7   :  { %7211 = vrot.lane.b32.xlu1 %v7110_v36, %s9507_s13 }
0x32a8   :  { %v8873_v7 = vpop.f32.mrf.mxu0 }
0x32ae   :  { %v7189_v62 = vpop.f32.mrf.mxu1 }
0x32af   :  { %7213 = vrot.lane.b32.xlu0 %v7189_v62, %s9507_s13 }
0x32b0   :  { %v8880_v9 = vpop.f32.mrf.mxu1 }
0x3319   :  { %v7212_v37 = vpop.permute.xlu1 %7211 }
0x331a   :  { %v7221_v41 = vsel %vm1770_vm5, %v7219_v39, %v7212_v37  ;;  %v7959_v37 = vld [vmem:[#allocation18 + $0x1] ss:$0 sm:$0xff] }
0x331b   :  { %8897 = vmatprep.mubr.msk.f32.mxu0 %vm321_vm0, %v7221_v41 }
0x3321   :  { %v7214_v6 = vpop.permute.xlu0 %7213 }
0x3322   :  { %v7222_v60 = vsel %vm1770_vm5, %v7220_v19, %v7214_v6  ;;  %v7960_v19 = vld [vmem:[#allocation19 + $0x1] ss:$0 sm:$0xff] }
0x3323   :  { %8898 = vmatmul.mubr.msk.f32.vlgmr.msra.gmra.mxu0 %vm321_vm0, %v7222_v60 }
0x3324   :  { %8920 = vmatpush3.msra.mxu0 %v7987_v48 }
0x3325   :  { %8921 = vmatprep.subr.mxu0 %v7986_v2 }
0x3326   :  { %8922 = vmatpush3.msra.mxu0 %v7986_v2 }
0x3327   :  { %8923 = vmatprep.subr.mxu0 %v7985_v47 }
0x3328   :  { %8924 = vmatpush3.msra.mxu0 %v7985_v47 }
0x3329   :  { %8925 = vmatprep.subr.mxu0 %v7984_v20 }
0x332a   :  { %8926 = vmatpush3.msra.mxu0 %v7984_v20 }
0x332b   :  { %8927 = vmatprep.subr.mxu0 %v7983_v63 }
0x332c   :  { %8928 = vmatpush3.msra.mxu0 %v7983_v63  ;;  %v7652_v63 = vld [vmem:[%s11317_s26 + $0x38] sm:$0xff] }
0x332d   :  { %8929 = vmatprep.subr.mxu0 %v7982_v0  ;;  %8954 = vmatprep.subr.mxu1 %v7652_v63 }
0x332e   :  { %8930 = vmatpush3.msra.mxu0 %v7982_v0  ;;  %v7651_v0 = vld [vmem:[%s11317_s26 + $0x30] sm:$0xff] }
0x332f   :  { %8931 = vmatprep.subr.mxu0 %v7981_v1 }
0x3330   :  { %8932 = vmatpush3.msra.mxu0 %v7981_v1  ;;  %v7650_v1 = vld [vmem:[%s11317_s26 + $0x28] sm:$0xff] }
0x3331   :  { %8933 = vmatprep.subr.mxu0 %v7980_v54 }
0x3332   :  { %8934 = vmatpush3.msra.mxu0 %v7980_v54  ;;  %v7649_v54 = vld [vmem:[%s11317_s26 + $0x20] sm:$0xff] }
0x3333   :  { %8935 = vmatprep.subr.mxu0 %v7979_v49 }
0x3334   :  { %8936 = vmatpush3.msra.mxu0 %v7979_v49  ;;  %v7648_v49 = vld [vmem:[%s11317_s26 + $0x18] sm:$0xff] }
0x3335   :  { %8937 = vmatprep.subr.mxu0 %v7978_v50 }
0x3336   :  { %8938 = vmatpush3.msra.mxu0 %v7978_v50  ;;  %v7647_v50 = vld [vmem:[%s11317_s26 + $0x10] sm:$0xff] }
0x3337   :  { %8939 = vmatprep.subr.mxu0 %v7977_v18 }
0x3338   :  { %8940 = vmatpush3.msra.mxu0 %v7977_v18  ;;  %v7646_v18 = vld [vmem:[%s11317_s26 + $0x8] sm:$0xff] }
0x3339   :  { %8941 = vmatprep.subr.mxu0 %v7976_v34 }
0x333a   :  { %8942 = vmatpush3.msra.mxu0 %v7976_v34  ;;  %v7645_v34 = vld [vmem:[%s11317_s26] sm:$0xff] }
0x33e3   :  { %v8899_v16 = vpop.f32.mrf.mxu0 }
0x33e4   :  { %v7318_v22 = vadd.f32 %v8899_v16, %v7956_v57  ;;  %v7975_v16 = vld [vmem:[%s11309_s18 + $0x98] sm:$0xff] }
0x33e5   :  { %v7312_v38 = vpop.f32.mrf.mxu0  ;;  %8943 = vmatprep.subr.mxu0 %v7975_v16 }
0x33e6   :  { %v7322_v59 = vadd.f32 %v7318_v22, %v10876_v27  ;;  %v7313_v25 = vadd.f32 %v7956_v57, %v7312_v38  ;;  %8944 = vmatpush3.msra.mxu0 %v7975_v16  ;;  %v7974_v22 = vld [vmem:[%s11309_s18 + $0x90] sm:$0xff]  ;;  %v7973_v38 = vld [vmem:[%s11309_s18 + $0x88] sm:$0xff]  ;;  %v7991_v16 = vld [vmem:[%s11318_s27] ss:$0 sm:$0xff] }
0x33e7   :  { %8945 = vmatprep.subr.mxu0 %v7974_v22 }
0x33e8   :  { %v7321_v12 = vadd.f32 %v7313_v25, %v10874_v55  ;;  %v7330_v23 = vsel %vm321_vm0, %v7322_v59, 0.0  ;;  %8946 = vmatpush3.msra.mxu0 %v7974_v22  ;;  %v7969_v25 = vld [vmem:[#allocation12 + $0x1] ss:$0 sm:$0xff] }
0x33e9   :  { %7331 = vadd.xlane.f32.xlu0 %v7330_v23  ;;  %8947 = vmatprep.subr.mxu0 %v7973_v38 }
0x33ea   :  { %v7327_v53 = vsel %vm321_vm0, %v7321_v12, 0.0  ;;  %8948 = vmatpush3.msra.mxu0 %v7973_v38 }
0x33eb   :  { %7328 = vadd.xlane.f32.xlu1 %v7327_v53 }
0x3472   :  { %v7332_v24 = vpop.xlane.xlu0 %7331 }
0x3473   :  { %v7334_v31 = vmul.f32 0.015625, %v7332_v24 }
0x3474   :  { %v7329_v26 = vpop.xlane.xlu1 %7328 }
0x3475   :  { %v11166_v46 = vsub.f32 %v7322_v59, %v7334_v31  ;;  %v7333_v30 = vmul.f32 0.015625, %v7329_v26  ;;  %v7972_v59 = vld [vmem:[%s11309_s18 + $0x80] sm:$0xff] }
0x3476   :  { %8949 = vmatprep.subr.mxu0 %v7972_v59 }
0x3477   :  { %v11168_v32 = vsub.f32 %v7321_v12, %v7333_v30  ;;  %v7338_v27 = vmul.f32 %v11166_v46, %v11166_v46  ;;  %8950 = vmatpush3.msra.mxu0 %v7972_v59 }
0x3479   :  { %v7342_v28 = vsel %vm321_vm0, %v7338_v27, 0.0  ;;  %v7337_v55 = vmul.f32 %v11168_v32, %v11168_v32 }
0x347a   :  { %7343 = vadd.xlane.f32.xlu1 %v7342_v28 }
0x347b   :  { %v7339_v40 = vsel %vm321_vm0, %v7337_v55, 0.0 }
0x347c   :  { %7340 = vadd.xlane.f32.xlu0 %v7339_v40 }
0x3503   :  { %v7344_v21 = vpop.xlane.xlu1 %7343 }
0x3504   :  { %v7346_v33 = vmul.f32 0.015625, %v7344_v21 }
0x3505   :  { %v7341_v58 = vpop.xlane.xlu0 %7340 }
0x3506   :  { %v7348_v29 = vadd.f32 1e-12, %v7346_v33  ;;  %v7345_v52 = vmul.f32 0.015625, %v7341_v58 }
0x3508   :  { %9160 = vrsqrt.f32 %v7348_v29  ;;  %v7347_v14 = vadd.f32 1e-12, %v7345_v52  ;;  %vm7358_vm1 = vcmp.eq.f32.partialorder %v7348_v29, inf  ;;  %v7361_v56 = vand.u32 2147483648, %v7348_v29 }
0x3509   :  { %vm7360_vm2 = vcmp.eq.f32.partialorder %v7348_v29, 0.0 }
0x350a   :  { %9162 = vrsqrt.f32 %v7347_v14  ;;  %vm7351_vm4 = vcmp.eq.f32.partialorder %v7347_v14, inf  ;;  %v7354_v3 = vand.u32 2147483648, %v7347_v14  ;;  %vm7353_vm5 = vcmp.eq.f32.partialorder %v7347_v14, 0.0 }
0x3515   :  { %v9161_v61 = vpop.eup %9160 }
0x3516   :  { %v7357_v44 = vmul.f32 %v9161_v61, %v7348_v29 }
0x3517   :  { %v9163_v36 = vpop.eup %9162 }
0x3518   :  { %v7359_v7 = vsel %vm7358_vm1, %v7348_v29, %v7357_v44  ;;  %v7350_v9 = vmul.f32 %v9163_v36, %v7347_v14 }
0x3519   :  { %v7362_v62 = vsel %vm7360_vm2, %v7361_v56, %v7359_v7 }
0x351a   :  { %9164 = vrcp.f32 %v7362_v62  ;;  %v7352_v35 = vsel %vm7351_vm4, %v7347_v14, %v7350_v9 }
0x351b   :  { %v7355_v17 = vsel %vm7353_vm5, %v7354_v3, %v7352_v35 }
0x351c   :  { %9166 = vrcp.f32 %v7355_v17 }
0x3527   :  { %v9165_v11 = vpop.eup %9164 }
0x3528   :  { %v7366_v39 = vmul.f32 %v9165_v11, %v11166_v46  ;;  %v7988_v46 = vld [vmem:[#allocation13 + $0x1] ss:$0 sm:$0xff] }
0x3529   :  { %v9167_v41 = vpop.eup %9166 }
0x352a   :  { %v7364_v5 = vmul.f32 %v9167_v41, %v11168_v32  ;;  %v7374_v4 = vmul.f32 %v7959_v37, %v7366_v39 }
0x352c   :  { %v7373_v6 = vmul.f32 %v7959_v37, %v7364_v5  ;;  %v7382_v57 = vadd.f32 %v7960_v19, %v7374_v4  ;;  %v7989_v37 = vld [vmem:[#allocation21 + $0x1] ss:$0 sm:$0xff] }
0x352e   :  { %v7381_v60 = vadd.f32 %v7960_v19, %v7373_v6  ;;  %v7990_v19 = vld [vmem:[#allocation22 + $0x1] ss:$0 sm:$0xff] }
0x3530   :  { %8916 = vmatprep.mubr.msk.f32.mxu1 %vm321_vm0, %v7381_v60 }
0x3531   :  { %8917 = vmatmul.mubr.msk.f32.vlgmr.msra.gmra.mxu1 %vm321_vm0, %v7382_v57 }
0x3532   :  { %8955 = vmatpush3.msra.mxu1 %v7652_v63 }
0x3533   :  { %8956 = vmatprep.subr.mxu1 %v7651_v0 }
0x3534   :  { %8957 = vmatpush3.msra.mxu1 %v7651_v0 }
0x3535   :  { %8958 = vmatprep.subr.mxu1 %v7650_v1 }
0x3536   :  { %8959 = vmatpush3.msra.mxu1 %v7650_v1 }
0x3537   :  { %8960 = vmatprep.subr.mxu1 %v7649_v54 }
0x3538   :  { %8961 = vmatpush3.msra.mxu1 %v7649_v54 }
0x3539   :  { %8962 = vmatprep.subr.mxu1 %v7648_v49 }
0x353a   :  { %8963 = vmatpush3.msra.mxu1 %v7648_v49 }
0x353b   :  { %8964 = vmatprep.subr.mxu1 %v7647_v50 }
0x353c   :  { %8965 = vmatpush3.msra.mxu1 %v7647_v50 }
0x353d   :  { %8966 = vmatprep.subr.mxu1 %v7646_v18 }
0x353e   :  { %8967 = vmatpush3.msra.mxu1 %v7646_v18 }
0x353f   :  { %8968 = vmatprep.subr.mxu1 %v7645_v34 }
0x3540   :  { %8969 = vmatpush3.msra.mxu1 %v7645_v34 }
0x35f1   :  { %v8918_v12 = vpop.f32.mrf.mxu1 }
0x35f2   :  { %v7478_v23 = vadd.f32 %v8918_v12, %v7969_v25 }
0x35f3   :  { %v7472_v53 = vpop.f32.mrf.mxu1 }
0x35f4   :  { %v7473_v24 = vadd.f32 %v7969_v25, %v7472_v53  ;;  %v7482_v26 = vmax.f32 %v7478_v23, 0.0 }
0x35f6   :  { %v7481_v31 = vmax.f32 %v7473_v24, 0.0 }
0x35f8   :  { %8951 = vmatprep.mubr.f32.mxu0 %v7481_v31 }
0x35f9   :  { %8952 = vmatmul.mubr.f32.vlgmr.msra.gmra.mxu0 %v7482_v26 }
0x36b9   :  { %v8953_v30 = vpop.f32.mrf.mxu0 }
0x36ba   :  { %v7580_v32 = vadd.f32 %v8953_v30, %v7988_v46 }
0x36bb   :  { %v7574_v27 = vpop.f32.mrf.mxu0 }
0x36bc   :  { %v7584_v28 = vadd.f32 %v7580_v32, %v7382_v57  ;;  %v7575_v55 = vadd.f32 %v7988_v46, %v7574_v27 }
0x36be   :  { %v7583_v40 = vadd.f32 %v7575_v55, %v7381_v60  ;;  %v7592_v42 = vsel %vm321_vm0, %v7584_v28, 0.0 }
0x36bf   :  { %7593 = vadd.xlane.f32.xlu1 %v7592_v42 }
0x36c0   :  { %v7589_v8 = vsel %vm321_vm0, %v7583_v40, 0.0 }
0x36c1   :  { %7590 = vadd.xlane.f32.xlu0 %v7589_v8 }
0x3748   :  { %v7594_v10 = vpop.xlane.xlu1 %7593 }
0x3749   :  { %v7596_v51 = vmul.f32 0.015625, %v7594_v10 }
0x374a   :  { %v7591_v43 = vpop.xlane.xlu0 %7590 }
0x374b   :  { %v7598_v13 = vsub.f32 %v7584_v28, %v7596_v51  ;;  %v7595_v45 = vmul.f32 0.015625, %v7591_v43 }
0x374d   :  { %v7597_v15 = vsub.f32 %v7583_v40, %v7595_v45  ;;  %v7600_v48 = vmul.f32 %v7598_v13, %v7598_v13 }
0x374f   :  { %v7604_v2 = vsel %vm321_vm0, %v7600_v48, 0.0  ;;  %v7599_v47 = vmul.f32 %v7597_v15, %v7597_v15 }
0x3750   :  { %7605 = vadd.xlane.f32.xlu1 %v7604_v2 }
0x3751   :  { %v7601_v20 = vsel %vm321_vm0, %v7599_v47, 0.0 }
0x3752   :  { %7602 = vadd.xlane.f32.xlu0 %v7601_v20 }
0x37d9   :  { %v7606_v21 = vpop.xlane.xlu1 %7605 }
0x37da   :  { %v7608_v33 = vmul.f32 0.015625, %v7606_v21 }
0x37db   :  { %v7603_v58 = vpop.xlane.xlu0 %7602 }
0x37dc   :  { %v7610_v29 = vadd.f32 1e-12, %v7608_v33  ;;  %v7607_v52 = vmul.f32 0.015625, %v7603_v58 }
0x37de   :  { %9168 = vrsqrt.f32 %v7610_v29  ;;  %v7609_v14 = vadd.f32 1e-12, %v7607_v52  ;;  %vm7620_vm11 = vcmp.eq.f32.partialorder %v7610_v29, inf  ;;  %v7623_v56 = vand.u32 2147483648, %v7610_v29 }
0x37df   :  { %vm7622_vm12 = vcmp.eq.f32.partialorder %v7610_v29, 0.0 }
0x37e0   :  { %9170 = vrsqrt.f32 %v7609_v14  ;;  %vm7613_vm13 = vcmp.eq.f32.partialorder %v7609_v14, inf  ;;  %v7616_v3 = vand.u32 2147483648, %v7609_v14  ;;  %vm7615_vm14 = vcmp.eq.f32.partialorder %v7609_v14, 0.0 }
0x37eb   :  { %v9169_v61 = vpop.eup %9168 }
0x37ec   :  { %v7619_v44 = vmul.f32 %v9169_v61, %v7610_v29 }
0x37ed   :  { %v9171_v36 = vpop.eup %9170 }
0x37ee   :  { %v7621_v7 = vsel %vm7620_vm11, %v7610_v29, %v7619_v44  ;;  %v7612_v9 = vmul.f32 %v9171_v36, %v7609_v14 }
0x37ef   :  { %v7624_v62 = vsel %vm7622_vm12, %v7623_v56, %v7621_v7 }
0x37f0   :  { %9172 = vrcp.f32 %v7624_v62  ;;  %v7614_v35 = vsel %vm7613_vm13, %v7609_v14, %v7612_v9 }
0x37f1   :  { %v7617_v17 = vsel %vm7615_vm14, %v7616_v3, %v7614_v35 }
0x37f2   :  { %9174 = vrcp.f32 %v7617_v17 }
0x37fd   :  { %v9173_v11 = vpop.eup %9172 }
0x37fe   :  { %v7628_v39 = vmul.f32 %v9173_v11, %v7598_v13 }
0x37ff   :  { %v9175_v41 = vpop.eup %9174 }
0x3800   :  { %v7626_v5 = vmul.f32 %v9175_v41, %v7597_v15  ;;  %v7636_v4 = vmul.f32 %v7989_v37, %v7628_v39 }
0x3802   :  { %v7635_v6 = vmul.f32 %v7989_v37, %v7626_v5  ;;  %v7644_v57 = vadd.f32 %v7990_v19, %v7636_v4 }
0x3804   :  { %v7643_v60 = vadd.f32 %v7990_v19, %v7635_v6 }
0x3806   :  { %8970 = vmatprep.mubr.msk.f32.mxu1 %vm321_vm0, %v7643_v60 }
0x3807   :  { %8971 = vmatmul.mubr.msk.f32.vlgmr.msra.gmra.mxu1 %vm321_vm0, %v7644_v57 }
0x38c7   :  { %v8972_v22 = vpop.f32.mrf.mxu1 }
0x38c8   :  { %v7738_v38 = vadd.f32 %v8972_v22, %v7991_v16 }
0x38c9   :  { %v7732_v59 = vpop.f32.mrf.mxu1 }
0x38ca   :  { %7742 = vst [vmem:[%s11319_s28 + $0x8] sm:$0xff] %v7738_v38  ;;  %v7733_v25 = vadd.f32 %v7991_v16, %v7732_v59 }
0x38cc   :  { %7741 = vst [vmem:[%s11319_s28] sm:$0xff] %v7733_v25 }
0x38cd   :  { %7747 = vsyncpa [#allocation3], 1 }
0x38ce   :  { %7748 = vsyncpa [#allocation5], 1 }
0x38cf   :  { %7749 = vsyncpa [#allocation8], 1 }
0x38d0   :  { %7750 = vsyncpa [#allocation11], 1 }
0x38d1   :  { %7751 = vsyncpa [#allocation14], 1 }
0x38d2   :  { %7752 = vsyncpa [#allocation17], 1 }
0x38d3   :  { %7753 = vsyncpa [#allocation20], 1 }
0x38d4   :  { %7754 = vsyncpa [#allocation23], 1 }

</bundles_post_ra>
